<compile_context>
chip_gen: v6e
topology: v6e:2x2x1
jax: 0.10.0
libtpu: 0.0.40
codegen_flags: <defaults>
</compile_context>

<pallas_src>
import functools

import jax
import jax.numpy as jnp
from jax.experimental import pallas as pl
from jax.experimental.pallas import tpu as pltpu

HIDDEN1 = 1000
HIDDEN2 = 2000
N2_TILE = 512            # fc2-output / fc3-reduction tile streamed over the grid


def _round_up(x, m):
    return ((x + m - 1) // m) * m


# ------------------------------------------------------------------ kernel --
def _make_mlp_kernel(kd):
    """fc1 -> relu -> fc2 -> relu -> fc3, streamed over fc2's output dim."""

    def kernel(x_ref, w1_ref, b1_ref, w2_ref, b2_ref, w3_ref, b3_ref, *rest):
        if kd:
            h_ref, out_ref, h1_ref = rest
        else:
            out_ref, h1_ref = rest
            h_ref = None

        j = pl.program_id(0)

        @pl.when(j == 0)
        def _():
            # fc1 + ReLU once; result kept in a bf16 VMEM scratch for all steps.
            a1 = jnp.dot(x_ref[...].astype(jnp.bfloat16), w1_ref[...],
                         preferred_element_type=jnp.float32)
            h1_ref[...] = jnp.maximum(a1 + b1_ref[...], 0.0).astype(jnp.bfloat16)
            # Initialize the resident logits accumulator with the fc3 bias.
            out_ref[...] = jnp.broadcast_to(b3_ref[...], out_ref.shape)

        # fc2 block j (+ ReLU) in f32.
        a2 = jnp.dot(h1_ref[...], w2_ref[...], preferred_element_type=jnp.float32)
        h2 = jnp.maximum(a2 + b2_ref[...], 0.0)
        if kd:
            h_ref[...] = h2                      # post-ReLU fc2 block (KD output)

        # fc3 partial product for this K-block, accumulated in f32.
        out_ref[...] += jnp.dot(h2.astype(jnp.bfloat16), w3_ref[...],
                                preferred_element_type=jnp.float32)

    return kernel


def _mlp_pallas(xf, w1, b1, w2, b2, w3, b3, *, kd):
    B, KP = xf.shape
    N1P = w1.shape[1]
    N2P = w2.shape[1]
    N3P = w3.shape[1]
    assert N2P % N2_TILE == 0
    nblk = N2P // N2_TILE

    in_specs = [
        pl.BlockSpec((B, KP), lambda j: (0, 0)),           # x   (resident)
        pl.BlockSpec((KP, N1P), lambda j: (0, 0)),         # w1  (resident)
        pl.BlockSpec((1, N1P), lambda j: (0, 0)),          # b1  (resident)
        pl.BlockSpec((N1P, N2_TILE), lambda j: (0, j)),    # w2  (streamed)
        pl.BlockSpec((1, N2_TILE), lambda j: (0, j)),      # b2  (streamed)
        pl.BlockSpec((N2_TILE, N3P), lambda j: (j, 0)),    # w3  (streamed)
        pl.BlockSpec((1, N3P), lambda j: (0, 0)),          # b3  (resident)
    ]

    logits_spec = pl.BlockSpec((B, N3P), lambda j: (0, 0))   # resident accumulator
    logits_shape = jax.ShapeDtypeStruct((B, N3P), jnp.float32)

    if kd:
        out_specs = (pl.BlockSpec((B, N2_TILE), lambda j: (0, j)), logits_spec)
        out_shape = (jax.ShapeDtypeStruct((B, N2P), jnp.float32), logits_shape)
    else:
        out_specs = logits_spec
        out_shape = logits_shape

    return pl.pallas_call(
        _make_mlp_kernel(kd),
        out_shape=out_shape,
        grid_spec=pltpu.PrefetchScalarGridSpec(
            num_scalar_prefetch=0,
            grid=(nblk,),
            in_specs=in_specs,
            out_specs=out_specs,
            scratch_shapes=[pltpu.VMEM((B, N1P), jnp.bfloat16)],  # fc1 activations
        ),
        compiler_params=pltpu.CompilerParams(
            dimension_semantics=("arbitrary",),
            vmem_limit_bytes=32 * 1024 * 1024,
        ),
    )(xf, w1, b1, w2, b2, w3, b3)


# ------------------------------------------------------------------ params --
def init_mlp_params(key, input_dim, num_classes):
    """f32 params mimicking torch.nn.Linear default init, stored transposed (in, out)."""
    dims = [(input_dim, HIDDEN1), (HIDDEN1, HIDDEN2), (HIDDEN2, num_classes)]
    params = {}
    for idx, (fan_in, fan_out) in enumerate(dims, start=1):
        key, kw, kb = jax.random.split(key, 3)
        bound = 1.0 / jnp.sqrt(fan_in)
        params[f"w{idx}t"] = jax.random.uniform(
            kw, (fan_in, fan_out), jnp.float32, -bound, bound)
        params[f"b{idx}"] = jax.random.uniform(
            kb, (fan_out,), jnp.float32, -bound, bound)
    return params


def pack_mlp_params(params):
    """One-time pad to 128-multiples and cast weights to bf16 (zero pads are inert)."""
    packed = {}
    for idx in (1, 2, 3):
        w = params[f"w{idx}t"]
        b = params[f"b{idx}"]
        kin, nout = w.shape
        kp = _round_up(kin, 128)
        npad = _round_up(nout, 128)
        wp = jnp.zeros((kp, npad), jnp.bfloat16).at[:kin, :nout].set(
            w.astype(jnp.bfloat16))
        bp = jnp.zeros((1, npad), jnp.float32).at[0, :nout].set(b)
        packed[f"w{idx}"] = wp
        packed[f"b{idx}"] = bp
    return packed


# ----------------------------------------------------------------- forward --
@functools.partial(jax.jit, static_argnames=("num_classes", "kd"))
def mlp_forward(x, packed, num_classes, kd=False):
    B = x.shape[0]
    xf = x.reshape(B, -1).astype(jnp.float32)        # torch x.view(B, -1)
    k = xf.shape[1]
    kp = packed["w1"].shape[0]
    if k != kp:                                      # only if input_dim not 128-aligned
        xf = jnp.pad(xf, ((0, 0), (0, kp - k)))

    outs = _mlp_pallas(xf,
                       packed["w1"], packed["b1"],
                       packed["w2"], packed["b2"],
                       packed["w3"], packed["b3"], kd=kd)
    if kd:
        h, logits = outs
        return h[:, :HIDDEN2], logits[:, :num_classes]
    return outs[:, :num_classes]


# -------------------------------------------------------------- references --
def mlp_reference_f32(x, params):
    B = x.shape[0]
    xf = x.reshape(B, -1).astype(jnp.float32)
    h = jnp.maximum(
        jnp.dot(xf, params["w1t"], precision="highest") + params["b1"], 0.0)
    h = jnp.maximum(
        jnp.dot(h, params["w2t"], precision="highest") + params["b2"], 0.0)
    return jnp.dot(h, params["w3t"], precision="highest") + params["b3"]


def mlp_reference_bf16(x, params):
    """Mirrors the kernel's quantization: bf16 operands, f32 accumulation."""
    def q(v):
        return v.astype(jnp.bfloat16).astype(jnp.float32)
    B = x.shape[0]
    xf = q(x.reshape(B, -1))
    h1 = jnp.maximum(
        jnp.dot(xf, q(params["w1t"]), precision="highest") + params["b1"], 0.0)
    h2 = jnp.maximum(
        jnp.dot(q(h1), q(params["w2t"]), precision="highest") + params["b2"], 0.0)
    logits = jnp.dot(q(h2), q(params["w3t"]), precision="highest") + params["b3"]
    return h2, logits


# -------------------------------------------------------------------- main --
if __name__ == "__main__":
    key = jax.random.PRNGKey(0)
    k_param, k_x = jax.random.split(key)

    # NCHW input: batch=2, channels=4, spatial=16x16 -> input_dim=1024
    B, C, H, W = 2, 4, 16, 16
    input_dim = C * H * W
    num_classes = 10

    params_f32 = init_mlp_params(k_param, input_dim, num_classes)
    packed = pack_mlp_params(params_f32)          # one-time pad + bf16 cast
    x = jax.random.normal(k_x, (B, C, H, W), jnp.float32)

    logits = mlp_forward(x, packed, num_classes=num_classes)
    jax.block_until_ready(logits)
    assert logits.shape == (B, num_classes)

    # KD mode mirrors the torch module: returns (post-ReLU fc2 activations, logits).
    h_kd, logits_kd = mlp_forward(x, packed, num_classes=num_classes, kd=True)
    jax.block_until_ready((h_kd, logits_kd))
    assert h_kd.shape == (B, HIDDEN2) and logits_kd.shape == (B, num_classes)

    # Exact-quantization reference (same bf16 weights/activations, f32 accum).
    h_ref, logits_ref_q = mlp_reference_bf16(x, params_f32)
    assert jnp.allclose(logits, logits_ref_q, atol=2e-3, rtol=2e-3), \
        "logits mismatch vs bf16-matched reference"
    assert jnp.allclose(logits_kd, logits_ref_q, atol=2e-3, rtol=2e-3), \
        "KD logits mismatch vs bf16-matched reference"
    assert jnp.allclose(h_kd, h_ref, atol=2e-3, rtol=2e-3), \
        "KD hidden mismatch vs bf16-matched reference"

    # Sanity check vs. the full-f32 PyTorch-equivalent reference (bf16 weight
    # quantization introduces ~1e-2-level absolute differences at most here).
    logits_ref_f32 = mlp_reference_f32(x, params_f32)
    assert jnp.allclose(logits, logits_ref_f32, atol=5e-2, rtol=5e-2), \
        "mismatch vs f32 reference"

    print("KERNEL_OK")
</pallas_src>

<mosaic_0001>
module attributes {stable_mosaic.version = 11 : i64} {
  func.func @kernel(%arg0: i32, %arg1: memref<2x1024xf32, #tpu.memory_space<vmem>>, %arg2: memref<1024x1024xbf16, #tpu.memory_space<vmem>>, %arg3: memref<1x1024xf32, #tpu.memory_space<vmem>>, %arg4: memref<1024x512xbf16, #tpu.memory_space<vmem>>, %arg5: memref<1x512xf32, #tpu.memory_space<vmem>>, %arg6: memref<512x128xbf16, #tpu.memory_space<vmem>>, %arg7: memref<1x128xf32, #tpu.memory_space<vmem>>, %arg8: memref<2x128xf32, #tpu.memory_space<vmem>>, %arg9: memref<2x1024xbf16, #tpu.memory_space<vmem>>) attributes {dimension_semantics = [#tpu.dimension_semantics<arbitrary>], iteration_bounds = array<i64: 4>, scalar_prefetch = 0 : i64, scratch_operands = 1 : i64, tpu.core_type = #tpu.core_type<tc>, window_params = [{pipeline_mode = #tpu.pipeline_mode<synchronous>, transform_indices = @transform_0, window_bounds = array<i64: 2, 1024>}, {pipeline_mode = #tpu.pipeline_mode<synchronous>, transform_indices = @transform_1, window_bounds = array<i64: 1024, 1024>}, {pipeline_mode = #tpu.pipeline_mode<synchronous>, transform_indices = @transform_2, window_bounds = array<i64: 1, 1024>}, {transform_indices = @transform_3, window_bounds = array<i64: 1024, 512>}, {transform_indices = @transform_4, window_bounds = array<i64: 1, 512>}, {transform_indices = @transform_5, window_bounds = array<i64: 512, 128>}, {pipeline_mode = #tpu.pipeline_mode<synchronous>, transform_indices = @transform_6, window_bounds = array<i64: 1, 128>}, {pipeline_mode = #tpu.pipeline_mode<synchronous>, transform_indices = @transform_7, window_bounds = array<i64: 2, 128>}]} {
    %c0_i32 = arith.constant 0 : i32
    %0 = arith.cmpi eq, %arg0, %c0_i32 : i32
    %1 = arith.extui %0 : i1 to i32
    %c0_i32_0 = arith.constant 0 : i32
    %2 = arith.cmpi ne, %1, %c0_i32_0 : i32
    scf.if %2 {
      %c0_14 = arith.constant 0 : index
      %c0_15 = arith.constant 0 : index
      %17 = vector.load %arg1[%c0_14, %c0_15] : memref<2x1024xf32, #tpu.memory_space<vmem>>, vector<2x1024xf32>
      %18 = arith.truncf %17 : vector<2x1024xf32> to vector<2x1024xbf16>
      %c0_16 = arith.constant 0 : index
      %c0_17 = arith.constant 0 : index
      %19 = vector.load %arg2[%c0_16, %c0_17] : memref<1024x1024xbf16, #tpu.memory_space<vmem>>, vector<1024x1024xbf16>
      %cst_18 = arith.constant dense<0.000000e+00> : vector<2x1024xf32>
      %20 = tpu.matmul %18, %19, %cst_18 {dimension_numbers = #tpu.dot_dimension_numbers<[1], [0], [0], [1], [0, 0, 1, 1], [], []>} : vector<2x1024xbf16>, vector<1024x1024xbf16>, vector<2x1024xf32> -> vector<2x1024xf32>
      %c0_19 = arith.constant 0 : index
      %c0_20 = arith.constant 0 : index
      %21 = vector.load %arg3[%c0_19, %c0_20] : memref<1x1024xf32, #tpu.memory_space<vmem>>, vector<1x1024xf32>
      %22 = vector.broadcast %21 : vector<1x1024xf32> to vector<2x1024xf32>
      %23 = arith.addf %20, %22 : vector<2x1024xf32>
      %cst_21 = arith.constant 0.000000e+00 : f32
      %24 = vector.broadcast %cst_21 : f32 to vector<2x1024xf32>
      %25 = arith.maximumf %23, %24 : vector<2x1024xf32>
      %26 = arith.truncf %25 : vector<2x1024xf32> to vector<2x1024xbf16>
      %c0_22 = arith.constant 0 : index
      %c0_23 = arith.constant 0 : index
      %27 = vector.load %arg9[%c0_22, %c0_23] : memref<2x1024xbf16, #tpu.memory_space<vmem>>, vector<2x1024xbf16>
      tpu.vector_store %arg9[%c0_22, %c0_23], %26 {strides = array<i32>} : memref<2x1024xbf16, #tpu.memory_space<vmem>>, vector<2x1024xbf16>,
      %c0_24 = arith.constant 0 : index
      %c0_25 = arith.constant 0 : index
      %28 = vector.load %arg7[%c0_24, %c0_25] : memref<1x128xf32, #tpu.memory_space<vmem>>, vector<1x128xf32>
      %29 = vector.shape_cast %28 : vector<1x128xf32> to vector<1x128xf32>
      %30 = vector.broadcast %29 : vector<1x128xf32> to vector<2x128xf32>
      %c0_26 = arith.constant 0 : index
      %c0_27 = arith.constant 0 : index
      %31 = vector.load %arg8[%c0_26, %c0_27] : memref<2x128xf32, #tpu.memory_space<vmem>>, vector<2x128xf32>
      tpu.vector_store %arg8[%c0_26, %c0_27], %30 {strides = array<i32>} : memref<2x128xf32, #tpu.memory_space<vmem>>, vector<2x128xf32>,
    } else {
    }
    %c0 = arith.constant 0 : index
    %c0_1 = arith.constant 0 : index
    %3 = vector.load %arg9[%c0, %c0_1] : memref<2x1024xbf16, #tpu.memory_space<vmem>>, vector<2x1024xbf16>
    %c0_2 = arith.constant 0 : index
    %c0_3 = arith.constant 0 : index
    %4 = vector.load %arg4[%c0_2, %c0_3] : memref<1024x512xbf16, #tpu.memory_space<vmem>>, vector<1024x512xbf16>
    %cst = arith.constant dense<0.000000e+00> : vector<2x512xf32>
    %5 = tpu.matmul %3, %4, %cst {dimension_numbers = #tpu.dot_dimension_numbers<[1], [0], [0], [1], [0, 0, 1, 1], [], []>} : vector<2x1024xbf16>, vector<1024x512xbf16>, vector<2x512xf32> -> vector<2x512xf32>
    %c0_4 = arith.constant 0 : index
    %c0_5 = arith.constant 0 : index
    %6 = vector.load %arg5[%c0_4, %c0_5] : memref<1x512xf32, #tpu.memory_space<vmem>>, vector<1x512xf32>
    %7 = vector.broadcast %6 : vector<1x512xf32> to vector<2x512xf32>
    %8 = arith.addf %5, %7 : vector<2x512xf32>
    %cst_6 = arith.constant 0.000000e+00 : f32
    %9 = vector.broadcast %cst_6 : f32 to vector<2x512xf32>
    %10 = arith.maximumf %8, %9 : vector<2x512xf32>
    %c0_7 = arith.constant 0 : index
    %c0_8 = arith.constant 0 : index
    %11 = vector.load %arg8[%c0_7, %c0_8] : memref<2x128xf32, #tpu.memory_space<vmem>>, vector<2x128xf32>
    %12 = arith.truncf %10 : vector<2x512xf32> to vector<2x512xbf16>
    %c0_9 = arith.constant 0 : index
    %c0_10 = arith.constant 0 : index
    %13 = vector.load %arg6[%c0_9, %c0_10] : memref<512x128xbf16, #tpu.memory_space<vmem>>, vector<512x128xbf16>
    %cst_11 = arith.constant dense<0.000000e+00> : vector<2x128xf32>
    %14 = tpu.matmul %12, %13, %cst_11 {dimension_numbers = #tpu.dot_dimension_numbers<[1], [0], [0], [1], [0, 0, 1, 1], [], []>} : vector<2x512xbf16>, vector<512x128xbf16>, vector<2x128xf32> -> vector<2x128xf32>
    %15 = arith.addf %11, %14 : vector<2x128xf32>
    %c0_12 = arith.constant 0 : index
    %c0_13 = arith.constant 0 : index
    %16 = vector.load %arg8[%c0_12, %c0_13] : memref<2x128xf32, #tpu.memory_space<vmem>>, vector<2x128xf32>
    tpu.vector_store %arg8[%c0_12, %c0_13], %15 {strides = array<i32>} : memref<2x128xf32, #tpu.memory_space<vmem>>, vector<2x128xf32>,
    return
  }
  func.func @transform_0(%arg0: i32) -> (i32, i32) {
    %c0_i32 = arith.constant 0 : i32
    %c0_i32_0 = arith.constant 0 : i32
    %c0_i32_1 = arith.constant 0 : i32
    return %c0_i32, %c0_i32_0 : i32, i32
  }
  func.func @transform_1(%arg0: i32) -> (i32, i32) {
    %c0_i32 = arith.constant 0 : i32
    %c0_i32_0 = arith.constant 0 : i32
    %c0_i32_1 = arith.constant 0 : i32
    return %c0_i32, %c0_i32_0 : i32, i32
  }
  func.func @transform_2(%arg0: i32) -> (i32, i32) {
    %c0_i32 = arith.constant 0 : i32
    %c0_i32_0 = arith.constant 0 : i32
    %c0_i32_1 = arith.constant 0 : i32
    return %c0_i32, %c0_i32_0 : i32, i32
  }
  func.func @transform_3(%arg0: i32) -> (i32, i32) {
    %c0_i32 = arith.constant 0 : i32
    %c0_i32_0 = arith.constant 0 : i32
    return %c0_i32, %arg0 : i32, i32
  }
  func.func @transform_4(%arg0: i32) -> (i32, i32) {
    %c0_i32 = arith.constant 0 : i32
    %c0_i32_0 = arith.constant 0 : i32
    return %c0_i32, %arg0 : i32, i32
  }
  func.func @transform_5(%arg0: i32) -> (i32, i32) {
    %c0_i32 = arith.constant 0 : i32
    %c0_i32_0 = arith.constant 0 : i32
    return %arg0, %c0_i32 : i32, i32
  }
  func.func @transform_6(%arg0: i32) -> (i32, i32) {
    %c0_i32 = arith.constant 0 : i32
    %c0_i32_0 = arith.constant 0 : i32
    %c0_i32_1 = arith.constant 0 : i32
    return %c0_i32, %c0_i32_0 : i32, i32
  }
  func.func @transform_7(%arg0: i32) -> (i32, i32) {
    %c0_i32 = arith.constant 0 : i32
    %c0_i32_0 = arith.constant 0 : i32
    %c0_i32_1 = arith.constant 0 : i32
    return %c0_i32, %c0_i32_0 : i32, i32
  }
}

</mosaic_0001>

<bundles_post_ra>
// kernel: mlp_forward.1
= control target key start
LH: loop header
LB: loop body
LE: loop exit
PB: predicated region body
PF: predicated region fallthrough
CT: control target
= control target key end

     0   :  { %s9126_s0 = inlined_call_operand.vmem [shape: f32[2,1024], index: 0, kind: input, shape index: {}]   ;;  %s9127_s1 = inlined_call_operand.hbm [shape: bf16[1024,1024], index: 1, kind: input, shape index: {}]   ;;  %s9128_s2 = inlined_call_operand.hbm [shape: f32[1,1024], index: 2, kind: input, shape index: {}]   ;;  %s9129_s3 = inlined_call_operand.hbm [shape: bf16[1024,2048], index: 3, kind: input, shape index: {}]   ;;  %s9130_s4 = inlined_call_operand.hbm [shape: f32[1,2048], index: 4, kind: input, shape index: {}]   ;;  %s9131_s5 = inlined_call_operand.hbm [shape: bf16[2048,128], index: 5, kind: input, shape index: {}]   ;;  %s9132_s6 = inlined_call_operand.hbm [shape: f32[1,128], index: 6, kind: input, shape index: {}]   ;;  %s9133_s7 = inlined_call_operand.hbm [shape: f32[2,128], index: 7, kind: output, shape index: {}]  }
   0x1   :  { %9144 = sst [smem:[#allocation21_spill]] %s9127_s1 }
   0x2   :  { %12 = vsyncpa [#allocation4], 0 }
   0x3   :  { %13 = vsyncpa [#allocation7], 0 }
   0x4   :  { %14 = vsyncpa [#allocation5], 0  ;;  %s8417_s24 = smov 0   ;;  %s8419_s25 = smov 0  }
   0x5   :  { %s8421_s26 = smov 0   ;;  %s8423_s27 = smov 0  }
   0x6 LB: > { %9145 = sst [smem:[#allocation18_spill]] %s8354_s26  ;;  %s8436_s28 = sadd.s32 4294967295, %s8358_s27   ;;  %s8358_s27 = sphi %s8423_s27, %s9168_s27   ;;  %s8354_s26 = sphi %s8421_s26, %s9170_s26   ;;  %s8350_s25 = sphi %s8419_s25, %s9172_s25   ;;  %s8346_s24 = sphi %s8417_s24, %s9171_s24  }
   0x7   : > { %s8439_s29 = sadd.s32 1, %s8358_s27   ;;  %s90_s8 = sadd.s32 1, %s8354_s26 }
   0x8   : > { %9146 = sst [smem:[#allocation19_spill]] %s8439_s29  ;;  %s87_s30 = ssub.s32 %s8358_s27, %s8439_s29 }
   0x9   : > { %p88_p0 = scmp.eq.s32.totalorder %s87_s30, 0  ;;  %p97_p1 = scmp.ne.s32.totalorder %s8354_s26, %s8350_s25 }
   0xa   : > { %p98_p2 = scmp.eq.s32.totalorder %s8358_s27, 0  ;;  %p103_p3 = scmp.ne.s32.totalorder %s8350_s25, %s8346_s24 }
   0xb   : > { %s8449_s9 = scalar_select %p88_p0, %s8354_s26, %s90_s8  }
   0xc   : > { %p8451_p4 = por %p98_p2, %p97_p1  ;;  %p9134_p5 = scmp.eq.s32.totalorder %s8436_s28, 0 }
   0xd   : > { %9147 = sst [smem:[#allocation20_spill]] %s8449_s9  ;;  %p6727_p6 = scmp.ge.s32.totalorder %s8358_s27, 1 }
   0xe   : > { %p208_p7 = scmp.lt.s32.totalorder %s8358_s27, 5  ;;  %p8460_p8 = por %p9134_p5, %p103_p3 }
   0xf   : > { %s8360_s13 = smov [#allocation3]   ;;  %p7650_p13 = scmp.lt.s32.totalorder %s8358_s27, 4 }
  0x10   : > { %s9149_s11 = scalar_select %p8460_p8, 1, 0 }
  0x11   : > { %p8465_p10 = pnand %p6727_p6, %p208_p7  ;;  %s223_s14 = sshll.u32 %s8360_s13, 4  ;;  %s224_s14 = int_to_ptr.vmem [resolvable:$true] %s223_s14 }
  0x12   : > { %s259_s16 = sand.u32 1, %s8358_s27   ;;  %s8480_s17 = sand.u32 1, %s8354_s26  }
  0x13   : > { %s9150_s12 = scalar_select %p8465_p10, 1, 0 }
  0x14   : > { %p7627_p11 = pneg %p8465_p10  ;;  %p8484_p0 = pnand %p7650_p13, %p8451_p4 }
  0x15   : > { %s8133_s19 = scalar_lea.vmem %s224_s14, 65536  ;;  %p8141_p7 = scmp.lt.s32.totalorder %s224_s14, %s224_s14 }
  0x16   : > { %p8473_p12 = pnand %p7627_p11, %p9134_p5  ;;  %p8134_p2 = scmp.ne.s32.totalorder %s224_s14, %s8133_s19 }
  0x17   : > { %p8142_p11 = scmp.lt.s32.totalorder %s8133_s19, %s8133_s19 }
  0x18   : > { %s9151_s15 = scalar_select %p8473_p12, 1, 0 }
  0x19   : > { %p9138_p1 = pneg %p8473_p12  ;;  %p8143_p9 = por %p8142_p11, %p8141_p7 }
  0x1b   : > { %p8136_p3 = pnand %p8134_p2, %p9138_p1 }
  0x1d   : > { %p8137_p6 = pneg %p8136_p3 }
  0x1f   : > { %p8144_p5 = pnand %p8143_p9, %p8137_p6 }
  0x21   : > { %8147 = shalt.err (!%p8144_p5)
}
  0x22   : > { %s8361_s20 = smov 512   ;;  %s8362_s21 = smov 32  }
  0x23   : > { %s9153_s1 = sld [smem:[#allocation21_spill]]  ;;  %s6732_s24 = sshll.u32 %s8480_s17, 11 }
  0x24   : > { %s7558_s30 = sshll.u32 %s8358_s27, 8  ;;  %s263_s19 = scalar_lea.vmem [#allocation8], %s6732_s24 }
  0x25   : > { %s8503_s13 = scalar_lea.hbm %s9129_s3, %s7558_s30  ;;  %s270_s9 = sshll.u32 %s263_s19, 4  ;;  %s8505_s9 = int_to_ptr.vmem [resolvable:$true] %s270_s9 }
  0x26   : > { %s8507_s26 = scalar_lea.sflag [#allocation4], %s259_s16  ;;  %s8148_s29 = scalar_lea.hbm %s8503_s13, 32768 }
  0x27   : > { %p8149_p4 = scmp.ne.s32.totalorder %s8503_s13, %s8148_s29  ;;  %p8513_p5 = pneg %p8484_p0 }
  0x28   : > { %s8153_s22 = scalar_lea.hbm %s9129_s3, 131072  ;;  %p8154_p2 = scmp.lt.s32.totalorder %s8503_s13, %s9129_s3 }
  0x29   : > { %7630 = dma.hbm_to_vmem [thread:$0]  (!%p8473_p12), %s9153_s1, 65536, %s224_s14, [#allocation4], %s8361_s20, %s8361_s20, %s8362_s21  }
  0x2a   : > { %p8151_p9 = pnand %p8513_p5, %p8149_p4  ;;  %p8155_p3 = scmp.lt.s32.totalorder %s8153_s22, %s8148_s29 }
  0x2c   : > { %p8152_p13 = pneg %p8151_p9  ;;  %p8156_p6 = por %p8155_p3, %p8154_p2 }
  0x2e   : > { %p8157_p7 = pnand %p8156_p6, %p8152_p13 }
  0x30   : > { %8160 = shalt.err (!%p8157_p7)
}
  0x31   : > { %s8161_s16 = scalar_lea.vmem %s8505_s9, 32768  ;;  %s8363_s30 = smov [#allocation8]  }
  0x32   : > { %p8162_p11 = scmp.ne.s32.totalorder %s8505_s9, %s8161_s16  ;;  %s8166_s8 = sshll.u32 %s8363_s30, 4  ;;  %s8167_s8 = int_to_ptr.vmem [resolvable:$false] %s8166_s8 }
  0x33   : > { %s8168_s10 = scalar_lea.vmem %s8167_s8, 65536  ;;  %p8169_p1 = scmp.lt.s32.totalorder %s8505_s9, %s8167_s8 }
  0x34   : > { %p8164_p4 = pnand %p8162_p11, %p8513_p5  ;;  %p8170_p8 = scmp.lt.s32.totalorder %s8168_s10, %s8161_s16 }
  0x36   : > { %p8165_p9 = pneg %p8164_p4  ;;  %p8171_p10 = por %p8170_p8, %p8169_p1 }
  0x38   : > { %p8172_p12 = pnand %p8171_p10, %p8165_p9 }
  0x3a   : > { %8175 = shalt.err (!%p8172_p12)
}
  0x3b   : > { %s8364_s29 = smov 1024   ;;  %s8365_s19 = smov 256  }
  0x3c   : > { %s8366_s20 = smov 16   ;;  %s8367_s21 = smov [#allocation6]  }
  0x3d   : > { %7640 = dma.hbm_to_vmem [thread:$0]  (!%p8484_p0), %s8503_s13, 32768, %s8505_s9, %s8507_s26, %s8364_s29, %s8365_s19, %s8366_s20  }
  0x3e   : > { %s237_s22 = sshll.u32 %s8367_s21, 4  ;;  %s6735_s23 = sshll.u32 %s8480_s17, 2  ;;  %s238_s22 = int_to_ptr.vmem [resolvable:$true] %s237_s22 }
  0x3f   : > { %s8187_s24 = scalar_lea.vmem %s238_s22, 128  ;;  %p9155_p8 = scmp.ne.s32.totalorder %s9151_s15, 0 }
  0x40   : > { %p8188_p13 = scmp.ne.s32.totalorder %s238_s22, %s8187_s24  ;;  %p8195_p2 = scmp.lt.s32.totalorder %s238_s22, %s238_s22 }
  0x41   : > { %p9156_p10 = pneg %p9155_p8  ;;  %p8196_p3 = scmp.lt.s32.totalorder %s8187_s24, %s8187_s24 }
  0x43   : > { %p8190_p12 = pnand %p8188_p13, %p9156_p10  ;;  %p8197_p6 = por %p8196_p3, %p8195_p2 }
  0x45   : > { %p8191_p1 = pneg %p8190_p12 }
  0x47   : > { %p8198_p7 = pnand %p8197_p6, %p8191_p1 }
  0x49   : > { %8201 = shalt.err (!%p8198_p7)
}
  0x4a   : > { %7633 = dma.hbm_to_vmem [thread:$0]  (!%p9155_p8), %s9128_s2, 128, %s238_s22, [#allocation7]  }
  0x4b   : > { %s7559_s9 = sshll.u32 %s8358_s27, 6  ;;  %s284_s13 = scalar_lea.vmem [#allocation9], %s6735_s23 }
  0x4c   : > { %s292_s8 = sshll.u32 %s284_s13, 4  ;;  %s290_s19 = scalar_lea.hbm %s9130_s4, %s7559_s9  ;;  %s293_s8 = int_to_ptr.vmem [resolvable:$true] %s292_s8 }
  0x4d   : > { %s8202_s20 = scalar_lea.hbm %s290_s19, 64  ;;  %s8207_s16 = scalar_lea.hbm %s9130_s4, 256 }
  0x4e   : > { %p8203_p11 = scmp.ne.s32.totalorder %s290_s19, %s8202_s20  ;;  %p8208_p13 = scmp.lt.s32.totalorder %s290_s19, %s9130_s4 }
  0x4f   : > { %p8209_p10 = scmp.lt.s32.totalorder %s8207_s16, %s8202_s20 }
  0x50   : > { %p8205_p4 = pnand %p8203_p11, %p8513_p5 }
  0x51   : > { %p8210_p12 = por %p8209_p10, %p8208_p13 }
  0x52   : > { %p8206_p9 = pneg %p8205_p4 }
  0x54   : > { %p8211_p1 = pnand %p8210_p12, %p8206_p9 }
  0x56   : > { %8214 = shalt.err (!%p8211_p1)
}
  0x57   : > { %s8215_s22 = scalar_lea.vmem %s293_s8, 64  ;;  %s8368_s23 = smov [#allocation9]  }
  0x58   : > { %p8216_p2 = scmp.ne.s32.totalorder %s293_s8, %s8215_s22  ;;  %s8220_s9 = sshll.u32 %s8368_s23, 4  ;;  %s8221_s9 = int_to_ptr.vmem [resolvable:$false] %s8220_s9 }
  0x59   : > { %s8222_s13 = scalar_lea.vmem %s8221_s9, 128  ;;  %p8223_p7 = scmp.lt.s32.totalorder %s293_s8, %s8221_s9 }
  0x5a   : > { %p8218_p3 = pnand %p8216_p2, %p8513_p5  ;;  %p8224_p11 = scmp.lt.s32.totalorder %s8222_s13, %s8215_s22 }
  0x5c   : > { %p8219_p6 = pneg %p8218_p3  ;;  %p8225_p4 = por %p8224_p11, %p8223_p7 }
  0x5e   : > { %p8226_p8 = pnand %p8225_p4, %p8219_p6 }
  0x60   : > { %8229 = shalt.err (!%p8226_p8)
}
  0x61   : > { %7643 = dma.hbm_to_vmem [thread:$0]  (!%p8484_p0), %s290_s19, 64, %s293_s8, %s8507_s26  }
  0x62   : > { %s6738_s1 = sshll.u32 %s8480_s17, 8  ;;  %s8369_s10 = smov [#allocation11]  }
  0x63   : > { %s248_s29 = sshll.u32 %s8369_s10, 4  ;;  %s7560_s20 = sshll.u32 %s8358_s27, 12  ;;  %s249_s29 = int_to_ptr.vmem [resolvable:$true] %s248_s29 }
  0x64   : > { %s8241_s21 = scalar_lea.vmem %s249_s29, 16  ;;  %p9157_p13 = scmp.ne.s32.totalorder %s9151_s15, 0 }
  0x65   : > { %p8242_p9 = scmp.ne.s32.totalorder %s249_s29, %s8241_s21  ;;  %s8248_s24 = scalar_lea.vmem %s249_s29, 32 }
  0x66   : > { %p9158_p10 = pneg %p9157_p13  ;;  %p8249_p8 = scmp.lt.s32.totalorder %s249_s29, %s249_s29 }
  0x67   : > { %p8250_p2 = scmp.lt.s32.totalorder %s8248_s24, %s8241_s21 }
  0x68   : > { %p8244_p12 = pnand %p8242_p9, %p9158_p10 }
  0x69   : > { %p8251_p3 = por %p8250_p2, %p8249_p8 }
  0x6a   : > { %p8245_p1 = pneg %p8244_p12 }
  0x6c   : > { %p8252_p6 = pnand %p8251_p3, %p8245_p1 }
  0x6e   : > { %8255 = shalt.err (!%p8252_p6)
}
  0x6f   : > { %7636 = dma.hbm_to_vmem [thread:$0]  (!%p9157_p13), %s9132_s6, 16, %s249_s29, [#allocation7]  }
  0x70   : > { %s8575_s16 = scalar_lea.hbm %s9131_s5, %s7560_s20  ;;  %s303_s30 = scalar_lea.vmem [#allocation10], %s6738_s1 }
  0x71   : > { %s310_s22 = sshll.u32 %s303_s30, 4  ;;  %s8256_s23 = scalar_lea.hbm %s8575_s16, 4096  ;;  %s8577_s22 = int_to_ptr.vmem [resolvable:$true] %s310_s22 }
  0x72   : > { %p8257_p7 = scmp.ne.s32.totalorder %s8575_s16, %s8256_s23  ;;  %s8261_s13 = scalar_lea.hbm %s9131_s5, 16384 }
  0x73   : > { %p8262_p9 = scmp.lt.s32.totalorder %s8575_s16, %s9131_s5  ;;  %p8263_p13 = scmp.lt.s32.totalorder %s8261_s13, %s8256_s23 }
  0x74   : > { %p8259_p11 = pnand %p8257_p7, %p8513_p5 }
  0x75   : > { %p8264_p10 = por %p8263_p13, %p8262_p9 }
  0x76   : > { %p8260_p4 = pneg %p8259_p11 }
  0x78   : > { %p8265_p12 = pnand %p8264_p10, %p8260_p4 }
  0x7a   : > { %8268 = shalt.err (!%p8265_p12)
}
  0x7b   : > { %s8269_s1 = scalar_lea.vmem %s8577_s22, 4096  ;;  %s8370_s20 = smov [#allocation10]  }
  0x7c   : > { %p8270_p1 = scmp.ne.s32.totalorder %s8577_s22, %s8269_s1  ;;  %s8274_s21 = sshll.u32 %s8370_s20, 4  ;;  %s8275_s21 = int_to_ptr.vmem [resolvable:$false] %s8274_s21 }
  0x7d   : > { %s8276_s24 = scalar_lea.vmem %s8275_s21, 8192  ;;  %p8277_p3 = scmp.lt.s32.totalorder %s8577_s22, %s8275_s21 }
  0x7e   : > { %p8272_p8 = pnand %p8270_p1, %p8513_p5  ;;  %p8278_p6 = scmp.lt.s32.totalorder %s8276_s24, %s8269_s1 }
  0x80   : > { %p8273_p2 = pneg %p8272_p8  ;;  %p8279_p7 = por %p8278_p6, %p8277_p3 }
  0x82   : > { %p8280_p11 = pnand %p8279_p7, %p8273_p2 }
  0x84   : > { %8283 = shalt.err (!%p8280_p11)
}
  0x85   : > { %s8371_s8 = smov 64   ;;  %s8372_s17 = smov 4  }
  0x86   : > { %7646 = dma.hbm_to_vmem [thread:$0]  (!%p8484_p0), %s8575_s16, 4096, %s8577_s22, %s8507_s26, %s8371_s8, %s8371_s8, %s8372_s17  }
  0x87   : > { %p9159_p5 = scmp.ne.s32.totalorder %s9150_s12, 0 }
  0x88   : > { %p9160_p4 = scmp.eq.s32.totalorder (!%p9159_p5), %s8436_s28, 0 }
  0x89   : > { %322 = sbr.rel (%p9159_p5) target bundleno = 1559 (0x617), region = 48 }
  0x8e   : > { %8325 = dma.done.wait (%p9160_p4), [#allocation4], 65536   ;;  %p9161_p9 = pmov %p9160_p4 }
  0x8f   : > { %p9162_p13 = pmov %p9160_p4 }
  0x90   : > { %8327 = vsyncadd (%p9161_p9), [#allocation4], 4294901760 }
  0x91   : > { %8329 = dma.done.wait (%p9162_p13), [#allocation7], 128   ;;  %p9163_p10 = pmov %p9160_p4 }
  0x92   : > { %s332_s18 = sand.u32 1, %s8436_s28   ;;  %s334_s26 = sand.u32 1, %s8350_s25  }
  0x93   : > { %8331 = vsyncadd (%p9163_p10), [#allocation7], 4294967168  ;;  %s6744_s14 = sshll.u32 %s334_s26, 11  ;;  %s333_s12 = scalar_lea.sflag [#allocation4], %s332_s18 }
  0x94   : > { %s8612_s27 = scalar_lea.vmem [#allocation8], %s6744_s14  ;;  %p9164_p0 = scmp.ne.s32.totalorder %s9149_s11, 0 }
  0x96   : > { %8333 = dma.done.wait (%p9164_p0), %s333_s12, 36928  }
  0x97   : > { %8335 = vsyncadd (%p9164_p0), %s333_s12, 4294930368  ;;  %s6745_s19 = sshll.u32 %s334_s26, 2  ;;  %s6746_s16 = sshll.u32 %s334_s26, 8 }
  0x98   : > { %s8618_s30 = scalar_lea.vmem [#allocation9], %s6745_s19  ;;  %s8620_s22 = scalar_lea.vmem [#allocation10], %s6746_s16 }
  0x99   : > { %p9165_p12 = pmov %p9160_p4 }
  0x9a   : > { %p9166_p1 = pmov %p9160_p4 }
  0x9b   : > { %8337 = dma.done.wait (%p9165_p12), [#allocation7], 16  }
  0x9c   : > { %8339 = vsyncadd (%p9166_p1), [#allocation7], 4294967280  ;;  %p9167_p8 = scmp.ne.s32.totalorder %s8436_s28, 0 }
  0x9e   : > { %401 = sbr.rel (%p9167_p8) target bundleno = 892 (0x37c), region = 76 }
  0xa3   : > { %v512_v0 = vld [vmem:[#allocation3 + $0x1c0] sm:$0xff]  ;;  %v8373_v32 = vmov 1983009808   ;;  %v410_v34 = vlaneseq  ;;  %v402_v59 = vld [vmem:[%s9126_s0] sm:$0xff] }
  0xa4   : > { %v516_v1 = vld [vmem:[#allocation3 + $0x1e0] sm:$0xff]  ;;  %v408_v33 = vunpack.c.l.s4 %v8373_v32 }
  0xa5   : > { %v640_v2 = vld [vmem:[#allocation3 + $0x5c0] sm:$0xff]  ;;  %v6806_v3 = vcombine.high %v512_v0, %v516_v1  ;;  %v6805_v5 = vcombine.low %v512_v0, %v516_v1  ;;  %v8628_v44 = vshrl.u32 %v410_v34, 7  ;;  %v406_v0 = vcombine.high %v402_v59, %v402_v59 }
  0xa6   : > { %v644_v4 = vld [vmem:[#allocation3 + $0x5e0] sm:$0xff]  ;;  %v409_v43 = vunpack.c.0.s8 %v408_v33 }
  0xa7   : > { %v504_v6 = vld [vmem:[#allocation3 + $0x180] sm:$0xff]  ;;  %v6934_v8 = vcombine.high %v640_v2, %v644_v4  ;;  %v6933_v9 = vcombine.low %v640_v2, %v644_v4  ;;  %3570 = vmatprep.subr.bf16.mxu0 %v6806_v3 }
  0xa8   : > { %v508_v7 = vld [vmem:[#allocation3 + $0x1a0] sm:$0xff]  ;;  %3571 = vmatpush1.bf16.msra.mxu0 %v6805_v5  ;;  %v8631_v53 = vsub.s32 %v409_v43, %v8628_v44 }
  0xa9   : > { %v6798_v10 = vcombine.high %v504_v6, %v508_v7  ;;  %v632_v11 = vld [vmem:[#allocation3 + $0x580] sm:$0xff]  ;;  %3611 = vmatprep.subr.bf16.mxu1 %v6934_v8  ;;  %v6797_v18 = vcombine.low %v504_v6, %v508_v7 }
  0xaa   : > { %v636_v12 = vld [vmem:[#allocation3 + $0x5a0] sm:$0xff]  ;;  %3612 = vmatpush1.bf16.msra.mxu1 %v6933_v9  ;;  %v8637_v63 = vrot.slane %v402_v59, %v8631_v53  ;;  %v8642_v5 = vrot.slane %v406_v0, %v8631_v53 }
  0xab   : > { %v496_v13 = vld [vmem:[#allocation3 + $0x140] sm:$0xff]  ;;  %v6926_v14 = vcombine.high %v632_v11, %v636_v12  ;;  %3572 = vmatprep.subr.bf16.mxu0 %v6798_v10  ;;  %v6925_v19 = vcombine.low %v632_v11, %v636_v12 }
  0xac   : > { %v500_v15 = vld [vmem:[#allocation3 + $0x160] sm:$0xff]  ;;  %3573 = vmatpush1.bf16.msra.mxu0 %v6797_v18  ;;  %v421_v4 = vcombine.high %v8637_v63, %v8637_v63  ;;  %v422_v12 = vcombine.high %v8642_v5, %v8642_v5 }
  0xad   : > { %v624_v16 = vld [vmem:[#allocation3 + $0x540] sm:$0xff]  ;;  %v6790_v20 = vcombine.high %v496_v13, %v500_v15  ;;  %3613 = vmatprep.subr.bf16.mxu1 %v6926_v14  ;;  %v6789_v26 = vcombine.low %v496_v13, %v500_v15 }
  0xae   : > { %v628_v17 = vld [vmem:[#allocation3 + $0x560] sm:$0xff]  ;;  %3614 = vmatpush1.bf16.msra.mxu1 %v6925_v19  ;;  %v8644_v11 = vpack.c.bf16 %v421_v4, %v421_v4 }
  0xaf   : > { %v6918_v21 = vcombine.high %v624_v16, %v628_v17  ;;  %v488_v22 = vld [vmem:[#allocation3 + $0x100] sm:$0xff]  ;;  %3574 = vmatprep.subr.bf16.mxu0 %v6790_v20  ;;  %v6917_v27 = vcombine.low %v624_v16, %v628_v17  ;;  %v8649_v16 = vpack.c.bf16 %v422_v12, %v422_v12 }
  0xb0   : > { %v492_v23 = vld [vmem:[#allocation3 + $0x120] sm:$0xff]  ;;  %3575 = vmatpush1.bf16.msra.mxu0 %v6789_v26  ;;  %3602 = vmatprep.mubr.bf16.mxu0 %v8644_v11 }
  0xb1   : > { %v616_v24 = vld [vmem:[#allocation3 + $0x500] sm:$0xff]  ;;  %v6782_v28 = vcombine.high %v488_v22, %v492_v23  ;;  %3615 = vmatprep.subr.bf16.mxu1 %v6918_v21  ;;  %v6781_v37 = vcombine.low %v488_v22, %v492_v23  ;;  %3643 = vmatprep.mubr.bf16.mxu1 %v8649_v16 }
  0xb2   : > { %v620_v25 = vld [vmem:[#allocation3 + $0x520] sm:$0xff]  ;;  %3616 = vmatpush1.bf16.msra.mxu1 %v6917_v27 }
  0xb3   : > { %v6910_v29 = vcombine.high %v616_v24, %v620_v25  ;;  %v480_v30 = vld [vmem:[#allocation3 + $0xc0] sm:$0xff]  ;;  %3576 = vmatprep.subr.bf16.mxu0 %v6782_v28  ;;  %v6909_v38 = vcombine.low %v616_v24, %v620_v25 }
  0xb4   : > { %v484_v31 = vld [vmem:[#allocation3 + $0xe0] sm:$0xff]  ;;  %3577 = vmatpush1.bf16.msra.mxu0 %v6781_v37 }
  0xb5   : > { %v608_v35 = vld [vmem:[#allocation3 + $0x4c0] sm:$0xff]  ;;  %v6774_v39 = vcombine.high %v480_v30, %v484_v31  ;;  %3617 = vmatprep.subr.bf16.mxu1 %v6910_v29  ;;  %v6773_v47 = vcombine.low %v480_v30, %v484_v31 }
  0xb6   : > { %v612_v36 = vld [vmem:[#allocation3 + $0x4e0] sm:$0xff]  ;;  %3618 = vmatpush1.bf16.msra.mxu1 %v6909_v38 }
  0xb7   : > { %v6902_v40 = vcombine.high %v608_v35, %v612_v36  ;;  %v472_v41 = vld [vmem:[#allocation3 + $0x80] sm:$0xff]  ;;  %3578 = vmatprep.subr.bf16.mxu0 %v6774_v39  ;;  %v6901_v48 = vcombine.low %v608_v35, %v612_v36 }
  0xb8   : > { %v476_v42 = vld [vmem:[#allocation3 + $0xa0] sm:$0xff]  ;;  %3579 = vmatpush1.bf16.msra.mxu0 %v6773_v47 }
  0xb9   : > { %v600_v45 = vld [vmem:[#allocation3 + $0x480] sm:$0xff]  ;;  %v6766_v49 = vcombine.high %v472_v41, %v476_v42  ;;  %3619 = vmatprep.subr.bf16.mxu1 %v6902_v40  ;;  %v6765_v56 = vcombine.low %v472_v41, %v476_v42 }
  0xba   : > { %v604_v46 = vld [vmem:[#allocation3 + $0x4a0] sm:$0xff]  ;;  %3620 = vmatpush1.bf16.msra.mxu1 %v6901_v48 }
  0xbb   : > { %v6894_v50 = vcombine.high %v600_v45, %v604_v46  ;;  %v464_v51 = vld [vmem:[#allocation3 + $0x40] sm:$0xff]  ;;  %3580 = vmatprep.subr.bf16.mxu0 %v6766_v49  ;;  %v6893_v57 = vcombine.low %v600_v45, %v604_v46 }
  0xbc   : > { %v468_v52 = vld [vmem:[#allocation3 + $0x60] sm:$0xff]  ;;  %3581 = vmatpush1.bf16.msra.mxu0 %v6765_v56 }
  0xbd   : > { %v592_v54 = vld [vmem:[#allocation3 + $0x440] sm:$0xff]  ;;  %v6758_v58 = vcombine.high %v464_v51, %v468_v52  ;;  %3621 = vmatprep.subr.bf16.mxu1 %v6894_v50  ;;  %v6757_v3 = vcombine.low %v464_v51, %v468_v52 }
  0xbe   : > { %v596_v55 = vld [vmem:[#allocation3 + $0x460] sm:$0xff]  ;;  %3622 = vmatpush1.bf16.msra.mxu1 %v6893_v57 }
  0xbf   : > { %v6886_v60 = vcombine.high %v592_v54, %v596_v55  ;;  %v456_v61 = vld [vmem:[#allocation3] sm:$0xff]  ;;  %3582 = vmatprep.subr.bf16.mxu0 %v6758_v58  ;;  %v6885_v6 = vcombine.low %v592_v54, %v596_v55 }
  0xc0   : > { %v460_v62 = vld [vmem:[#allocation3 + $0x20] sm:$0xff]  ;;  %3583 = vmatpush1.bf16.msra.mxu0 %v6757_v3 }
  0xc1   : > { %v584_v1 = vld [vmem:[#allocation3 + $0x400] sm:$0xff]  ;;  %v6750_v7 = vcombine.high %v456_v61, %v460_v62  ;;  %3623 = vmatprep.subr.bf16.mxu1 %v6886_v60  ;;  %v6749_v15 = vcombine.low %v456_v61, %v460_v62 }
  0xc2   : > { %v588_v2 = vld [vmem:[#allocation3 + $0x420] sm:$0xff]  ;;  %3624 = vmatpush1.bf16.msra.mxu1 %v6885_v6 }
  0xc3   : > { %v6878_v8 = vcombine.high %v584_v1, %v588_v2  ;;  %v576_v9 = vld [vmem:[#allocation3 + $0x3c0] sm:$0xff]  ;;  %3584 = vmatprep.subr.bf16.mxu0 %v6750_v7  ;;  %v6877_v17 = vcombine.low %v584_v1, %v588_v2 }
  0xc4   : > { %v580_v10 = vld [vmem:[#allocation3 + $0x3e0] sm:$0xff]  ;;  %3585 = vmatpush1.bf16.msra.mxu0 %v6749_v15 }
  0xc5   : > { %v704_v13 = vld [vmem:[#allocation3 + $0x7c0] sm:$0xff]  ;;  %v6870_v18 = vcombine.high %v576_v9, %v580_v10  ;;  %3625 = vmatprep.subr.bf16.mxu1 %v6878_v8  ;;  %v6869_v24 = vcombine.low %v576_v9, %v580_v10 }
  0xc6   : > { %v708_v14 = vld [vmem:[#allocation3 + $0x7e0] sm:$0xff]  ;;  %3626 = vmatpush1.bf16.msra.mxu1 %v6877_v17 }
  0xc7   : > { %v6998_v19 = vcombine.high %v704_v13, %v708_v14  ;;  %v568_v20 = vld [vmem:[#allocation3 + $0x380] sm:$0xff]  ;;  %3586 = vmatprep.subr.bf16.mxu0 %v6870_v18  ;;  %v6997_v25 = vcombine.low %v704_v13, %v708_v14 }
  0xc8   : > { %v572_v21 = vld [vmem:[#allocation3 + $0x3a0] sm:$0xff]  ;;  %3587 = vmatpush2.bf16.msra.mxu0 %v6869_v24 }
  0xc9   : > { %v696_v22 = vld [vmem:[#allocation3 + $0x780] sm:$0xff]  ;;  %v6862_v26 = vcombine.high %v568_v20, %v572_v21  ;;  %3627 = vmatprep.subr.bf16.mxu1 %v6998_v19  ;;  %v6861_v32 = vcombine.low %v568_v20, %v572_v21 }
  0xca   : > { %v700_v23 = vld [vmem:[#allocation3 + $0x7a0] sm:$0xff]  ;;  %3628 = vmatpush2.bf16.msra.mxu1 %v6997_v25 }
  0xcb   : > { %v6990_v27 = vcombine.high %v696_v22, %v700_v23  ;;  %v560_v28 = vld [vmem:[#allocation3 + $0x340] sm:$0xff]  ;;  %3588 = vmatprep.subr.bf16.mxu0 %v6862_v26  ;;  %v6989_v33 = vcombine.low %v696_v22, %v700_v23 }
  0xcc   : > { %v564_v29 = vld [vmem:[#allocation3 + $0x360] sm:$0xff]  ;;  %3589 = vmatpush2.bf16.msra.mxu0 %v6861_v32 }
  0xcd   : > { %v688_v30 = vld [vmem:[#allocation3 + $0x740] sm:$0xff]  ;;  %v6854_v34 = vcombine.high %v560_v28, %v564_v29  ;;  %3629 = vmatprep.subr.bf16.mxu1 %v6990_v27  ;;  %v6853_v40 = vcombine.low %v560_v28, %v564_v29 }
  0xce   : > { %v692_v31 = vld [vmem:[#allocation3 + $0x760] sm:$0xff]  ;;  %3630 = vmatpush2.bf16.msra.mxu1 %v6989_v33  ;;  %v8665_v33 = vpack.c.bf16 %v8637_v63, %v8637_v63 }
  0xcf   : > { %v6982_v35 = vcombine.high %v688_v30, %v692_v31  ;;  %v552_v36 = vld [vmem:[#allocation3 + $0x300] sm:$0xff]  ;;  %3590 = vmatprep.subr.bf16.mxu0 %v6854_v34  ;;  %v6981_v41 = vcombine.low %v688_v30, %v692_v31 }
  0xd0   : > { %v556_v37 = vld [vmem:[#allocation3 + $0x320] sm:$0xff]  ;;  %3591 = vmatpush2.bf16.msra.mxu0 %v6853_v40 }
  0xd1   : > { %v680_v38 = vld [vmem:[#allocation3 + $0x700] sm:$0xff]  ;;  %v6846_v42 = vcombine.high %v552_v36, %v556_v37  ;;  %3631 = vmatprep.subr.bf16.mxu1 %v6982_v35  ;;  %v6845_v49 = vcombine.low %v552_v36, %v556_v37  ;;  %v8671_v36 = vpack.c.bf16 %v8642_v5, %v8642_v5 }
  0xd2   : > { %v684_v39 = vld [vmem:[#allocation3 + $0x720] sm:$0xff]  ;;  %3632 = vmatpush2.bf16.msra.mxu1 %v6981_v41 }
  0xd3   : > { %v6974_v43 = vcombine.high %v680_v38, %v684_v39  ;;  %v544_v45 = vld [vmem:[#allocation3 + $0x2c0] sm:$0xff]  ;;  %3592 = vmatprep.subr.bf16.mxu0 %v6846_v42  ;;  %v6973_v50 = vcombine.low %v680_v38, %v684_v39 }
  0xd4   : > { %v548_v46 = vld [vmem:[#allocation3 + $0x2e0] sm:$0xff]  ;;  %3593 = vmatpush2.bf16.msra.mxu0 %v6845_v49 }
  0xd5   : > { %v672_v47 = vld [vmem:[#allocation3 + $0x6c0] sm:$0xff]  ;;  %v6838_v51 = vcombine.high %v544_v45, %v548_v46  ;;  %3633 = vmatprep.subr.bf16.mxu1 %v6974_v43  ;;  %v6837_v58 = vcombine.low %v544_v45, %v548_v46 }
  0xd6   : > { %v676_v48 = vld [vmem:[#allocation3 + $0x6e0] sm:$0xff]  ;;  %3634 = vmatpush2.bf16.msra.mxu1 %v6973_v50 }
  0xd7   : > { %v6966_v52 = vcombine.high %v672_v47, %v676_v48  ;;  %v536_v54 = vld [vmem:[#allocation3 + $0x280] sm:$0xff]  ;;  %3594 = vmatprep.subr.bf16.mxu0 %v6838_v51  ;;  %v6965_v59 = vcombine.low %v672_v47, %v676_v48 }
  0xd8   : > { %v540_v55 = vld [vmem:[#allocation3 + $0x2a0] sm:$0xff]  ;;  %3595 = vmatpush2.bf16.msra.mxu0 %v6837_v58 }
  0xd9   : > { %v664_v56 = vld [vmem:[#allocation3 + $0x680] sm:$0xff]  ;;  %v6830_v60 = vcombine.high %v536_v54, %v540_v55  ;;  %3635 = vmatprep.subr.bf16.mxu1 %v6966_v52  ;;  %v6829_v3 = vcombine.low %v536_v54, %v540_v55 }
  0xda   : > { %v668_v57 = vld [vmem:[#allocation3 + $0x6a0] sm:$0xff]  ;;  %3636 = vmatpush2.bf16.msra.mxu1 %v6965_v59 }
  0xdb   : > { %v6958_v61 = vcombine.high %v664_v56, %v668_v57  ;;  %v528_v62 = vld [vmem:[#allocation3 + $0x240] sm:$0xff]  ;;  %3596 = vmatprep.subr.bf16.mxu0 %v6830_v60  ;;  %v6957_v6 = vcombine.low %v664_v56, %v668_v57 }
  0xdc   : > { %v532_v0 = vld [vmem:[#allocation3 + $0x260] sm:$0xff]  ;;  %3597 = vmatpush2.bf16.msra.mxu0 %v6829_v3 }
  0xdd   : > { %v656_v1 = vld [vmem:[#allocation3 + $0x640] sm:$0xff]  ;;  %v6822_v7 = vcombine.high %v528_v62, %v532_v0  ;;  %3637 = vmatprep.subr.bf16.mxu1 %v6958_v61  ;;  %v6821_v15 = vcombine.low %v528_v62, %v532_v0 }
  0xde   : > { %v660_v2 = vld [vmem:[#allocation3 + $0x660] sm:$0xff]  ;;  %3638 = vmatpush2.bf16.msra.mxu1 %v6957_v6 }
  0xdf   : > { %v403_v4 = vld [vmem:[%s9126_s0 + $0x8] sm:$0xff]  ;;  %v6950_v8 = vcombine.high %v656_v1, %v660_v2  ;;  %3598 = vmatprep.subr.bf16.mxu0 %v6822_v7  ;;  %v6949_v17 = vcombine.low %v656_v1, %v660_v2 }
  0xe0   : > { %v520_v9 = vld [vmem:[#allocation3 + $0x200] sm:$0xff]  ;;  %v423_v14 = vcombine.high %v403_v4, %v403_v4  ;;  %v8656_v22 = vrot.slane %v403_v4, %v8631_v53  ;;  %3599 = vmatpush2.bf16.msra.mxu0 %v6821_v15 }
  0xe1   : > { %v524_v10 = vld [vmem:[#allocation3 + $0x220] sm:$0xff]  ;;  %3639 = vmatprep.subr.bf16.mxu1 %v6950_v8 }
  0xe2   : > { %v648_v12 = vld [vmem:[#allocation3 + $0x600] sm:$0xff]  ;;  %v6814_v18 = vcombine.high %v520_v9, %v524_v10  ;;  %v8659_v25 = vrot.slane %v423_v14, %v8631_v53  ;;  %v6813_v26 = vcombine.low %v520_v9, %v524_v10  ;;  %3640 = vmatpush2.bf16.msra.mxu1 %v6949_v17  ;;  %v438_v32 = vcombine.high %v8656_v22, %v8656_v22 }
  0xe3   : > { %v652_v13 = vld [vmem:[#allocation3 + $0x620] sm:$0xff] }
  0xe4   : > { %v6942_v19 = vcombine.high %v648_v12, %v652_v13  ;;  %v768_v20 = vld [vmem:[#allocation3 + $0x9c0] sm:$0xff]  ;;  %3600 = vmatprep.subr.bf16.mxu0 %v6814_v18  ;;  %v6941_v27 = vcombine.low %v648_v12, %v652_v13  ;;  %v439_v35 = vcombine.high %v8659_v25, %v8659_v25  ;;  %v8673_v42 = vpack.c.bf16 %v438_v32, %v438_v32 }
  0xe5   : > { %v772_v21 = vld [vmem:[#allocation3 + $0x9e0] sm:$0xff]  ;;  %3601 = vmatpush2.bf16.msra.mxu0 %v6813_v26 }
  0xe6   : > { %v896_v23 = vld [vmem:[#allocation3 + $0xdc0] sm:$0xff]  ;;  %v7062_v28 = vcombine.high %v768_v20, %v772_v21  ;;  %3641 = vmatprep.subr.bf16.mxu1 %v6942_v19  ;;  %v7061_v37 = vcombine.low %v768_v20, %v772_v21  ;;  %v8676_v46 = vpack.c.bf16 %v439_v35, %v439_v35 }
  0xe7   : > { %v900_v24 = vld [vmem:[#allocation3 + $0xde0] sm:$0xff]  ;;  %3642 = vmatpush2.bf16.msra.mxu1 %v6941_v27 }
  0xe8   : > { %v7190_v29 = vcombine.high %v896_v23, %v900_v24  ;;  %v760_v30 = vld [vmem:[#allocation3 + $0x980] sm:$0xff]  ;;  %3652 = vmatprep.subr.bf16.mxu0 %v7062_v28  ;;  %v7189_v38 = vcombine.low %v896_v23, %v900_v24  ;;  %3603 = vmatmul.mubr.bf16.vlgmr.msra.gmra.mxu0 %v8665_v33 }
  0xe9   : > { %v764_v31 = vld [vmem:[#allocation3 + $0x9a0] sm:$0xff]  ;;  %3653 = vmatpush1.bf16.msra.mxu0 %v7061_v37  ;;  %3684 = vmatprep.mubr.bf16.mxu0 %v8673_v42 }
  0xea   : > { %v888_v34 = vld [vmem:[#allocation3 + $0xd80] sm:$0xff]  ;;  %v7054_v39 = vcombine.high %v760_v30, %v764_v31  ;;  %3693 = vmatprep.subr.bf16.mxu1 %v7190_v29  ;;  %3644 = vmatmul.mubr.bf16.vlgmr.msra.gmra.mxu1 %v8671_v36  ;;  %v7053_v5 = vcombine.low %v760_v30, %v764_v31 }
  0xeb   : > { %v892_v53 = vld [vmem:[#allocation3 + $0xda0] sm:$0xff]  ;;  %3694 = vmatpush1.bf16.msra.mxu1 %v7189_v38  ;;  %3725 = vmatprep.mubr.bf16.mxu1 %v8676_v46 }
  0xec   : > { %v7182_v40 = vcombine.high %v888_v34, %v892_v53  ;;  %v752_v41 = vld [vmem:[#allocation3 + $0x940] sm:$0xff]  ;;  %3654 = vmatprep.subr.bf16.mxu0 %v7054_v39  ;;  %v7181_v47 = vcombine.low %v888_v34, %v892_v53 }
  0xed   : > { %v756_v63 = vld [vmem:[#allocation3 + $0x960] sm:$0xff]  ;;  %3655 = vmatpush1.bf16.msra.mxu0 %v7053_v5 }
  0xee   : > { %v880_v43 = vld [vmem:[#allocation3 + $0xd40] sm:$0xff]  ;;  %v7046_v48 = vcombine.high %v752_v41, %v756_v63  ;;  %3695 = vmatprep.subr.bf16.mxu1 %v7182_v40  ;;  %v7045_v55 = vcombine.low %v752_v41, %v756_v63 }
  0xef   : > { %v884_v45 = vld [vmem:[#allocation3 + $0xd60] sm:$0xff]  ;;  %3696 = vmatpush1.bf16.msra.mxu1 %v7181_v47 }
  0xf0   : > { %v7174_v49 = vcombine.high %v880_v43, %v884_v45  ;;  %v744_v50 = vld [vmem:[#allocation3 + $0x900] sm:$0xff]  ;;  %3656 = vmatprep.subr.bf16.mxu0 %v7046_v48  ;;  %v7173_v56 = vcombine.low %v880_v43, %v884_v45 }
  0xf1   : > { %v748_v51 = vld [vmem:[#allocation3 + $0x920] sm:$0xff]  ;;  %3657 = vmatpush1.bf16.msra.mxu0 %v7045_v55 }
  0xf2   : > { %v872_v52 = vld [vmem:[#allocation3 + $0xd00] sm:$0xff]  ;;  %v7038_v57 = vcombine.high %v744_v50, %v748_v51  ;;  %3697 = vmatprep.subr.bf16.mxu1 %v7174_v49  ;;  %v7037_v0 = vcombine.low %v744_v50, %v748_v51 }
  0xf3   : > { %v876_v54 = vld [vmem:[#allocation3 + $0xd20] sm:$0xff]  ;;  %3698 = vmatpush1.bf16.msra.mxu1 %v7173_v56 }
  0xf4   : > { %v7166_v58 = vcombine.high %v872_v52, %v876_v54  ;;  %v736_v59 = vld [vmem:[#allocation3 + $0x8c0] sm:$0xff]  ;;  %3658 = vmatprep.subr.bf16.mxu0 %v7038_v57  ;;  %v7165_v1 = vcombine.low %v872_v52, %v876_v54 }
  0xf5   : > { %v740_v60 = vld [vmem:[#allocation3 + $0x8e0] sm:$0xff]  ;;  %3659 = vmatpush1.bf16.msra.mxu0 %v7037_v0 }
  0xf6   : > { %v864_v61 = vld [vmem:[#allocation3 + $0xcc0] sm:$0xff]  ;;  %v7030_v2 = vcombine.high %v736_v59, %v740_v60  ;;  %3699 = vmatprep.subr.bf16.mxu1 %v7166_v58  ;;  %v7029_v9 = vcombine.low %v736_v59, %v740_v60 }
  0xf7   : > { %v868_v62 = vld [vmem:[#allocation3 + $0xce0] sm:$0xff]  ;;  %3700 = vmatpush1.bf16.msra.mxu1 %v7165_v1 }
  0xf8   : > { %v7158_v3 = vcombine.high %v864_v61, %v868_v62  ;;  %v728_v4 = vld [vmem:[#allocation3 + $0x880] sm:$0xff]  ;;  %3660 = vmatprep.subr.bf16.mxu0 %v7030_v2  ;;  %v7157_v10 = vcombine.low %v864_v61, %v868_v62 }
  0xf9   : > { %v732_v6 = vld [vmem:[#allocation3 + $0x8a0] sm:$0xff]  ;;  %3661 = vmatpush1.bf16.msra.mxu0 %v7029_v9 }
  0xfa   : > { %v856_v7 = vld [vmem:[#allocation3 + $0xc80] sm:$0xff]  ;;  %v7022_v12 = vcombine.high %v728_v4, %v732_v6  ;;  %3701 = vmatprep.subr.bf16.mxu1 %v7158_v3  ;;  %v7021_v19 = vcombine.low %v728_v4, %v732_v6 }
  0xfb   : > { %v860_v8 = vld [vmem:[#allocation3 + $0xca0] sm:$0xff]  ;;  %3702 = vmatpush1.bf16.msra.mxu1 %v7157_v10 }
  0xfc   : > { %v7150_v13 = vcombine.high %v856_v7, %v860_v8  ;;  %v720_v14 = vld [vmem:[#allocation3 + $0x840] sm:$0xff]  ;;  %3662 = vmatprep.subr.bf16.mxu0 %v7022_v12  ;;  %v7149_v20 = vcombine.low %v856_v7, %v860_v8 }
  0xfd   : > { %v724_v15 = vld [vmem:[#allocation3 + $0x860] sm:$0xff]  ;;  %3663 = vmatpush1.bf16.msra.mxu0 %v7021_v19 }
  0xfe   : > { %v848_v17 = vld [vmem:[#allocation3 + $0xc40] sm:$0xff]  ;;  %v7014_v21 = vcombine.high %v720_v14, %v724_v15  ;;  %3703 = vmatprep.subr.bf16.mxu1 %v7150_v13  ;;  %v7013_v29 = vcombine.low %v720_v14, %v724_v15 }
  0xff   : > { %v852_v18 = vld [vmem:[#allocation3 + $0xc60] sm:$0xff]  ;;  %3704 = vmatpush1.bf16.msra.mxu1 %v7149_v20 }
 0x100   : > { %v7142_v23 = vcombine.high %v848_v17, %v852_v18  ;;  %v712_v24 = vld [vmem:[#allocation3 + $0x800] sm:$0xff]  ;;  %3664 = vmatprep.subr.bf16.mxu0 %v7014_v21  ;;  %v7141_v30 = vcombine.low %v848_v17, %v852_v18 }
 0x101   : > { %v716_v26 = vld [vmem:[#allocation3 + $0x820] sm:$0xff]  ;;  %3665 = vmatpush1.bf16.msra.mxu0 %v7013_v29 }
 0x102   : > { %v840_v27 = vld [vmem:[#allocation3 + $0xc00] sm:$0xff]  ;;  %v7006_v31 = vcombine.high %v712_v24, %v716_v26  ;;  %3705 = vmatprep.subr.bf16.mxu1 %v7142_v23  ;;  %v7005_v38 = vcombine.low %v712_v24, %v716_v26 }
 0x103   : > { %v844_v28 = vld [vmem:[#allocation3 + $0xc20] sm:$0xff]  ;;  %3706 = vmatpush1.bf16.msra.mxu1 %v7141_v30 }
 0x104   : > { %v7134_v32 = vcombine.high %v840_v27, %v844_v28  ;;  %v832_v34 = vld [vmem:[#allocation3 + $0xbc0] sm:$0xff]  ;;  %3666 = vmatprep.subr.bf16.mxu0 %v7006_v31  ;;  %v7133_v39 = vcombine.low %v840_v27, %v844_v28 }
 0x105   : > { %v836_v53 = vld [vmem:[#allocation3 + $0xbe0] sm:$0xff]  ;;  %3667 = vmatpush1.bf16.msra.mxu0 %v7005_v38 }
 0x106   : > { %v960_v35 = vld [vmem:[#allocation3 + $0xfc0] sm:$0xff]  ;;  %v7126_v40 = vcombine.high %v832_v34, %v836_v53  ;;  %3707 = vmatprep.subr.bf16.mxu1 %v7134_v32  ;;  %v7125_v47 = vcombine.low %v832_v34, %v836_v53 }
 0x107   : > { %v964_v37 = vld [vmem:[#allocation3 + $0xfe0] sm:$0xff]  ;;  %3708 = vmatpush1.bf16.msra.mxu1 %v7133_v39 }
 0x108   : > { %v7254_v41 = vcombine.high %v960_v35, %v964_v37  ;;  %v824_v63 = vld [vmem:[#allocation3 + $0xb80] sm:$0xff]  ;;  %3668 = vmatprep.subr.bf16.mxu0 %v7126_v40  ;;  %v7253_v48 = vcombine.low %v960_v35, %v964_v37 }
 0x109   : > { %v828_v43 = vld [vmem:[#allocation3 + $0xba0] sm:$0xff]  ;;  %3669 = vmatpush2.bf16.msra.mxu0 %v7125_v47  ;;  %v645_v47 = vld [vmem:[#allocation3 + $0x5e8] sm:$0xff] }
 0x10a   : > { %v952_v45 = vld [vmem:[#allocation3 + $0xf80] sm:$0xff]  ;;  %v7118_v49 = vcombine.high %v824_v63, %v828_v43  ;;  %3709 = vmatprep.subr.bf16.mxu1 %v7254_v41  ;;  %v7117_v56 = vcombine.low %v824_v63, %v828_v43  ;;  %v513_v43 = vld [vmem:[#allocation3 + $0x1c8] sm:$0xff] }
 0x10b   : > { %v956_v5 = vld [vmem:[#allocation3 + $0xfa0] sm:$0xff]  ;;  %3710 = vmatpush2.bf16.msra.mxu1 %v7253_v48 }
 0x10c   : > { %v7246_v50 = vcombine.high %v952_v45, %v956_v5  ;;  %v816_v51 = vld [vmem:[#allocation3 + $0xb40] sm:$0xff]  ;;  %3670 = vmatprep.subr.bf16.mxu0 %v7118_v49  ;;  %v7245_v57 = vcombine.low %v952_v45, %v956_v5  ;;  %v517_v45 = vld [vmem:[#allocation3 + $0x1e8] sm:$0xff] }
 0x10d   : > { %v820_v52 = vld [vmem:[#allocation3 + $0xb60] sm:$0xff]  ;;  %3671 = vmatpush2.bf16.msra.mxu0 %v7117_v56  ;;  %v641_v5 = vld [vmem:[#allocation3 + $0x5c8] sm:$0xff] }
 0x10e   : > { %v944_v54 = vld [vmem:[#allocation3 + $0xf40] sm:$0xff]  ;;  %v7110_v58 = vcombine.high %v816_v51, %v820_v52  ;;  %3711 = vmatprep.subr.bf16.mxu1 %v7246_v50  ;;  %v7109_v1 = vcombine.low %v816_v51, %v820_v52  ;;  %v6808_v50 = vcombine.high %v513_v43, %v517_v45  ;;  %v6936_v51 = vcombine.high %v641_v5, %v645_v47  ;;  %v505_v52 = vld [vmem:[#allocation3 + $0x188] sm:$0xff] }
 0x10f   : > { %v948_v55 = vld [vmem:[#allocation3 + $0xf60] sm:$0xff]  ;;  %3712 = vmatpush2.bf16.msra.mxu1 %v7245_v57  ;;  %v633_v56 = vld [vmem:[#allocation3 + $0x588] sm:$0xff] }
 0x110   : > { %v7238_v59 = vcombine.high %v944_v54, %v948_v55  ;;  %v808_v60 = vld [vmem:[#allocation3 + $0xb00] sm:$0xff]  ;;  %3672 = vmatprep.subr.bf16.mxu0 %v7110_v58  ;;  %v7237_v2 = vcombine.low %v944_v54, %v948_v55  ;;  %v509_v54 = vld [vmem:[#allocation3 + $0x1a8] sm:$0xff]  ;;  %v8683_v55 = vpack.c.bf16 %v8656_v22, %v8656_v22  ;;  %v8687_v58 = vpack.c.bf16 %v8659_v25, %v8659_v25 }
 0x111   : > { %v812_v61 = vld [vmem:[#allocation3 + $0xb20] sm:$0xff]  ;;  %3673 = vmatpush2.bf16.msra.mxu0 %v7109_v1  ;;  %v637_v57 = vld [vmem:[#allocation3 + $0x5a8] sm:$0xff] }
 0x112   : > { %v936_v62 = vld [vmem:[#allocation3 + $0xf00] sm:$0xff]  ;;  %v7102_v3 = vcombine.high %v808_v60, %v812_v61  ;;  %3713 = vmatprep.subr.bf16.mxu1 %v7238_v59  ;;  %v7101_v10 = vcombine.low %v808_v60, %v812_v61  ;;  %v6807_v59 = vcombine.low %v513_v43, %v517_v45  ;;  %v6935_v60 = vcombine.low %v641_v5, %v645_v47  ;;  %v501_v1 = vld [vmem:[#allocation3 + $0x168] sm:$0xff] }
 0x113   : > { %v940_v0 = vld [vmem:[#allocation3 + $0xf20] sm:$0xff]  ;;  %3714 = vmatpush2.bf16.msra.mxu1 %v7237_v2  ;;  %v6800_v61 = vcombine.high %v505_v52, %v509_v54  ;;  %v625_v22 = vld [vmem:[#allocation3 + $0x548] sm:$0xff]  ;;  %v6927_v25 = vcombine.low %v633_v56, %v637_v57 }
 0x114   : > { %v7230_v4 = vcombine.high %v936_v62, %v940_v0  ;;  %v800_v6 = vld [vmem:[#allocation3 + $0xac0] sm:$0xff]  ;;  %3674 = vmatprep.subr.bf16.mxu0 %v7102_v3  ;;  %v7229_v12 = vcombine.low %v936_v62, %v940_v0  ;;  %v6928_v62 = vcombine.high %v633_v56, %v637_v57  ;;  %v497_v0 = vld [vmem:[#allocation3 + $0x148] sm:$0xff]  ;;  %v6799_v3 = vcombine.low %v505_v52, %v509_v54 }
 0x115   : > { %v804_v7 = vld [vmem:[#allocation3 + $0xae0] sm:$0xff]  ;;  %3675 = vmatpush2.bf16.msra.mxu0 %v7101_v10  ;;  %v629_v2 = vld [vmem:[#allocation3 + $0x568] sm:$0xff] }
 0x116   : > { %v928_v8 = vld [vmem:[#allocation3 + $0xec0] sm:$0xff]  ;;  %v7094_v13 = vcombine.high %v800_v6, %v804_v7  ;;  %3715 = vmatprep.subr.bf16.mxu1 %v7230_v4  ;;  %v7093_v20 = vcombine.low %v800_v6, %v804_v7  ;;  %v6792_v4 = vcombine.high %v497_v0, %v501_v1  ;;  %v6920_v6 = vcombine.high %v625_v22, %v629_v2  ;;  %v489_v7 = vld [vmem:[#allocation3 + $0x108] sm:$0xff] }
 0x117   : > { %v932_v9 = vld [vmem:[#allocation3 + $0xee0] sm:$0xff]  ;;  %3716 = vmatpush2.bf16.msra.mxu1 %v7229_v12  ;;  %v621_v10 = vld [vmem:[#allocation3 + $0x528] sm:$0xff]  ;;  %v6791_v12 = vcombine.low %v497_v0, %v501_v1 }
 0x118   : > { %v7222_v14 = vcombine.high %v928_v8, %v932_v9  ;;  %v792_v15 = vld [vmem:[#allocation3 + $0xa80] sm:$0xff]  ;;  %3676 = vmatprep.subr.bf16.mxu0 %v7094_v13  ;;  %v7221_v21 = vcombine.low %v928_v8, %v932_v9  ;;  %v493_v8 = vld [vmem:[#allocation3 + $0x128] sm:$0xff]  ;;  %v6919_v13 = vcombine.low %v625_v22, %v629_v2 }
 0x119   : > { %v796_v17 = vld [vmem:[#allocation3 + $0xaa0] sm:$0xff]  ;;  %3677 = vmatpush2.bf16.msra.mxu0 %v7093_v20  ;;  %v617_v9 = vld [vmem:[#allocation3 + $0x508] sm:$0xff] }
 0x11a   : > { %v920_v18 = vld [vmem:[#allocation3 + $0xe80] sm:$0xff]  ;;  %v7086_v23 = vcombine.high %v792_v15, %v796_v17  ;;  %3717 = vmatprep.subr.bf16.mxu1 %v7222_v14  ;;  %v7085_v30 = vcombine.low %v792_v15, %v796_v17  ;;  %v6784_v14 = vcombine.high %v489_v7, %v493_v8  ;;  %v6912_v15 = vcombine.high %v617_v9, %v621_v10  ;;  %v481_v17 = vld [vmem:[#allocation3 + $0xc8] sm:$0xff] }
 0x11b   : > { %v924_v19 = vld [vmem:[#allocation3 + $0xea0] sm:$0xff]  ;;  %3718 = vmatpush2.bf16.msra.mxu1 %v7221_v21  ;;  %v613_v20 = vld [vmem:[#allocation3 + $0x4e8] sm:$0xff]  ;;  %v6783_v21 = vcombine.low %v489_v7, %v493_v8 }
 0x11c   : > { %v7214_v24 = vcombine.high %v920_v18, %v924_v19  ;;  %v784_v26 = vld [vmem:[#allocation3 + $0xa40] sm:$0xff]  ;;  %3678 = vmatprep.subr.bf16.mxu0 %v7086_v23  ;;  %v7213_v31 = vcombine.low %v920_v18, %v924_v19  ;;  %v485_v18 = vld [vmem:[#allocation3 + $0xe8] sm:$0xff]  ;;  %v6911_v23 = vcombine.low %v617_v9, %v621_v10 }
 0x11d   : > { %v788_v27 = vld [vmem:[#allocation3 + $0xa60] sm:$0xff]  ;;  %3679 = vmatpush2.bf16.msra.mxu0 %v7085_v30  ;;  %v609_v19 = vld [vmem:[#allocation3 + $0x4c8] sm:$0xff] }
 0x11e   : > { %v912_v28 = vld [vmem:[#allocation3 + $0xe40] sm:$0xff]  ;;  %v7078_v32 = vcombine.high %v784_v26, %v788_v27  ;;  %3719 = vmatprep.subr.bf16.mxu1 %v7214_v24  ;;  %v7077_v39 = vcombine.low %v784_v26, %v788_v27  ;;  %v6776_v24 = vcombine.high %v481_v17, %v485_v18  ;;  %v6904_v26 = vcombine.high %v609_v19, %v613_v20  ;;  %v473_v27 = vld [vmem:[#allocation3 + $0x88] sm:$0xff] }
 0x11f   : > { %v916_v29 = vld [vmem:[#allocation3 + $0xe60] sm:$0xff]  ;;  %3720 = vmatpush2.bf16.msra.mxu1 %v7213_v31  ;;  %v605_v30 = vld [vmem:[#allocation3 + $0x4a8] sm:$0xff]  ;;  %v6775_v31 = vcombine.low %v481_v17, %v485_v18 }
 0x120   : > { %v7206_v34 = vcombine.high %v912_v28, %v916_v29  ;;  %v776_v53 = vld [vmem:[#allocation3 + $0xa00] sm:$0xff]  ;;  %3680 = vmatprep.subr.bf16.mxu0 %v7078_v32  ;;  %v7205_v40 = vcombine.low %v912_v28, %v916_v29  ;;  %v477_v28 = vld [vmem:[#allocation3 + $0xa8] sm:$0xff]  ;;  %v6903_v32 = vcombine.low %v609_v19, %v613_v20 }
 0x121   : > { %v780_v35 = vld [vmem:[#allocation3 + $0xa20] sm:$0xff]  ;;  %3681 = vmatpush2.bf16.msra.mxu0 %v7077_v39  ;;  %v601_v29 = vld [vmem:[#allocation3 + $0x488] sm:$0xff] }
 0x122   : > { %v904_v37 = vld [vmem:[#allocation3 + $0xe00] sm:$0xff]  ;;  %v7070_v41 = vcombine.high %v776_v53, %v780_v35  ;;  %3721 = vmatprep.subr.bf16.mxu1 %v7206_v34  ;;  %v7069_v48 = vcombine.low %v776_v53, %v780_v35  ;;  %v6768_v34 = vcombine.high %v473_v27, %v477_v28  ;;  %v6896_v53 = vcombine.high %v601_v29, %v605_v30  ;;  %v465_v35 = vld [vmem:[#allocation3 + $0x48] sm:$0xff] }
 0x123   : > { %v908_v38 = vld [vmem:[#allocation3 + $0xe20] sm:$0xff]  ;;  %3722 = vmatpush2.bf16.msra.mxu1 %v7205_v40  ;;  %v597_v39 = vld [vmem:[#allocation3 + $0x468] sm:$0xff]  ;;  %v6767_v40 = vcombine.low %v473_v27, %v477_v28 }
 0x124   : > { %v7198_v63 = vcombine.high %v904_v37, %v908_v38  ;;  %3682 = vmatprep.subr.bf16.mxu0 %v7070_v41  ;;  %v7197_v49 = vcombine.low %v904_v37, %v908_v38  ;;  %v469_v37 = vld [vmem:[#allocation3 + $0x68] sm:$0xff]  ;;  %v6895_v41 = vcombine.low %v601_v29, %v605_v30 }
 0x125   : > { %3683 = vmatpush2.bf16.msra.mxu0 %v7069_v48  ;;  %v593_v38 = vld [vmem:[#allocation3 + $0x448] sm:$0xff] }
 0x126   : > { %3723 = vmatprep.subr.bf16.mxu1 %v7198_v63  ;;  %3734 = vmatprep.subr.bf16.mxu0 %v6808_v50  ;;  %v6760_v63 = vcombine.high %v465_v35, %v469_v37  ;;  %v6888_v43 = vcombine.high %v593_v38, %v597_v39  ;;  %v457_v45 = vld [vmem:[#allocation3 + $0x8] sm:$0xff]  ;;  %v6887_v50 = vcombine.low %v593_v38, %v597_v39 }
 0x127   : > { %3724 = vmatpush2.bf16.msra.mxu1 %v7197_v49  ;;  %v461_v5 = vld [vmem:[#allocation3 + $0x28] sm:$0xff]  ;;  %v6759_v49 = vcombine.low %v465_v35, %v469_v37 }
 0x128   : > { %3775 = vmatprep.subr.bf16.mxu1 %v6936_v51  ;;  %3685 = vmatmul.mubr.bf16.vlgmr.msra.gmra.mxu0 %v8683_v55  ;;  %v585_v47 = vld [vmem:[#allocation3 + $0x408] sm:$0xff]  ;;  %v6752_v51 = vcombine.high %v457_v45, %v461_v5 }
 0x129   : > { %3735 = vmatpush1.bf16.msra.mxu0 %v6807_v59  ;;  %3766 = vmatprep.mubr.bf16.mxu0 %v8644_v11  ;;  %v589_v48 = vld [vmem:[#allocation3 + $0x428] sm:$0xff] }
 0x12a   : > { %3726 = vmatmul.mubr.bf16.vlgmr.msra.gmra.mxu1 %v8687_v58  ;;  %3736 = vmatprep.subr.bf16.mxu0 %v6800_v61  ;;  %v6880_v52 = vcombine.high %v585_v47, %v589_v48  ;;  %v577_v54 = vld [vmem:[#allocation3 + $0x3c8] sm:$0xff]  ;;  %v6879_v61 = vcombine.low %v585_v47, %v589_v48 }
 0x12b   : > { %3776 = vmatpush1.bf16.msra.mxu1 %v6935_v60  ;;  %3807 = vmatprep.mubr.bf16.mxu1 %v8649_v16  ;;  %v581_v56 = vld [vmem:[#allocation3 + $0x3e8] sm:$0xff]  ;;  %v6751_v60 = vcombine.low %v457_v45, %v461_v5 }
 0x12c   : > { %3777 = vmatprep.subr.bf16.mxu1 %v6928_v62  ;;  %v705_v57 = vld [vmem:[#allocation3 + $0x7c8] sm:$0xff]  ;;  %v6872_v62 = vcombine.high %v577_v54, %v581_v56 }
 0x12d   : > { %3737 = vmatpush1.bf16.msra.mxu0 %v6799_v3  ;;  %v709_v59 = vld [vmem:[#allocation3 + $0x7e8] sm:$0xff] }
 0x12e   : > { %3738 = vmatprep.subr.bf16.mxu0 %v6792_v4  ;;  %v7000_v0 = vcombine.high %v705_v57, %v709_v59  ;;  %v569_v1 = vld [vmem:[#allocation3 + $0x388] sm:$0xff]  ;;  %v6999_v4 = vcombine.low %v705_v57, %v709_v59 }
 0x12f   : > { %3778 = vmatpush1.bf16.msra.mxu1 %v6927_v25  ;;  %v573_v22 = vld [vmem:[#allocation3 + $0x3a8] sm:$0xff]  ;;  %v6871_v25 = vcombine.low %v577_v54, %v581_v56 }
 0x130   : > { %3779 = vmatprep.subr.bf16.mxu1 %v6920_v6  ;;  %v697_v2 = vld [vmem:[#allocation3 + $0x788] sm:$0xff]  ;;  %v6864_v6 = vcombine.high %v569_v1, %v573_v22 }
 0x131   : > { %3739 = vmatpush1.bf16.msra.mxu0 %v6791_v12  ;;  %v701_v3 = vld [vmem:[#allocation3 + $0x7a8] sm:$0xff] }
 0x132   : > { %3740 = vmatprep.subr.bf16.mxu0 %v6784_v14  ;;  %v6992_v7 = vcombine.high %v697_v2, %v701_v3  ;;  %v561_v8 = vld [vmem:[#allocation3 + $0x348] sm:$0xff]  ;;  %v6991_v14 = vcombine.low %v697_v2, %v701_v3 }
 0x133   : > { %3780 = vmatpush1.bf16.msra.mxu1 %v6919_v13  ;;  %v565_v9 = vld [vmem:[#allocation3 + $0x368] sm:$0xff]  ;;  %v6863_v13 = vcombine.low %v569_v1, %v573_v22 }
 0x134   : > { %3781 = vmatprep.subr.bf16.mxu1 %v6912_v15  ;;  %v689_v10 = vld [vmem:[#allocation3 + $0x748] sm:$0xff]  ;;  %v6856_v15 = vcombine.high %v561_v8, %v565_v9 }
 0x135   : > { %3741 = vmatpush1.bf16.msra.mxu0 %v6783_v21  ;;  %v693_v12 = vld [vmem:[#allocation3 + $0x768] sm:$0xff] }
 0x136   : > { %3742 = vmatprep.subr.bf16.mxu0 %v6776_v24  ;;  %v6984_v17 = vcombine.high %v689_v10, %v693_v12  ;;  %v553_v18 = vld [vmem:[#allocation3 + $0x308] sm:$0xff]  ;;  %v6983_v24 = vcombine.low %v689_v10, %v693_v12 }
 0x137   : > { %3782 = vmatpush1.bf16.msra.mxu1 %v6911_v23  ;;  %v557_v19 = vld [vmem:[#allocation3 + $0x328] sm:$0xff]  ;;  %v6855_v23 = vcombine.low %v561_v8, %v565_v9 }
 0x138   : > { %3783 = vmatprep.subr.bf16.mxu1 %v6904_v26  ;;  %v681_v20 = vld [vmem:[#allocation3 + $0x708] sm:$0xff]  ;;  %v6848_v26 = vcombine.high %v553_v18, %v557_v19 }
 0x139   : > { %3743 = vmatpush1.bf16.msra.mxu0 %v6775_v31  ;;  %v685_v21 = vld [vmem:[#allocation3 + $0x728] sm:$0xff] }
 0x13a   : > { %3744 = vmatprep.subr.bf16.mxu0 %v6768_v34  ;;  %v6976_v27 = vcombine.high %v681_v20, %v685_v21  ;;  %v545_v28 = vld [vmem:[#allocation3 + $0x2c8] sm:$0xff]  ;;  %v6975_v34 = vcombine.low %v681_v20, %v685_v21 }
 0x13b   : > { %3784 = vmatpush1.bf16.msra.mxu1 %v6903_v32  ;;  %v549_v29 = vld [vmem:[#allocation3 + $0x2e8] sm:$0xff]  ;;  %v6847_v32 = vcombine.low %v553_v18, %v557_v19 }
 0x13c   : > { %3785 = vmatprep.subr.bf16.mxu1 %v6896_v53  ;;  %v673_v30 = vld [vmem:[#allocation3 + $0x6c8] sm:$0xff]  ;;  %v6840_v53 = vcombine.high %v545_v28, %v549_v29 }
 0x13d   : > { %3745 = vmatpush1.bf16.msra.mxu0 %v6767_v40  ;;  %v677_v31 = vld [vmem:[#allocation3 + $0x6e8] sm:$0xff] }
 0x13e   : > { %3746 = vmatprep.subr.bf16.mxu0 %v6760_v63  ;;  %v6968_v35 = vcombine.high %v673_v30, %v677_v31  ;;  %v537_v37 = vld [vmem:[#allocation3 + $0x288] sm:$0xff]  ;;  %v6967_v63 = vcombine.low %v673_v30, %v677_v31 }
 0x13f   : > { %3786 = vmatpush1.bf16.msra.mxu1 %v6895_v41  ;;  %v541_v38 = vld [vmem:[#allocation3 + $0x2a8] sm:$0xff]  ;;  %v6839_v41 = vcombine.low %v545_v28, %v549_v29 }
 0x140   : > { %3787 = vmatprep.subr.bf16.mxu1 %v6888_v43  ;;  %v665_v39 = vld [vmem:[#allocation3 + $0x688] sm:$0xff]  ;;  %v6832_v43 = vcombine.high %v537_v37, %v541_v38 }
 0x141   : > { %3747 = vmatpush1.bf16.msra.mxu0 %v6759_v49  ;;  %v669_v40 = vld [vmem:[#allocation3 + $0x6a8] sm:$0xff] }
 0x142   : > { %3748 = vmatprep.subr.bf16.mxu0 %v6752_v51  ;;  %v6960_v45 = vcombine.high %v665_v39, %v669_v40  ;;  %v529_v5 = vld [vmem:[#allocation3 + $0x248] sm:$0xff]  ;;  %v6959_v51 = vcombine.low %v665_v39, %v669_v40 }
 0x143   : > { %3788 = vmatpush1.bf16.msra.mxu1 %v6887_v50  ;;  %v533_v47 = vld [vmem:[#allocation3 + $0x268] sm:$0xff]  ;;  %v6831_v50 = vcombine.low %v537_v37, %v541_v38 }
 0x144   : > { %3789 = vmatprep.subr.bf16.mxu1 %v6880_v52  ;;  %v657_v48 = vld [vmem:[#allocation3 + $0x648] sm:$0xff]  ;;  %v6824_v52 = vcombine.high %v529_v5, %v533_v47 }
 0x145   : > { %3749 = vmatpush1.bf16.msra.mxu0 %v6751_v60  ;;  %v661_v49 = vld [vmem:[#allocation3 + $0x668] sm:$0xff] }
 0x146   : > { %3750 = vmatprep.subr.bf16.mxu0 %v6872_v62  ;;  %v6952_v54 = vcombine.high %v657_v48, %v661_v49  ;;  %v521_v56 = vld [vmem:[#allocation3 + $0x208] sm:$0xff]  ;;  %v6951_v62 = vcombine.low %v657_v48, %v661_v49 }
 0x147   : > { %3790 = vmatpush1.bf16.msra.mxu1 %v6879_v61  ;;  %v525_v57 = vld [vmem:[#allocation3 + $0x228] sm:$0xff]  ;;  %v6823_v61 = vcombine.low %v529_v5, %v533_v47 }
 0x148   : > { %3791 = vmatprep.subr.bf16.mxu1 %v7000_v0  ;;  %v649_v59 = vld [vmem:[#allocation3 + $0x608] sm:$0xff]  ;;  %v6816_v0 = vcombine.high %v521_v56, %v525_v57 }
 0x149   : > { %3751 = vmatpush2.bf16.msra.mxu0 %v6871_v25  ;;  %v653_v60 = vld [vmem:[#allocation3 + $0x628] sm:$0xff] }
 0x14a   : > { %3752 = vmatprep.subr.bf16.mxu0 %v6864_v6  ;;  %v6944_v1 = vcombine.high %v649_v59, %v653_v60  ;;  %v769_v22 = vld [vmem:[#allocation3 + $0x9c8] sm:$0xff]  ;;  %v6943_v6 = vcombine.low %v649_v59, %v653_v60 }
 0x14b   : > { %3792 = vmatpush2.bf16.msra.mxu1 %v6999_v4  ;;  %v773_v2 = vld [vmem:[#allocation3 + $0x9e8] sm:$0xff]  ;;  %v6815_v4 = vcombine.low %v521_v56, %v525_v57 }
 0x14c   : > { %3793 = vmatprep.subr.bf16.mxu1 %v6992_v7  ;;  %v897_v3 = vld [vmem:[#allocation3 + $0xdc8] sm:$0xff]  ;;  %v7064_v7 = vcombine.high %v769_v22, %v773_v2 }
 0x14d   : > { %3753 = vmatpush2.bf16.msra.mxu0 %v6863_v13  ;;  %v901_v25 = vld [vmem:[#allocation3 + $0xde8] sm:$0xff] }
 0x14e   : > { %3754 = vmatprep.subr.bf16.mxu0 %v6856_v15  ;;  %v7192_v8 = vcombine.high %v897_v3, %v901_v25  ;;  %v761_v9 = vld [vmem:[#allocation3 + $0x988] sm:$0xff]  ;;  %v7191_v15 = vcombine.low %v897_v3, %v901_v25 }
 0x14f   : > { %3794 = vmatpush2.bf16.msra.mxu1 %v6991_v14  ;;  %v765_v10 = vld [vmem:[#allocation3 + $0x9a8] sm:$0xff]  ;;  %v7063_v14 = vcombine.low %v769_v22, %v773_v2 }
 0x150   : > { %3795 = vmatprep.subr.bf16.mxu1 %v6984_v17  ;;  %v889_v12 = vld [vmem:[#allocation3 + $0xd88] sm:$0xff]  ;;  %v7056_v17 = vcombine.high %v761_v9, %v765_v10 }
 0x151   : > { %3755 = vmatpush2.bf16.msra.mxu0 %v6855_v23  ;;  %v893_v13 = vld [vmem:[#allocation3 + $0xda8] sm:$0xff] }
 0x152   : > { %3756 = vmatprep.subr.bf16.mxu0 %v6848_v26  ;;  %v7184_v18 = vcombine.high %v889_v12, %v893_v13  ;;  %v753_v19 = vld [vmem:[#allocation3 + $0x948] sm:$0xff]  ;;  %v7183_v26 = vcombine.low %v889_v12, %v893_v13 }
 0x153   : > { %3796 = vmatpush2.bf16.msra.mxu1 %v6983_v24  ;;  %v757_v20 = vld [vmem:[#allocation3 + $0x968] sm:$0xff]  ;;  %v7055_v24 = vcombine.low %v761_v9, %v765_v10 }
 0x154   : > { %3797 = vmatprep.subr.bf16.mxu1 %v6976_v27  ;;  %v881_v21 = vld [vmem:[#allocation3 + $0xd48] sm:$0xff]  ;;  %v7048_v27 = vcombine.high %v753_v19, %v757_v20 }
 0x155   : > { %3757 = vmatpush2.bf16.msra.mxu0 %v6847_v32  ;;  %v885_v23 = vld [vmem:[#allocation3 + $0xd68] sm:$0xff] }
 0x156   : > { %3758 = vmatprep.subr.bf16.mxu0 %v6840_v53  ;;  %v7176_v28 = vcombine.high %v881_v21, %v885_v23  ;;  %v745_v29 = vld [vmem:[#allocation3 + $0x908] sm:$0xff]  ;;  %v7175_v53 = vcombine.low %v881_v21, %v885_v23 }
 0x157   : > { %3798 = vmatpush2.bf16.msra.mxu1 %v6975_v34  ;;  %v749_v30 = vld [vmem:[#allocation3 + $0x928] sm:$0xff]  ;;  %v7047_v34 = vcombine.low %v753_v19, %v757_v20 }
 0x158   : > { %3799 = vmatprep.subr.bf16.mxu1 %v6968_v35  ;;  %v873_v31 = vld [vmem:[#allocation3 + $0xd08] sm:$0xff]  ;;  %v7040_v35 = vcombine.high %v745_v29, %v749_v30 }
 0x159   : > { %3759 = vmatpush2.bf16.msra.mxu0 %v6839_v41  ;;  %v877_v32 = vld [vmem:[#allocation3 + $0xd28] sm:$0xff] }
 0x15a   : > { %3760 = vmatprep.subr.bf16.mxu0 %v6832_v43  ;;  %v7168_v37 = vcombine.high %v873_v31, %v877_v32  ;;  %v737_v38 = vld [vmem:[#allocation3 + $0x8c8] sm:$0xff]  ;;  %v7167_v43 = vcombine.low %v873_v31, %v877_v32 }
 0x15b   : > { %3800 = vmatpush2.bf16.msra.mxu1 %v6967_v63  ;;  %v741_v39 = vld [vmem:[#allocation3 + $0x8e8] sm:$0xff]  ;;  %v7039_v63 = vcombine.low %v745_v29, %v749_v30 }
 0x15c   : > { %3801 = vmatprep.subr.bf16.mxu1 %v6960_v45  ;;  %v865_v40 = vld [vmem:[#allocation3 + $0xcc8] sm:$0xff]  ;;  %v7032_v45 = vcombine.high %v737_v38, %v741_v39 }
 0x15d   : > { %3761 = vmatpush2.bf16.msra.mxu0 %v6831_v50  ;;  %v869_v41 = vld [vmem:[#allocation3 + $0xce8] sm:$0xff] }
 0x15e   : > { %3762 = vmatprep.subr.bf16.mxu0 %v6824_v52  ;;  %v7160_v5 = vcombine.high %v865_v40, %v869_v41  ;;  %v729_v47 = vld [vmem:[#allocation3 + $0x888] sm:$0xff]  ;;  %v7159_v52 = vcombine.low %v865_v40, %v869_v41 }
 0x15f   : > { %3802 = vmatpush2.bf16.msra.mxu1 %v6959_v51  ;;  %v733_v48 = vld [vmem:[#allocation3 + $0x8a8] sm:$0xff]  ;;  %v7031_v51 = vcombine.low %v737_v38, %v741_v39 }
 0x160   : > { %3803 = vmatprep.subr.bf16.mxu1 %v6952_v54  ;;  %v857_v49 = vld [vmem:[#allocation3 + $0xc88] sm:$0xff]  ;;  %v7024_v54 = vcombine.high %v729_v47, %v733_v48 }
 0x161   : > { %3763 = vmatpush2.bf16.msra.mxu0 %v6823_v61  ;;  %v861_v50 = vld [vmem:[#allocation3 + $0xca8] sm:$0xff] }
 0x162   : > { %3764 = vmatprep.subr.bf16.mxu0 %v6816_v0  ;;  %v7152_v56 = vcombine.high %v857_v49, %v861_v50  ;;  %v721_v57 = vld [vmem:[#allocation3 + $0x848] sm:$0xff]  ;;  %v7151_v0 = vcombine.low %v857_v49, %v861_v50 }
 0x163   : > { %3804 = vmatpush2.bf16.msra.mxu1 %v6951_v62  ;;  %v725_v59 = vld [vmem:[#allocation3 + $0x868] sm:$0xff]  ;;  %v7023_v62 = vcombine.low %v729_v47, %v733_v48 }
 0x164   : > { %3805 = vmatprep.subr.bf16.mxu1 %v6944_v1  ;;  %v849_v60 = vld [vmem:[#allocation3 + $0xc48] sm:$0xff]  ;;  %v7016_v1 = vcombine.high %v721_v57, %v725_v59 }
 0x165   : > { %3765 = vmatpush2.bf16.msra.mxu0 %v6815_v4  ;;  %v853_v61 = vld [vmem:[#allocation3 + $0xc68] sm:$0xff] }
 0x166   : > { %3816 = vmatprep.subr.bf16.mxu0 %v7064_v7  ;;  %v7144_v22 = vcombine.high %v849_v60, %v853_v61  ;;  %v713_v2 = vld [vmem:[#allocation3 + $0x808] sm:$0xff]  ;;  %v7143_v7 = vcombine.low %v849_v60, %v853_v61 }
 0x167   : > { %3806 = vmatpush2.bf16.msra.mxu1 %v6943_v6  ;;  %v717_v3 = vld [vmem:[#allocation3 + $0x828] sm:$0xff]  ;;  %v7015_v6 = vcombine.low %v721_v57, %v725_v59 }
 0x168   : > { %3857 = vmatprep.subr.bf16.mxu1 %v7192_v8  ;;  %3767 = vmatmul.mubr.bf16.vlgmr.msra.gmra.mxu0 %v8665_v33  ;;  %v841_v25 = vld [vmem:[#allocation3 + $0xc08] sm:$0xff]  ;;  %v7008_v8 = vcombine.high %v713_v2, %v717_v3 }
 0x169   : > { %3817 = vmatpush1.bf16.msra.mxu0 %v7063_v14  ;;  %3848 = vmatprep.mubr.bf16.mxu0 %v8673_v42  ;;  %v845_v4 = vld [vmem:[#allocation3 + $0xc28] sm:$0xff] }
 0x16a   : > { %3808 = vmatmul.mubr.bf16.vlgmr.msra.gmra.mxu1 %v8671_v36  ;;  %3818 = vmatprep.subr.bf16.mxu0 %v7056_v17  ;;  %v7136_v9 = vcombine.high %v841_v25, %v845_v4  ;;  %v833_v10 = vld [vmem:[#allocation3 + $0xbc8] sm:$0xff]  ;;  %v7135_v17 = vcombine.low %v841_v25, %v845_v4 }
 0x16b   : > { %3858 = vmatpush1.bf16.msra.mxu1 %v7191_v15  ;;  %3889 = vmatprep.mubr.bf16.mxu1 %v8676_v46  ;;  %v837_v12 = vld [vmem:[#allocation3 + $0xbe8] sm:$0xff]  ;;  %v7007_v15 = vcombine.low %v713_v2, %v717_v3 }
 0x16c   : > { %3859 = vmatprep.subr.bf16.mxu1 %v7184_v18  ;;  %v961_v13 = vld [vmem:[#allocation3 + $0xfc8] sm:$0xff]  ;;  %v7128_v18 = vcombine.high %v833_v10, %v837_v12 }
 0x16d   : > { %3819 = vmatpush1.bf16.msra.mxu0 %v7055_v24  ;;  %v965_v14 = vld [vmem:[#allocation3 + $0xfe8] sm:$0xff] }
 0x16e   : > { %3820 = vmatprep.subr.bf16.mxu0 %v7048_v27  ;;  %v7256_v19 = vcombine.high %v961_v13, %v965_v14  ;;  %v825_v20 = vld [vmem:[#allocation3 + $0xb88] sm:$0xff]  ;;  %v7255_v27 = vcombine.low %v961_v13, %v965_v14 }
 0x16f   : > { %3860 = vmatpush1.bf16.msra.mxu1 %v7183_v26  ;;  %v829_v21 = vld [vmem:[#allocation3 + $0xba8] sm:$0xff]  ;;  %v7127_v26 = vcombine.low %v833_v10, %v837_v12 }
 0x170   : > { %3861 = vmatprep.subr.bf16.mxu1 %v7176_v28  ;;  %v953_v23 = vld [vmem:[#allocation3 + $0xf88] sm:$0xff]  ;;  %v7120_v28 = vcombine.high %v825_v20, %v829_v21 }
 0x171   : > { %3821 = vmatpush1.bf16.msra.mxu0 %v7047_v34  ;;  %v957_v24 = vld [vmem:[#allocation3 + $0xfa8] sm:$0xff] }
 0x172   : > { %3822 = vmatprep.subr.bf16.mxu0 %v7040_v35  ;;  %v7248_v29 = vcombine.high %v953_v23, %v957_v24  ;;  %v817_v30 = vld [vmem:[#allocation3 + $0xb48] sm:$0xff]  ;;  %v7247_v35 = vcombine.low %v953_v23, %v957_v24  ;;  %v518_v23 = vld [vmem:[#allocation3 + $0x1f0] sm:$0xff] }
 0x173   : > { %3862 = vmatpush1.bf16.msra.mxu1 %v7175_v53  ;;  %v821_v31 = vld [vmem:[#allocation3 + $0xb68] sm:$0xff]  ;;  %v7119_v53 = vcombine.low %v825_v20, %v829_v21  ;;  %v514_v21 = vld [vmem:[#allocation3 + $0x1d0] sm:$0xff] }
 0x174   : > { %3863 = vmatprep.subr.bf16.mxu1 %v7168_v37  ;;  %v945_v32 = vld [vmem:[#allocation3 + $0xf48] sm:$0xff]  ;;  %v7112_v37 = vcombine.high %v817_v30, %v821_v31  ;;  %v642_v24 = vld [vmem:[#allocation3 + $0x5d0] sm:$0xff] }
 0x175   : > { %3823 = vmatpush1.bf16.msra.mxu0 %v7039_v63  ;;  %v949_v34 = vld [vmem:[#allocation3 + $0xf68] sm:$0xff] }
 0x176   : > { %3824 = vmatprep.subr.bf16.mxu0 %v7032_v45  ;;  %v7240_v38 = vcombine.high %v945_v32, %v949_v34  ;;  %v809_v39 = vld [vmem:[#allocation3 + $0xb08] sm:$0xff]  ;;  %v7239_v45 = vcombine.low %v945_v32, %v949_v34  ;;  %v976_v34 = vsub.s32 1, %v8628_v44 }
 0x177   : > { %3864 = vmatpush1.bf16.msra.mxu1 %v7167_v43  ;;  %v813_v40 = vld [vmem:[#allocation3 + $0xb28] sm:$0xff]  ;;  %v7111_v43 = vcombine.low %v817_v30, %v821_v31  ;;  %v8698_v30 = vld [vmem:[#allocation6] sm:$0xff]  ;;  %v6810_v31 = vcombine.high %v514_v21, %v518_v23 }
 0x178   : > { %3865 = vmatprep.subr.bf16.mxu1 %v7160_v5  ;;  %v937_v41 = vld [vmem:[#allocation3 + $0xf08] sm:$0xff]  ;;  %v7104_v5 = vcombine.high %v809_v39, %v813_v40 }
 0x179   : > { %3825 = vmatpush1.bf16.msra.mxu0 %v7031_v51  ;;  %v941_v63 = vld [vmem:[#allocation3 + $0xf28] sm:$0xff] }
 0x17a   : > { %3826 = vmatprep.subr.bf16.mxu0 %v7024_v54  ;;  %v7232_v47 = vcombine.high %v937_v41, %v941_v63  ;;  %v801_v48 = vld [vmem:[#allocation3 + $0xac8] sm:$0xff]  ;;  %v7231_v54 = vcombine.low %v937_v41, %v941_v63 }
 0x17b   : > { %3866 = vmatpush1.bf16.msra.mxu1 %v7159_v52  ;;  %v805_v49 = vld [vmem:[#allocation3 + $0xae8] sm:$0xff]  ;;  %v7103_v52 = vcombine.low %v809_v39, %v813_v40  ;;  %v6809_v40 = vcombine.low %v514_v21, %v518_v23 }
 0x17c   : > { %3867 = vmatprep.subr.bf16.mxu1 %v7152_v56  ;;  %v929_v50 = vld [vmem:[#allocation3 + $0xec8] sm:$0xff]  ;;  %v7096_v56 = vcombine.high %v801_v48, %v805_v49 }
 0x17d   : > { %3827 = vmatpush1.bf16.msra.mxu0 %v7023_v62  ;;  %v933_v51 = vld [vmem:[#allocation3 + $0xee8] sm:$0xff] }
 0x17e   : > { %3828 = vmatprep.subr.bf16.mxu0 %v7016_v1  ;;  %v7224_v57 = vcombine.high %v929_v50, %v933_v51  ;;  %v793_v59 = vld [vmem:[#allocation3 + $0xa88] sm:$0xff]  ;;  %v7223_v1 = vcombine.low %v929_v50, %v933_v51  ;;  %v630_v50 = vld [vmem:[#allocation3 + $0x570] sm:$0xff] }
 0x17f   : > { %3868 = vmatpush1.bf16.msra.mxu1 %v7151_v0  ;;  %v797_v60 = vld [vmem:[#allocation3 + $0xaa8] sm:$0xff]  ;;  %v7095_v0 = vcombine.low %v801_v48, %v805_v49  ;;  %v626_v49 = vld [vmem:[#allocation3 + $0x550] sm:$0xff] }
 0x180   : > { %3869 = vmatprep.subr.bf16.mxu1 %v7144_v22  ;;  %v921_v61 = vld [vmem:[#allocation3 + $0xe88] sm:$0xff]  ;;  %v7088_v22 = vcombine.high %v793_v59, %v797_v60 }
 0x181   : > { %3829 = vmatpush1.bf16.msra.mxu0 %v7015_v6  ;;  %v925_v62 = vld [vmem:[#allocation3 + $0xea8] sm:$0xff] }
 0x182   : > { %3830 = vmatprep.subr.bf16.mxu0 %v7008_v8  ;;  %v7216_v2 = vcombine.high %v921_v61, %v925_v62  ;;  %v785_v3 = vld [vmem:[#allocation3 + $0xa48] sm:$0xff]  ;;  %v7215_v8 = vcombine.low %v921_v61, %v925_v62 }
 0x183   : > { %3870 = vmatpush1.bf16.msra.mxu1 %v7143_v7  ;;  %v789_v25 = vld [vmem:[#allocation3 + $0xa68] sm:$0xff]  ;;  %v7087_v7 = vcombine.low %v793_v59, %v797_v60 }
 0x184   : > { %3871 = vmatprep.subr.bf16.mxu1 %v7136_v9  ;;  %v913_v4 = vld [vmem:[#allocation3 + $0xe48] sm:$0xff]  ;;  %v7080_v9 = vcombine.high %v785_v3, %v789_v25 }
 0x185   : > { %3831 = vmatpush1.bf16.msra.mxu0 %v7007_v15  ;;  %v917_v6 = vld [vmem:[#allocation3 + $0xe68] sm:$0xff] }
 0x186   : > { %3832 = vmatprep.subr.bf16.mxu0 %v7128_v18  ;;  %v7208_v10 = vcombine.high %v913_v4, %v917_v6  ;;  %v777_v12 = vld [vmem:[#allocation3 + $0xa08] sm:$0xff]  ;;  %v7207_v18 = vcombine.low %v913_v4, %v917_v6 }
 0x187   : > { %3872 = vmatpush1.bf16.msra.mxu1 %v7135_v17  ;;  %v781_v13 = vld [vmem:[#allocation3 + $0xa28] sm:$0xff]  ;;  %v7079_v17 = vcombine.low %v785_v3, %v789_v25  ;;  %v618_v3 = vld [vmem:[#allocation3 + $0x510] sm:$0xff] }
 0x188   : > { %3873 = vmatprep.subr.bf16.mxu1 %v7256_v19  ;;  %v905_v14 = vld [vmem:[#allocation3 + $0xe08] sm:$0xff]  ;;  %v7072_v19 = vcombine.high %v777_v12, %v781_v13  ;;  %v622_v25 = vld [vmem:[#allocation3 + $0x530] sm:$0xff] }
 0x189   : > { %3833 = vmatpush2.bf16.msra.mxu0 %v7127_v26  ;;  %v909_v15 = vld [vmem:[#allocation3 + $0xe28] sm:$0xff]  ;;  %v646_v26 = vld [vmem:[#allocation3 + $0x5f0] sm:$0xff] }
 0x18a   : > { %3834 = vmatprep.subr.bf16.mxu0 %v7120_v28  ;;  %v7200_v20 = vcombine.high %v905_v14, %v909_v15  ;;  %v972_v28 = vsub.s32 0, %v8628_v44  ;;  %v6938_v32 = vcombine.high %v642_v24, %v646_v26  ;;  %v6937_v41 = vcombine.low %v642_v24, %v646_v26  ;;  %v474_v24 = vld [vmem:[#allocation3 + $0x90] sm:$0xff] }
 0x18b   : > { %3874 = vmatpush2.bf16.msra.mxu1 %v7255_v27  ;;  %v7071_v27 = vcombine.low %v777_v12, %v781_v13  ;;  %v6914_v13 = vcombine.high %v618_v3, %v622_v25  ;;  %v478_v26 = vld [vmem:[#allocation3 + $0xb0] sm:$0xff] }
 0x18c   : > { %3875 = vmatprep.subr.bf16.mxu1 %v7248_v29  ;;  %v7199_v29 = vcombine.low %v905_v14, %v909_v15  ;;  %v973_v39 = vrot.slane %v8698_v30, %v972_v28  ;;  %v482_v14 = vld [vmem:[#allocation3 + $0xd0] sm:$0xff] }
 0x18d   : > { %3835 = vmatpush2.bf16.msra.mxu0 %v7119_v53  ;;  %v506_v53 = vld [vmem:[#allocation3 + $0x190] sm:$0xff] }
 0x18e   : > { %3836 = vmatprep.subr.bf16.mxu0 %v7112_v37  ;;  %v634_v37 = vld [vmem:[#allocation3 + $0x590] sm:$0xff] }
 0x18f   : > { %3876 = vmatpush2.bf16.msra.mxu1 %v7247_v35  ;;  %v510_v35 = vld [vmem:[#allocation3 + $0x1b0] sm:$0xff] }
 0x190   : > { %3877 = vmatprep.subr.bf16.mxu1 %v7240_v38  ;;  %v638_v38 = vld [vmem:[#allocation3 + $0x5b0] sm:$0xff]  ;;  %v6802_v63 = vcombine.high %v506_v53, %v510_v35 }
 0x191   : > { %3837 = vmatpush2.bf16.msra.mxu0 %v7111_v43  ;;  %v977_v43 = vrot.slane %v8698_v30, %v976_v34  ;;  %v486_v15 = vld [vmem:[#allocation3 + $0xf0] sm:$0xff] }
 0x192   : > { %3838 = vmatprep.subr.bf16.mxu0 %v7104_v5  ;;  %v498_v5 = vld [vmem:[#allocation3 + $0x150] sm:$0xff]  ;;  %v6778_v21 = vcombine.high %v482_v14, %v486_v15 }
 0x193   : > { %3878 = vmatpush2.bf16.msra.mxu1 %v7239_v45  ;;  %v6930_v45 = vcombine.high %v634_v37, %v638_v38  ;;  %v606_v28 = vld [vmem:[#allocation3 + $0x4b0] sm:$0xff] }
 0x194   : > { %3879 = vmatprep.subr.bf16.mxu1 %v7232_v47  ;;  %v502_v47 = vld [vmem:[#allocation3 + $0x170] sm:$0xff] }
 0x195   : > { %3839 = vmatpush2.bf16.msra.mxu0 %v7103_v52  ;;  %v6794_v59 = vcombine.high %v498_v5, %v502_v47 }
 0x196   : > { %3840 = vmatprep.subr.bf16.mxu0 %v7096_v56 }
 0x197   : > { %3880 = vmatpush2.bf16.msra.mxu1 %v7231_v54  ;;  %v6801_v54 = vcombine.low %v506_v53, %v510_v35  ;;  %v466_v53 = vld [vmem:[#allocation3 + $0x50] sm:$0xff] }
 0x198   : > { %3881 = vmatprep.subr.bf16.mxu1 %v7224_v57  ;;  %v6929_v57 = vcombine.low %v634_v37, %v638_v38  ;;  %v470_v35 = vld [vmem:[#allocation3 + $0x70] sm:$0xff] }
 0x199   : > { %3841 = vmatpush2.bf16.msra.mxu0 %v7095_v0  ;;  %v6922_v0 = vcombine.high %v626_v49, %v630_v50  ;;  %v594_v37 = vld [vmem:[#allocation3 + $0x450] sm:$0xff] }
 0x19a   : > { %3842 = vmatprep.subr.bf16.mxu0 %v7088_v22  ;;  %v494_v22 = vld [vmem:[#allocation3 + $0x130] sm:$0xff] }
 0x19b   : > { %3882 = vmatpush2.bf16.msra.mxu1 %v7223_v1  ;;  %v490_v1 = vld [vmem:[#allocation3 + $0x110] sm:$0xff] }
 0x19c   : > { %3883 = vmatprep.subr.bf16.mxu1 %v7216_v2  ;;  %v598_v38 = vld [vmem:[#allocation3 + $0x470] sm:$0xff] }
 0x19d   : > { %3843 = vmatpush2.bf16.msra.mxu0 %v7087_v7  ;;  %v6793_v7 = vcombine.low %v498_v5, %v502_v47  ;;  %v586_v5 = vld [vmem:[#allocation3 + $0x410] sm:$0xff] }
 0x19e   : > { %3844 = vmatprep.subr.bf16.mxu0 %v7080_v9  ;;  %v6921_v9 = vcombine.low %v626_v49, %v630_v50  ;;  %v590_v47 = vld [vmem:[#allocation3 + $0x430] sm:$0xff]  ;;  %v6889_v49 = vcombine.low %v594_v37, %v598_v38 }
 0x19f   : > { %3884 = vmatpush2.bf16.msra.mxu1 %v7215_v8 }
 0x1a0   : > { %3885 = vmatprep.subr.bf16.mxu1 %v7208_v10  ;;  %v6786_v10 = vcombine.high %v490_v1, %v494_v22 }
 0x1a1   : > { %3845 = vmatpush2.bf16.msra.mxu0 %v7079_v17  ;;  %v610_v17 = vld [vmem:[#allocation3 + $0x4d0] sm:$0xff] }
 0x1a2   : > { %3846 = vmatprep.subr.bf16.mxu0 %v7072_v19  ;;  %v6785_v19 = vcombine.low %v490_v1, %v494_v22  ;;  %v570_v1 = vld [vmem:[#allocation3 + $0x390] sm:$0xff] }
 0x1a3   : > { %3886 = vmatpush2.bf16.msra.mxu1 %v7207_v18  ;;  %v614_v18 = vld [vmem:[#allocation3 + $0x4f0] sm:$0xff] }
 0x1a4   : > { %3887 = vmatprep.subr.bf16.mxu1 %v7200_v20  ;;  %v6913_v20 = vcombine.low %v618_v3, %v622_v25  ;;  %v6906_v23 = vcombine.high %v610_v17, %v614_v18  ;;  %v574_v22 = vld [vmem:[#allocation3 + $0x3b0] sm:$0xff] }
 0x1a5   : > { %3847 = vmatpush2.bf16.msra.mxu0 %v7071_v27  ;;  %v602_v27 = vld [vmem:[#allocation3 + $0x490] sm:$0xff] }
 0x1a6   : > { %3898 = vmatprep.subr.bf16.mxu0 %v6810_v31  ;;  %v6905_v31 = vcombine.low %v610_v17, %v614_v18  ;;  %v6898_v34 = vcombine.high %v602_v27, %v606_v28  ;;  %v702_v3 = vld [vmem:[#allocation3 + $0x7b0] sm:$0xff] }
 0x1a7   : > { %3888 = vmatpush2.bf16.msra.mxu1 %v7199_v29  ;;  %v6777_v29 = vcombine.low %v482_v14, %v486_v15  ;;  %v6865_v14 = vcombine.low %v570_v1, %v574_v22 }
 0x1a8   : > { %3939 = vmatprep.subr.bf16.mxu1 %v6938_v32  ;;  %v3604_v48 = vpop.f32.mrf.mxu0  ;;  %3849 = vmatmul.mubr.bf16.vlgmr.msra.gmra.mxu0 %v8683_v55  ;;  %v6770_v32 = vcombine.high %v474_v24, %v478_v26 }
 0x1a9   : > { %v3605_v51 = vadd.f32 %v3604_v48, %v973_v39  ;;  %3899 = vmatpush1.bf16.msra.mxu0 %v6809_v40  ;;  %3930 = vmatprep.mubr.bf16.mxu0 %v8644_v11  ;;  %v6769_v39 = vcombine.low %v474_v24, %v478_v26  ;;  %v6897_v40 = vcombine.low %v602_v27, %v606_v28 }
 0x1aa   : > { %v3645_v52 = vpop.f32.mrf.mxu1  ;;  %3890 = vmatmul.mubr.bf16.vlgmr.msra.gmra.mxu1 %v8687_v58  ;;  %v3606_v56 = vpop.f32.mrf.mxu0  ;;  %3900 = vmatprep.subr.bf16.mxu0 %v6802_v63  ;;  %v6890_v63 = vcombine.high %v594_v37, %v598_v38  ;;  %v6761_v48 = vcombine.low %v466_v53, %v470_v35 }
 0x1ab   : > { %3940 = vmatpush1.bf16.msra.mxu1 %v6937_v41  ;;  %v8705_v60 = vadd.f32 %v3645_v52, %v3605_v51  ;;  %v3607_v61 = vadd.f32 %v3606_v56, %v977_v43  ;;  %3971 = vmatprep.mubr.bf16.mxu1 %v8649_v16  ;;  %v6762_v41 = vcombine.high %v466_v53, %v470_v35  ;;  %v458_v43 = vld [vmem:[#allocation3 + $0x10] sm:$0xff] }
 0x1ac   : > { %v3647_v62 = vpop.f32.mrf.mxu1  ;;  %3941 = vmatprep.subr.bf16.mxu1 %v6930_v45  ;;  %v3608_v2 = vpop.f32.mrf.mxu0  ;;  %v462_v45 = vld [vmem:[#allocation3 + $0x30] sm:$0xff]  ;;  %v6882_v51 = vcombine.high %v586_v5, %v590_v47 }
 0x1ad   : > { %v8709_v4 = vadd.f32 %v3647_v62, %v3607_v61  ;;  %3901 = vmatpush1.bf16.msra.mxu0 %v6801_v54  ;;  %v6754_v50 = vcombine.high %v458_v43, %v462_v45  ;;  %v578_v52 = vld [vmem:[#allocation3 + $0x3d0] sm:$0xff]  ;;  %v6881_v61 = vcombine.low %v586_v5, %v590_v47 }
 0x1ae   : > { %v3649_v6 = vpop.f32.mrf.mxu1  ;;  %v3609_v8 = vpop.f32.mrf.mxu0  ;;  %3902 = vmatprep.subr.bf16.mxu0 %v6794_v59  ;;  %v582_v54 = vld [vmem:[#allocation3 + $0x3f0] sm:$0xff]  ;;  %v6753_v59 = vcombine.low %v458_v43, %v462_v45 }
 0x1af   : > { %3942 = vmatpush1.bf16.msra.mxu1 %v6929_v57  ;;  %v706_v56 = vld [vmem:[#allocation3 + $0x7d0] sm:$0xff]  ;;  %v6874_v62 = vcombine.high %v578_v52, %v582_v54  ;;  %v6873_v25 = vcombine.low %v578_v52, %v582_v54 }
 0x1b0   : > { %v3650_v12 = vpop.f32.mrf.mxu1  ;;  %3943 = vmatprep.subr.bf16.mxu1 %v6922_v0  ;;  %v710_v57 = vld [vmem:[#allocation3 + $0x7f0] sm:$0xff] }
 0x1b1   : > { %3903 = vmatpush1.bf16.msra.mxu0 %v6793_v7  ;;  %v7002_v0 = vcombine.high %v706_v56, %v710_v57  ;;  %v698_v2 = vld [vmem:[#allocation3 + $0x790] sm:$0xff]  ;;  %v7001_v6 = vcombine.low %v706_v56, %v710_v57  ;;  %v6866_v7 = vcombine.high %v570_v1, %v574_v22 }
 0x1b2   : > { %3904 = vmatprep.subr.bf16.mxu0 %v6786_v10  ;;  %v6994_v8 = vcombine.high %v698_v2, %v702_v3  ;;  %v566_v10 = vld [vmem:[#allocation3 + $0x370] sm:$0xff]  ;;  %v6993_v15 = vcombine.low %v698_v2, %v702_v3 }
 0x1b3   : > { %3944 = vmatpush1.bf16.msra.mxu1 %v6921_v9  ;;  %v562_v9 = vld [vmem:[#allocation3 + $0x350] sm:$0xff] }
 0x1b4   : > { %3945 = vmatprep.subr.bf16.mxu1 %v6914_v13  ;;  %v690_v12 = vld [vmem:[#allocation3 + $0x750] sm:$0xff]  ;;  %v6858_v17 = vcombine.high %v562_v9, %v566_v10  ;;  %v6857_v24 = vcombine.low %v562_v9, %v566_v10 }
 0x1b5   : > { %3905 = vmatpush1.bf16.msra.mxu0 %v6785_v19  ;;  %v694_v13 = vld [vmem:[#allocation3 + $0x770] sm:$0xff] }
 0x1b6   : > { %3906 = vmatprep.subr.bf16.mxu0 %v6778_v21  ;;  %v6986_v18 = vcombine.high %v690_v12, %v694_v13  ;;  %v554_v19 = vld [vmem:[#allocation3 + $0x310] sm:$0xff]  ;;  %v6985_v26 = vcombine.low %v690_v12, %v694_v13 }
 0x1b7   : > { %3946 = vmatpush1.bf16.msra.mxu1 %v6913_v20  ;;  %v558_v20 = vld [vmem:[#allocation3 + $0x330] sm:$0xff] }
 0x1b8   : > { %3947 = vmatprep.subr.bf16.mxu1 %v6906_v23  ;;  %v682_v21 = vld [vmem:[#allocation3 + $0x710] sm:$0xff]  ;;  %v6850_v27 = vcombine.high %v554_v19, %v558_v20  ;;  %v6849_v53 = vcombine.low %v554_v19, %v558_v20 }
 0x1b9   : > { %3907 = vmatpush1.bf16.msra.mxu0 %v6777_v29  ;;  %v686_v23 = vld [vmem:[#allocation3 + $0x730] sm:$0xff] }
 0x1ba   : > { %3908 = vmatprep.subr.bf16.mxu0 %v6770_v32  ;;  %v6978_v28 = vcombine.high %v682_v21, %v686_v23  ;;  %v546_v29 = vld [vmem:[#allocation3 + $0x2d0] sm:$0xff]  ;;  %v6977_v35 = vcombine.low %v682_v21, %v686_v23 }
 0x1bb   : > { %3948 = vmatpush1.bf16.msra.mxu1 %v6905_v31  ;;  %v550_v31 = vld [vmem:[#allocation3 + $0x2f0] sm:$0xff] }
 0x1bc   : > { %3949 = vmatprep.subr.bf16.mxu1 %v6898_v34  ;;  %v674_v32 = vld [vmem:[#allocation3 + $0x6d0] sm:$0xff]  ;;  %v6842_v37 = vcombine.high %v546_v29, %v550_v31  ;;  %v6841_v43 = vcombine.low %v546_v29, %v550_v31 }
 0x1bd   : > { %3909 = vmatpush1.bf16.msra.mxu0 %v6769_v39  ;;  %v678_v34 = vld [vmem:[#allocation3 + $0x6f0] sm:$0xff] }
 0x1be   : > { %3910 = vmatprep.subr.bf16.mxu0 %v6762_v41  ;;  %v6970_v38 = vcombine.high %v674_v32, %v678_v34  ;;  %v538_v39 = vld [vmem:[#allocation3 + $0x290] sm:$0xff]  ;;  %v6969_v45 = vcombine.low %v674_v32, %v678_v34 }
 0x1bf   : > { %3950 = vmatpush1.bf16.msra.mxu1 %v6897_v40  ;;  %v542_v40 = vld [vmem:[#allocation3 + $0x2b0] sm:$0xff] }
 0x1c0   : > { %3951 = vmatprep.subr.bf16.mxu1 %v6890_v63  ;;  %v666_v41 = vld [vmem:[#allocation3 + $0x690] sm:$0xff]  ;;  %v6834_v5 = vcombine.high %v538_v39, %v542_v40  ;;  %v6833_v52 = vcombine.low %v538_v39, %v542_v40 }
 0x1c1   : > { %3911 = vmatpush1.bf16.msra.mxu0 %v6761_v48  ;;  %v670_v63 = vld [vmem:[#allocation3 + $0x6b0] sm:$0xff] }
 0x1c2   : > { %3912 = vmatprep.subr.bf16.mxu0 %v6754_v50  ;;  %v6962_v47 = vcombine.high %v666_v41, %v670_v63  ;;  %v530_v48 = vld [vmem:[#allocation3 + $0x250] sm:$0xff]  ;;  %v6961_v54 = vcombine.low %v666_v41, %v670_v63 }
 0x1c3   : > { %3952 = vmatpush1.bf16.msra.mxu1 %v6889_v49  ;;  %v534_v49 = vld [vmem:[#allocation3 + $0x270] sm:$0xff] }
 0x1c4   : > { %3953 = vmatprep.subr.bf16.mxu1 %v6882_v51  ;;  %v658_v50 = vld [vmem:[#allocation3 + $0x650] sm:$0xff]  ;;  %v6826_v56 = vcombine.high %v530_v48, %v534_v49  ;;  %v6825_v1 = vcombine.low %v530_v48, %v534_v49 }
 0x1c5   : > { %3913 = vmatpush1.bf16.msra.mxu0 %v6753_v59  ;;  %v662_v51 = vld [vmem:[#allocation3 + $0x670] sm:$0xff] }
 0x1c6   : > { %3914 = vmatprep.subr.bf16.mxu0 %v6874_v62  ;;  %v6954_v57 = vcombine.high %v658_v50, %v662_v51  ;;  %v522_v59 = vld [vmem:[#allocation3 + $0x210] sm:$0xff]  ;;  %v6953_v22 = vcombine.low %v658_v50, %v662_v51 }
 0x1c7   : > { %3954 = vmatpush1.bf16.msra.mxu1 %v6881_v61  ;;  %v526_v61 = vld [vmem:[#allocation3 + $0x230] sm:$0xff] }
 0x1c8   : > { %3955 = vmatprep.subr.bf16.mxu1 %v7002_v0  ;;  %v650_v62 = vld [vmem:[#allocation3 + $0x610] sm:$0xff]  ;;  %v6818_v2 = vcombine.high %v522_v59, %v526_v61  ;;  %v6817_v9 = vcombine.low %v522_v59, %v526_v61 }
 0x1c9   : > { %3915 = vmatpush2.bf16.msra.mxu0 %v6873_v25  ;;  %v654_v0 = vld [vmem:[#allocation3 + $0x630] sm:$0xff] }
 0x1ca   : > { %3916 = vmatprep.subr.bf16.mxu0 %v6866_v7  ;;  %v6946_v3 = vcombine.high %v650_v62, %v654_v0  ;;  %v770_v25 = vld [vmem:[#allocation3 + $0x9d0] sm:$0xff]  ;;  %v6945_v10 = vcombine.low %v650_v62, %v654_v0 }
 0x1cb   : > { %3956 = vmatpush2.bf16.msra.mxu1 %v7001_v6  ;;  %v774_v6 = vld [vmem:[#allocation3 + $0x9f0] sm:$0xff] }
 0x1cc   : > { %3957 = vmatprep.subr.bf16.mxu1 %v6994_v8  ;;  %v898_v7 = vld [vmem:[#allocation3 + $0xdd0] sm:$0xff]  ;;  %v7066_v12 = vcombine.high %v770_v25, %v774_v6  ;;  %v7065_v19 = vcombine.low %v770_v25, %v774_v6 }
 0x1cd   : > { %3917 = vmatpush2.bf16.msra.mxu0 %v6865_v14  ;;  %v902_v8 = vld [vmem:[#allocation3 + $0xdf0] sm:$0xff] }
 0x1ce   : > { %3918 = vmatprep.subr.bf16.mxu0 %v6858_v17  ;;  %v7194_v13 = vcombine.high %v898_v7, %v902_v8  ;;  %v762_v14 = vld [vmem:[#allocation3 + $0x990] sm:$0xff]  ;;  %v7193_v20 = vcombine.low %v898_v7, %v902_v8 }
 0x1cf   : > { %3958 = vmatpush2.bf16.msra.mxu1 %v6993_v15  ;;  %v766_v15 = vld [vmem:[#allocation3 + $0x9b0] sm:$0xff] }
 0x1d0   : > { %3959 = vmatprep.subr.bf16.mxu1 %v6986_v18  ;;  %v890_v17 = vld [vmem:[#allocation3 + $0xd90] sm:$0xff]  ;;  %v7058_v21 = vcombine.high %v762_v14, %v766_v15  ;;  %v7057_v34 = vcombine.low %v762_v14, %v766_v15 }
 0x1d1   : > { %3919 = vmatpush2.bf16.msra.mxu0 %v6857_v24  ;;  %v894_v18 = vld [vmem:[#allocation3 + $0xdb0] sm:$0xff] }
 0x1d2   : > { %3920 = vmatprep.subr.bf16.mxu0 %v6850_v27  ;;  %v7186_v23 = vcombine.high %v890_v17, %v894_v18  ;;  %v754_v24 = vld [vmem:[#allocation3 + $0x950] sm:$0xff] }
 0x1d3   : > { %3960 = vmatpush2.bf16.msra.mxu1 %v6985_v26  ;;  %v758_v26 = vld [vmem:[#allocation3 + $0x970] sm:$0xff] }
 0x1d4   : > { %3961 = vmatprep.subr.bf16.mxu1 %v6978_v28  ;;  %v882_v28 = vld [vmem:[#allocation3 + $0xd50] sm:$0xff]  ;;  %v7049_v49 = vcombine.low %v754_v24, %v758_v26 }
 0x1d5   : > { %3921 = vmatpush2.bf16.msra.mxu0 %v6849_v53  ;;  %v886_v29 = vld [vmem:[#allocation3 + $0xd70] sm:$0xff] }
 0x1d6   : > { %3922 = vmatprep.subr.bf16.mxu0 %v6842_v37  ;;  %v7050_v37 = vcombine.high %v754_v24, %v758_v26  ;;  %v7178_v41 = vcombine.high %v882_v28, %v886_v29  ;;  %v746_v63 = vld [vmem:[#allocation3 + $0x910] sm:$0xff] }
 0x1d7   : > { %3962 = vmatpush2.bf16.msra.mxu1 %v6977_v35  ;;  %v7185_v35 = vcombine.low %v890_v17, %v894_v18  ;;  %v738_v59 = vld [vmem:[#allocation3 + $0x8d0] sm:$0xff] }
 0x1d8   : > { %3963 = vmatprep.subr.bf16.mxu1 %v6970_v38  ;;  %v742_v61 = vld [vmem:[#allocation3 + $0x8f0] sm:$0xff] }
 0x1d9   : > { %3923 = vmatpush2.bf16.msra.mxu0 %v6841_v43  ;;  %v750_v43 = vld [vmem:[#allocation3 + $0x930] sm:$0xff] }
 0x1da   : > { %3924 = vmatprep.subr.bf16.mxu0 %v6834_v5  ;;  %v878_v5 = vld [vmem:[#allocation3 + $0xd30] sm:$0xff]  ;;  %v7042_v51 = vcombine.high %v746_v63, %v750_v43 }
 0x1db   : > { %3964 = vmatpush2.bf16.msra.mxu1 %v6969_v45  ;;  %v874_v45 = vld [vmem:[#allocation3 + $0xd10] sm:$0xff] }
 0x1dc   : > { %3965 = vmatprep.subr.bf16.mxu1 %v6962_v47  ;;  %v866_v62 = vld [vmem:[#allocation3 + $0xcd0] sm:$0xff] }
 0x1dd   : > { %3925 = vmatpush2.bf16.msra.mxu0 %v6833_v52  ;;  %v870_v0 = vld [vmem:[#allocation3 + $0xcf0] sm:$0xff] }
 0x1de   : > { %3926 = vmatprep.subr.bf16.mxu0 %v6826_v56  ;;  %v7162_v25 = vcombine.high %v866_v62, %v870_v0  ;;  %v730_v6 = vld [vmem:[#allocation3 + $0x890] sm:$0xff] }
 0x1df   : > { %3966 = vmatpush2.bf16.msra.mxu1 %v6961_v54  ;;  %v734_v7 = vld [vmem:[#allocation3 + $0x8b0] sm:$0xff] }
 0x1e0   : > { %3967 = vmatprep.subr.bf16.mxu1 %v6954_v57  ;;  %v7170_v57 = vcombine.high %v874_v45, %v878_v5  ;;  %v858_v8 = vld [vmem:[#allocation3 + $0xc90] sm:$0xff] }
 0x1e1   : > { %3927 = vmatpush2.bf16.msra.mxu0 %v6825_v1  ;;  %v722_v15 = vld [vmem:[#allocation3 + $0x850] sm:$0xff] }
 0x1e2   : > { %3928 = vmatprep.subr.bf16.mxu0 %v6818_v2  ;;  %v7169_v2 = vcombine.low %v874_v45, %v878_v5  ;;  %v726_v17 = vld [vmem:[#allocation3 + $0x870] sm:$0xff] }
 0x1e3   : > { %3968 = vmatpush2.bf16.msra.mxu1 %v6953_v22  ;;  %v7041_v22 = vcombine.low %v746_v63, %v750_v43  ;;  %v850_v18 = vld [vmem:[#allocation3 + $0xc50] sm:$0xff] }
 0x1e4   : > { %3969 = vmatprep.subr.bf16.mxu1 %v6946_v3  ;;  %v7034_v3 = vcombine.high %v738_v59, %v742_v61  ;;  %v714_v26 = vld [vmem:[#allocation3 + $0x810] sm:$0xff] }
 0x1e5   : > { %3929 = vmatpush2.bf16.msra.mxu0 %v6817_v9  ;;  %v862_v9 = vld [vmem:[#allocation3 + $0xcb0] sm:$0xff] }
 0x1e6   : > { %3980 = vmatprep.subr.bf16.mxu0 %v7066_v12  ;;  %v7161_v12 = vcombine.low %v866_v62, %v870_v0  ;;  %v7154_v14 = vcombine.high %v858_v8, %v862_v9  ;;  %v830_v45 = vld [vmem:[#allocation3 + $0xbb0] sm:$0xff] }
 0x1e7   : > { %3970 = vmatpush2.bf16.msra.mxu1 %v6945_v10  ;;  %v7033_v10 = vcombine.low %v738_v59, %v742_v61  ;;  %v954_v5 = vld [vmem:[#allocation3 + $0xf90] sm:$0xff] }
 0x1e8   : > { %4021 = vmatprep.subr.bf16.mxu1 %v7194_v13  ;;  %v3686_v27 = vpop.f32.mrf.mxu0  ;;  %3931 = vmatmul.mubr.bf16.vlgmr.msra.gmra.mxu0 %v8665_v33  ;;  %v7026_v13 = vcombine.high %v730_v6, %v734_v7  ;;  %v810_v0 = vld [vmem:[#allocation3 + $0xb10] sm:$0xff] }
 0x1e9   : > { %v3687_v31 = vadd.f32 %v3686_v27, %v8705_v60  ;;  %3981 = vmatpush1.bf16.msra.mxu0 %v7065_v19  ;;  %4012 = vmatprep.mubr.bf16.mxu0 %v8673_v42  ;;  %v854_v19 = vld [vmem:[#allocation3 + $0xc70] sm:$0xff] }
 0x1ea   : > { %v3727_v32 = vpop.f32.mrf.mxu1  ;;  %3972 = vmatmul.mubr.bf16.vlgmr.msra.gmra.mxu1 %v8671_v36  ;;  %v3688_v53 = vpop.f32.mrf.mxu0  ;;  %3982 = vmatprep.subr.bf16.mxu0 %v7058_v21  ;;  %v7153_v21 = vcombine.low %v858_v8, %v862_v9  ;;  %v7146_v24 = vcombine.high %v850_v18, %v854_v19  ;;  %v718_v27 = vld [vmem:[#allocation3 + $0x830] sm:$0xff] }
 0x1eb   : > { %4022 = vmatpush1.bf16.msra.mxu1 %v7193_v20  ;;  %v3728_v38 = vadd.f32 %v3727_v32, %v3687_v31  ;;  %v3689_v39 = vadd.f32 %v3688_v53, %v8709_v4  ;;  %4053 = vmatprep.mubr.bf16.mxu1 %v8676_v46  ;;  %v7177_v4 = vcombine.low %v882_v28, %v886_v29  ;;  %v842_v28 = vld [vmem:[#allocation3 + $0xc10] sm:$0xff] }
 0x1ec   : > { %v3729_v40 = vpop.f32.mrf.mxu1  ;;  %4023 = vmatprep.subr.bf16.mxu1 %v7186_v23  ;;  %v3690_v60 = vpop.f32.mrf.mxu0  ;;  %v7025_v20 = vcombine.low %v730_v6, %v734_v7  ;;  %v7018_v23 = vcombine.high %v722_v15, %v726_v17  ;;  %v846_v29 = vld [vmem:[#allocation3 + $0xc30] sm:$0xff]  ;;  %v7017_v31 = vcombine.low %v722_v15, %v726_v17  ;;  %v7145_v32 = vcombine.low %v850_v18, %v854_v19 }
 0x1ed   : > { %v3730_v47 = vadd.f32 %v3729_v40, %v3689_v39  ;;  %3983 = vmatpush1.bf16.msra.mxu0 %v7057_v34  ;;  %v4226_v52 = vmax.f32 %v3728_v38, 0.0  ;;  %v7010_v34 = vcombine.high %v714_v26, %v718_v27  ;;  %v7138_v53 = vcombine.high %v842_v28, %v846_v29  ;;  %v962_v38 = vld [vmem:[#allocation3 + $0xfd0] sm:$0xff] }
 0x1ee   : > { %v3731_v48 = vpop.f32.mrf.mxu1  ;;  %v3691_v50 = vpop.f32.mrf.mxu0  ;;  %3984 = vmatprep.subr.bf16.mxu0 %v7050_v37  ;;  %v838_v37 = vld [vmem:[#allocation3 + $0xbf0] sm:$0xff]  ;;  %v7009_v40 = vcombine.low %v714_v26, %v718_v27 }
 0x1ef   : > { %4024 = vmatpush1.bf16.msra.mxu1 %v7185_v35  ;;  %v4227_v54 = vmax.f32 %v3730_v47, 0.0  ;;  %v834_v35 = vld [vmem:[#allocation3 + $0xbd0] sm:$0xff] }
 0x1f0   : > { %v3732_v56 = vpop.f32.mrf.mxu1  ;;  %4025 = vmatprep.subr.bf16.mxu1 %v7178_v41  ;;  %v966_v39 = vld [vmem:[#allocation3 + $0xff0] sm:$0xff]  ;;  %v7137_v41 = vcombine.low %v842_v28, %v846_v29  ;;  %v7130_v63 = vcombine.high %v834_v35, %v838_v37  ;;  %v7129_v48 = vcombine.low %v834_v35, %v838_v37 }
 0x1f1   : > { %v8717_v1 = vpack.c.bf16 %v4227_v54, %v4226_v52  ;;  %3985 = vmatpush1.bf16.msra.mxu0 %v7049_v49  ;;  %v7258_v43 = vcombine.high %v962_v38, %v966_v39  ;;  %v826_v60 = vld [vmem:[#allocation3 + $0xb90] sm:$0xff]  ;;  %v7257_v49 = vcombine.low %v962_v38, %v966_v39 }
 0x1f2   : > { %3986 = vmatprep.subr.bf16.mxu0 %v7042_v51  ;;  %v958_v47 = vld [vmem:[#allocation3 + $0xfb0] sm:$0xff]  ;;  %v7122_v50 = vcombine.high %v826_v60, %v830_v45 }
 0x1f3   : > { %4026 = vmatpush1.bf16.msra.mxu1 %v7177_v4  ;;  %v7250_v4 = vcombine.high %v954_v5, %v958_v47  ;;  %v818_v51 = vld [vmem:[#allocation3 + $0xb50] sm:$0xff]  ;;  %v7249_v59 = vcombine.low %v954_v5, %v958_v47  ;;  %v515_v47 = vld [vmem:[#allocation3 + $0x1d8] sm:$0xff] }
 0x1f4   : > { %4027 = vmatprep.subr.bf16.mxu1 %v7170_v57  ;;  %v822_v52 = vld [vmem:[#allocation3 + $0xb70] sm:$0xff]  ;;  %v7121_v57 = vcombine.low %v826_v60, %v830_v45 }
 0x1f5   : > { %3987 = vmatpush1.bf16.msra.mxu0 %v7041_v22  ;;  %v946_v54 = vld [vmem:[#allocation3 + $0xf50] sm:$0xff]  ;;  %v7114_v61 = vcombine.high %v818_v51, %v822_v52 }
 0x1f6   : > { %3988 = vmatprep.subr.bf16.mxu0 %v7034_v3  ;;  %v950_v56 = vld [vmem:[#allocation3 + $0xf70] sm:$0xff] }
 0x1f7   : > { %4028 = vmatpush1.bf16.msra.mxu1 %v7169_v2  ;;  %v7242_v62 = vcombine.high %v946_v54, %v950_v56  ;;  %v814_v22 = vld [vmem:[#allocation3 + $0xb30] sm:$0xff]  ;;  %v7241_v6 = vcombine.low %v946_v54, %v950_v56 }
 0x1f8   : > { %4029 = vmatprep.subr.bf16.mxu1 %v7162_v25  ;;  %v938_v2 = vld [vmem:[#allocation3 + $0xf10] sm:$0xff]  ;;  %v7113_v25 = vcombine.low %v818_v51, %v822_v52  ;;  %v7106_v7 = vcombine.high %v810_v0, %v814_v22  ;;  %v980_v51 = vsub.s32 2, %v8628_v44 }
 0x1f9   : > { %3989 = vmatpush1.bf16.msra.mxu0 %v7033_v10  ;;  %v942_v3 = vld [vmem:[#allocation3 + $0xf30] sm:$0xff] }
 0x1fa   : > { %3990 = vmatprep.subr.bf16.mxu0 %v7026_v13  ;;  %v7234_v8 = vcombine.high %v938_v2, %v942_v3  ;;  %v802_v9 = vld [vmem:[#allocation3 + $0xad0] sm:$0xff]  ;;  %v7233_v15 = vcombine.low %v938_v2, %v942_v3 }
 0x1fb   : > { %4030 = vmatpush1.bf16.msra.mxu1 %v7161_v12  ;;  %v806_v10 = vld [vmem:[#allocation3 + $0xaf0] sm:$0xff] }
 0x1fc   : > { %4031 = vmatprep.subr.bf16.mxu1 %v7154_v14  ;;  %v930_v12 = vld [vmem:[#allocation3 + $0xed0] sm:$0xff]  ;;  %v7105_v14 = vcombine.low %v810_v0, %v814_v22  ;;  %v7098_v17 = vcombine.high %v802_v9, %v806_v10  ;;  %v639_v0 = vld [vmem:[#allocation3 + $0x5b8] sm:$0xff]  ;;  %v981_v22 = vrot.slane %v8698_v30, %v980_v51 }
 0x1fd   : > { %3991 = vmatpush1.bf16.msra.mxu0 %v7025_v20  ;;  %v934_v13 = vld [vmem:[#allocation3 + $0xef0] sm:$0xff] }
 0x1fe   : > { %3992 = vmatprep.subr.bf16.mxu0 %v7018_v23  ;;  %v7226_v18 = vcombine.high %v930_v12, %v934_v13  ;;  %v794_v19 = vld [vmem:[#allocation3 + $0xa90] sm:$0xff]  ;;  %v7225_v26 = vcombine.low %v930_v12, %v934_v13  ;;  %v627_v12 = vld [vmem:[#allocation3 + $0x558] sm:$0xff] }
 0x1ff   : > { %4032 = vmatpush1.bf16.msra.mxu1 %v7153_v21  ;;  %v798_v20 = vld [vmem:[#allocation3 + $0xab0] sm:$0xff]  ;;  %v631_v13 = vld [vmem:[#allocation3 + $0x578] sm:$0xff] }
 0x200   : > { %4033 = vmatprep.subr.bf16.mxu1 %v7146_v24  ;;  %v922_v21 = vld [vmem:[#allocation3 + $0xe90] sm:$0xff]  ;;  %v7097_v24 = vcombine.low %v802_v9, %v806_v10  ;;  %v7090_v27 = vcombine.high %v794_v19, %v798_v20  ;;  %v503_v9 = vld [vmem:[#allocation3 + $0x178] sm:$0xff] }
 0x201   : > { %3993 = vmatpush1.bf16.msra.mxu0 %v7017_v31  ;;  %v926_v23 = vld [vmem:[#allocation3 + $0xeb0] sm:$0xff] }
 0x202   : > { %3994 = vmatprep.subr.bf16.mxu0 %v7010_v34  ;;  %v7218_v28 = vcombine.high %v922_v21, %v926_v23  ;;  %v786_v29 = vld [vmem:[#allocation3 + $0xa50] sm:$0xff]  ;;  %v7217_v35 = vcombine.low %v922_v21, %v926_v23 }
 0x203   : > { %4034 = vmatpush1.bf16.msra.mxu1 %v7145_v32  ;;  %v790_v31 = vld [vmem:[#allocation3 + $0xa70] sm:$0xff] }
 0x204   : > { %4035 = vmatprep.subr.bf16.mxu1 %v7138_v53  ;;  %v914_v32 = vld [vmem:[#allocation3 + $0xe50] sm:$0xff]  ;;  %v7089_v53 = vcombine.low %v794_v19, %v798_v20  ;;  %v7082_v37 = vcombine.high %v786_v29, %v790_v31 }
 0x205   : > { %3995 = vmatpush1.bf16.msra.mxu0 %v7009_v40  ;;  %v918_v34 = vld [vmem:[#allocation3 + $0xe70] sm:$0xff] }
 0x206   : > { %3996 = vmatprep.subr.bf16.mxu0 %v7130_v63  ;;  %v7210_v38 = vcombine.high %v914_v32, %v918_v34  ;;  %v778_v39 = vld [vmem:[#allocation3 + $0xa10] sm:$0xff]  ;;  %v7209_v60 = vcombine.low %v914_v32, %v918_v34 }
 0x207   : > { %4036 = vmatpush1.bf16.msra.mxu1 %v7137_v41  ;;  %v782_v40 = vld [vmem:[#allocation3 + $0xa30] sm:$0xff] }
 0x208   : > { %4037 = vmatprep.subr.bf16.mxu1 %v7258_v43  ;;  %v906_v41 = vld [vmem:[#allocation3 + $0xe10] sm:$0xff]  ;;  %v7081_v43 = vcombine.low %v786_v29, %v790_v31  ;;  %v7074_v45 = vcombine.high %v778_v39, %v782_v40  ;;  %v619_v29 = vld [vmem:[#allocation3 + $0x518] sm:$0xff] }
 0x209   : > { %3997 = vmatpush2.bf16.msra.mxu0 %v7129_v48  ;;  %v910_v63 = vld [vmem:[#allocation3 + $0xe30] sm:$0xff]  ;;  %v519_v48 = vld [vmem:[#allocation3 + $0x1f8] sm:$0xff] }
 0x20a   : > { %3998 = vmatprep.subr.bf16.mxu0 %v7122_v50  ;;  %v7202_v5 = vcombine.high %v906_v41, %v910_v63  ;;  %v647_v50 = vld [vmem:[#allocation3 + $0x5f8] sm:$0xff]  ;;  %v7201_v52 = vcombine.low %v906_v41, %v910_v63  ;;  %v6812_v54 = vcombine.high %v515_v47, %v519_v48  ;;  %v6811_v2 = vcombine.low %v515_v47, %v519_v48 }
 0x20b   : > { %4038 = vmatpush2.bf16.msra.mxu1 %v7257_v49  ;;  %v643_v49 = vld [vmem:[#allocation3 + $0x5d8] sm:$0xff] }
 0x20c   : > { %4039 = vmatprep.subr.bf16.mxu1 %v7250_v4  ;;  %v7073_v4 = vcombine.low %v778_v39, %v782_v40  ;;  %v6940_v56 = vcombine.high %v643_v49, %v647_v50  ;;  %v6939_v3 = vcombine.low %v643_v49, %v647_v50  ;;  %v623_v31 = vld [vmem:[#allocation3 + $0x538] sm:$0xff] }
 0x20d   : > { %3999 = vmatpush2.bf16.msra.mxu0 %v7121_v57  ;;  %v984_v57 = vsub.s32 3, %v8628_v44  ;;  %v6916_v40 = vcombine.high %v619_v29, %v623_v31  ;;  %v483_v41 = vld [vmem:[#allocation3 + $0xd8] sm:$0xff] }
 0x20e   : > { %4000 = vmatprep.subr.bf16.mxu0 %v7114_v61  ;;  %v511_v61 = vld [vmem:[#allocation3 + $0x1b8] sm:$0xff] }
 0x20f   : > { %4040 = vmatpush2.bf16.msra.mxu1 %v7249_v59  ;;  %v507_v59 = vld [vmem:[#allocation3 + $0x198] sm:$0xff] }
 0x210   : > { %4041 = vmatprep.subr.bf16.mxu1 %v7242_v62  ;;  %v635_v62 = vld [vmem:[#allocation3 + $0x598] sm:$0xff] }
 0x211   : > { %4001 = vmatpush2.bf16.msra.mxu0 %v7113_v25  ;;  %v6804_v25 = vcombine.high %v507_v59, %v511_v61  ;;  %v6931_v19 = vcombine.low %v635_v62, %v639_v0  ;;  %v611_v63 = vld [vmem:[#allocation3 + $0x4d8] sm:$0xff] }
 0x212   : > { %4002 = vmatprep.subr.bf16.mxu0 %v7106_v7  ;;  %v6932_v7 = vcombine.high %v635_v62, %v639_v0  ;;  %v475_v47 = vld [vmem:[#allocation3 + $0x98] sm:$0xff] }
 0x213   : > { %4042 = vmatpush2.bf16.msra.mxu1 %v7241_v6  ;;  %v985_v6 = vrot.slane %v8698_v30, %v984_v57  ;;  %v479_v48 = vld [vmem:[#allocation3 + $0xb8] sm:$0xff] }
 0x214   : > { %4043 = vmatprep.subr.bf16.mxu1 %v7234_v8  ;;  %v499_v8 = vld [vmem:[#allocation3 + $0x158] sm:$0xff]  ;;  %v6771_v62 = vcombine.low %v475_v47, %v479_v48 }
 0x215   : > { %4003 = vmatpush2.bf16.msra.mxu0 %v7105_v14  ;;  %v6796_v20 = vcombine.high %v499_v8, %v503_v9  ;;  %v603_v49 = vld [vmem:[#allocation3 + $0x498] sm:$0xff] }
 0x216   : > { %4004 = vmatprep.subr.bf16.mxu0 %v7098_v17  ;;  %v6803_v17 = vcombine.low %v507_v59, %v511_v61  ;;  %v607_v50 = vld [vmem:[#allocation3 + $0x4b8] sm:$0xff] }
 0x217   : > { %4044 = vmatpush2.bf16.msra.mxu1 %v7233_v15  ;;  %v471_v57 = vld [vmem:[#allocation3 + $0x78] sm:$0xff]  ;;  %v6899_v0 = vcombine.low %v603_v49, %v607_v50 }
 0x218   : > { %4045 = vmatprep.subr.bf16.mxu1 %v7226_v18  ;;  %v595_v59 = vld [vmem:[#allocation3 + $0x458] sm:$0xff] }
 0x219   : > { %4005 = vmatpush2.bf16.msra.mxu0 %v7097_v24  ;;  %v6924_v24 = vcombine.high %v627_v12, %v631_v13  ;;  %v599_v61 = vld [vmem:[#allocation3 + $0x478] sm:$0xff] }
 0x21a   : > { %4006 = vmatprep.subr.bf16.mxu0 %v7090_v27  ;;  %v495_v27 = vld [vmem:[#allocation3 + $0x138] sm:$0xff] }
 0x21b   : > { %4046 = vmatpush2.bf16.msra.mxu1 %v7225_v26  ;;  %v491_v26 = vld [vmem:[#allocation3 + $0x118] sm:$0xff] }
 0x21c   : > { %4047 = vmatprep.subr.bf16.mxu1 %v7218_v28 }
 0x21d   : > { %4007 = vmatpush2.bf16.msra.mxu0 %v7089_v53  ;;  %v6795_v53 = vcombine.low %v499_v8, %v503_v9  ;;  %v6891_v9 = vcombine.low %v595_v59, %v599_v61 }
 0x21e   : > { %4008 = vmatprep.subr.bf16.mxu0 %v7082_v37  ;;  %v6923_v37 = vcombine.low %v627_v12, %v631_v13  ;;  %v579_v13 = vld [vmem:[#allocation3 + $0x3d8] sm:$0xff] }
 0x21f   : > { %4048 = vmatpush2.bf16.msra.mxu1 %v7217_v35 }
 0x220   : > { %4049 = vmatprep.subr.bf16.mxu1 %v7210_v38  ;;  %v6788_v38 = vcombine.high %v491_v26, %v495_v27 }
 0x221   : > { %4009 = vmatpush2.bf16.msra.mxu0 %v7081_v43  ;;  %v615_v43 = vld [vmem:[#allocation3 + $0x4f8] sm:$0xff] }
 0x222   : > { %4010 = vmatprep.subr.bf16.mxu0 %v7074_v45  ;;  %v6907_v51 = vcombine.low %v611_v63, %v615_v43 }
 0x223   : > { %4050 = vmatpush2.bf16.msra.mxu1 %v7209_v60  ;;  %v6787_v60 = vcombine.low %v491_v26, %v495_v27  ;;  %v699_v26 = vld [vmem:[#allocation3 + $0x798] sm:$0xff] }
 0x224   : > { %4051 = vmatprep.subr.bf16.mxu1 %v7202_v5  ;;  %v6908_v5 = vcombine.high %v611_v63, %v615_v43  ;;  %v703_v27 = vld [vmem:[#allocation3 + $0x7b8] sm:$0xff] }
 0x225   : > { %4011 = vmatpush2.bf16.msra.mxu0 %v7073_v4  ;;  %v555_v63 = vld [vmem:[#allocation3 + $0x318] sm:$0xff] }
 0x226   : > { %4062 = vmatprep.subr.bf16.mxu0 %v6812_v54  ;;  %v6900_v54 = vcombine.high %v603_v49, %v607_v50  ;;  %v559_v43 = vld [vmem:[#allocation3 + $0x338] sm:$0xff] }
 0x227   : > { %4052 = vmatpush2.bf16.msra.mxu1 %v7201_v52  ;;  %v6772_v52 = vcombine.high %v475_v47, %v479_v48  ;;  %v6852_v47 = vcombine.high %v555_v63, %v559_v43  ;;  %v547_v49 = vld [vmem:[#allocation3 + $0x2d8] sm:$0xff] }
 0x228   : > { %4103 = vmatprep.subr.bf16.mxu1 %v6940_v56  ;;  %v3768_v10 = vpop.f32.mrf.mxu0  ;;  %4013 = vmatmul.mubr.bf16.vlgmr.msra.gmra.mxu0 %v8683_v55  ;;  %v467_v56 = vld [vmem:[#allocation3 + $0x58] sm:$0xff] }
 0x229   : > { %v3769_v14 = vadd.f32 %v3768_v10, %v981_v22  ;;  %4063 = vmatpush1.bf16.msra.mxu0 %v6811_v2  ;;  %4094 = vmatprep.mubr.bf16.mxu0 %v8644_v11  ;;  %v487_v11 = vld [vmem:[#allocation3 + $0xf8] sm:$0xff]  ;;  %v6764_v22 = vcombine.high %v467_v56, %v471_v57  ;;  %v6892_v2 = vcombine.high %v595_v59, %v599_v61 }
 0x22a   : > { %v3809_v15 = vpop.f32.mrf.mxu1  ;;  %4054 = vmatmul.mubr.bf16.vlgmr.msra.gmra.mxu1 %v8687_v58  ;;  %v3770_v18 = vpop.f32.mrf.mxu0  ;;  %4064 = vmatprep.subr.bf16.mxu0 %v6804_v25  ;;  %v6780_v45 = vcombine.high %v483_v41, %v487_v11  ;;  %v6779_v4 = vcombine.low %v483_v41, %v487_v11  ;;  %v463_v25 = vld [vmem:[#allocation3 + $0x38] sm:$0xff]  ;;  %v6763_v8 = vcombine.low %v467_v56, %v471_v57 }
 0x22b   : > { %4104 = vmatpush1.bf16.msra.mxu1 %v6939_v3  ;;  %v8725_v30 = vadd.f32 %v3809_v15, %v3769_v14  ;;  %v3771_v21 = vadd.f32 %v3770_v18, %v985_v6  ;;  %4135 = vmatprep.mubr.bf16.mxu1 %v8649_v16  ;;  %v6915_v16 = vcombine.low %v619_v29, %v623_v31  ;;  %v459_v3 = vld [vmem:[#allocation3 + $0x18] sm:$0xff] }
 0x22c   : > { %v3811_v23 = vpop.f32.mrf.mxu1  ;;  %4105 = vmatprep.subr.bf16.mxu1 %v6932_v7  ;;  %v3772_v28 = vpop.f32.mrf.mxu0  ;;  %v587_v6 = vld [vmem:[#allocation3 + $0x418] sm:$0xff]  ;;  %v6756_v10 = vcombine.high %v459_v3, %v463_v25  ;;  %v6755_v18 = vcombine.low %v459_v3, %v463_v25 }
 0x22d   : > { %v8729_v32 = vadd.f32 %v3811_v23, %v3771_v21  ;;  %4065 = vmatpush1.bf16.msra.mxu0 %v6803_v17  ;;  %v591_v7 = vld [vmem:[#allocation3 + $0x438] sm:$0xff] }
 0x22e   : > { %v3813_v34 = vpop.f32.mrf.mxu1  ;;  %v3773_v35 = vpop.f32.mrf.mxu0  ;;  %4066 = vmatprep.subr.bf16.mxu0 %v6796_v20  ;;  %v6884_v12 = vcombine.high %v587_v6, %v591_v7  ;;  %v583_v14 = vld [vmem:[#allocation3 + $0x3f8] sm:$0xff] }
 0x22f   : > { %4106 = vmatpush1.bf16.msra.mxu1 %v6931_v19  ;;  %v707_v15 = vld [vmem:[#allocation3 + $0x7d8] sm:$0xff]  ;;  %v6883_v19 = vcombine.low %v587_v6, %v591_v7  ;;  %v6876_v20 = vcombine.high %v579_v13, %v583_v14  ;;  %v6875_v28 = vcombine.low %v579_v13, %v583_v14  ;;  %v6996_v34 = vcombine.high %v699_v26, %v703_v27 }
 0x230   : > { %v3814_v39 = vpop.f32.mrf.mxu1  ;;  %4107 = vmatprep.subr.bf16.mxu1 %v6924_v24  ;;  %v711_v17 = vld [vmem:[#allocation3 + $0x7f8] sm:$0xff] }
 0x231   : > { %4067 = vmatpush1.bf16.msra.mxu0 %v6795_v53  ;;  %v7004_v21 = vcombine.high %v707_v15, %v711_v17  ;;  %v571_v23 = vld [vmem:[#allocation3 + $0x398] sm:$0xff]  ;;  %v7003_v29 = vcombine.low %v707_v15, %v711_v17 }
 0x232   : > { %4068 = vmatprep.subr.bf16.mxu0 %v6788_v38  ;;  %v575_v24 = vld [vmem:[#allocation3 + $0x3b8] sm:$0xff] }
 0x233   : > { %4108 = vmatpush1.bf16.msra.mxu1 %v6923_v37  ;;  %v6868_v31 = vcombine.high %v571_v23, %v575_v24  ;;  %v563_v53 = vld [vmem:[#allocation3 + $0x358] sm:$0xff]  ;;  %v6867_v39 = vcombine.low %v571_v23, %v575_v24 }
 0x234   : > { %4109 = vmatprep.subr.bf16.mxu1 %v6916_v40  ;;  %v567_v35 = vld [vmem:[#allocation3 + $0x378] sm:$0xff]  ;;  %v6995_v40 = vcombine.low %v699_v26, %v703_v27 }
 0x235   : > { %4069 = vmatpush1.bf16.msra.mxu0 %v6787_v60  ;;  %v691_v37 = vld [vmem:[#allocation3 + $0x758] sm:$0xff]  ;;  %v6860_v41 = vcombine.high %v563_v53, %v567_v35 }
 0x236   : > { %4070 = vmatprep.subr.bf16.mxu0 %v6780_v45  ;;  %v695_v38 = vld [vmem:[#allocation3 + $0x778] sm:$0xff]  ;;  %v6859_v45 = vcombine.low %v563_v53, %v567_v35 }
 0x237   : > { %4110 = vmatpush1.bf16.msra.mxu1 %v6915_v16  ;;  %v6988_v11 = vcombine.high %v691_v37, %v695_v38  ;;  %v683_v60 = vld [vmem:[#allocation3 + $0x718] sm:$0xff] }
 0x238   : > { %4111 = vmatprep.subr.bf16.mxu1 %v6908_v5  ;;  %v687_v16 = vld [vmem:[#allocation3 + $0x738] sm:$0xff]  ;;  %v6987_v5 = vcombine.low %v691_v37, %v695_v38 }
 0x239   : > { %4071 = vmatpush1.bf16.msra.mxu0 %v6779_v4  ;;  %v6980_v48 = vcombine.high %v683_v60, %v687_v16  ;;  %v551_v50 = vld [vmem:[#allocation3 + $0x2f8] sm:$0xff] }
 0x23a   : > { %4072 = vmatprep.subr.bf16.mxu0 %v6772_v52  ;;  %v675_v4 = vld [vmem:[#allocation3 + $0x6d8] sm:$0xff]  ;;  %v6851_v52 = vcombine.low %v555_v63, %v559_v43  ;;  %v6844_v56 = vcombine.high %v547_v49, %v551_v50  ;;  %v8374_v43 = vmov 1966171168  }
 0x23b   : > { %4112 = vmatpush1.bf16.msra.mxu1 %v6907_v51  ;;  %v679_v51 = vld [vmem:[#allocation3 + $0x6f8] sm:$0xff] }
 0x23c   : > { %4113 = vmatprep.subr.bf16.mxu1 %v6900_v54  ;;  %v6979_v54 = vcombine.low %v683_v60, %v687_v16  ;;  %v6972_v57 = vcombine.high %v675_v4, %v679_v51  ;;  %v539_v59 = vld [vmem:[#allocation3 + $0x298] sm:$0xff]  ;;  %v4255_v60 = vunpack.c.l.s4 %v8374_v43 }
 0x23d   : > { %4073 = vmatpush1.bf16.msra.mxu0 %v6771_v62  ;;  %v543_v61 = vld [vmem:[#allocation3 + $0x2b8] sm:$0xff] }
 0x23e   : > { %4074 = vmatprep.subr.bf16.mxu0 %v6764_v22  ;;  %v667_v62 = vld [vmem:[#allocation3 + $0x698] sm:$0xff]  ;;  %v6843_v22 = vcombine.low %v547_v49, %v551_v50  ;;  %v6836_v3 = vcombine.high %v539_v59, %v543_v61 }
 0x23f   : > { %4114 = vmatpush1.bf16.msra.mxu1 %v6899_v0  ;;  %v671_v0 = vld [vmem:[#allocation3 + $0x6b8] sm:$0xff] }
 0x240   : > { %4115 = vmatprep.subr.bf16.mxu1 %v6892_v2  ;;  %v6971_v2 = vcombine.low %v675_v4, %v679_v51  ;;  %v6964_v25 = vcombine.high %v667_v62, %v671_v0  ;;  %v531_v6 = vld [vmem:[#allocation3 + $0x258] sm:$0xff] }
 0x241   : > { %4075 = vmatpush1.bf16.msra.mxu0 %v6763_v8  ;;  %v535_v7 = vld [vmem:[#allocation3 + $0x278] sm:$0xff] }
 0x242   : > { %4076 = vmatprep.subr.bf16.mxu0 %v6756_v10  ;;  %v659_v8 = vld [vmem:[#allocation3 + $0x658] sm:$0xff]  ;;  %v6835_v10 = vcombine.low %v539_v59, %v543_v61  ;;  %v6828_v13 = vcombine.high %v531_v6, %v535_v7 }
 0x243   : > { %4116 = vmatpush1.bf16.msra.mxu1 %v6891_v9  ;;  %v663_v9 = vld [vmem:[#allocation3 + $0x678] sm:$0xff] }
 0x244   : > { %4117 = vmatprep.subr.bf16.mxu1 %v6884_v12  ;;  %v6963_v12 = vcombine.low %v667_v62, %v671_v0  ;;  %v6956_v14 = vcombine.high %v659_v8, %v663_v9  ;;  %v523_v15 = vld [vmem:[#allocation3 + $0x218] sm:$0xff] }
 0x245   : > { %4077 = vmatpush1.bf16.msra.mxu0 %v6755_v18  ;;  %v527_v17 = vld [vmem:[#allocation3 + $0x238] sm:$0xff] }
 0x246   : > { %4078 = vmatprep.subr.bf16.mxu0 %v6876_v20  ;;  %v651_v18 = vld [vmem:[#allocation3 + $0x618] sm:$0xff]  ;;  %v6827_v20 = vcombine.low %v531_v6, %v535_v7  ;;  %v6820_v23 = vcombine.high %v523_v15, %v527_v17 }
 0x247   : > { %4118 = vmatpush1.bf16.msra.mxu1 %v6883_v19  ;;  %v655_v19 = vld [vmem:[#allocation3 + $0x638] sm:$0xff] }
 0x248   : > { %4119 = vmatprep.subr.bf16.mxu1 %v7004_v21  ;;  %v6955_v21 = vcombine.low %v659_v8, %v663_v9  ;;  %v6948_v24 = vcombine.high %v651_v18, %v655_v19  ;;  %v771_v26 = vld [vmem:[#allocation3 + $0x9d8] sm:$0xff] }
 0x249   : > { %4079 = vmatpush2.bf16.msra.mxu0 %v6875_v28  ;;  %v775_v27 = vld [vmem:[#allocation3 + $0x9f8] sm:$0xff] }
 0x24a   : > { %4080 = vmatprep.subr.bf16.mxu0 %v6868_v31  ;;  %v899_v28 = vld [vmem:[#allocation3 + $0xdd8] sm:$0xff]  ;;  %v6819_v31 = vcombine.low %v523_v15, %v527_v17  ;;  %v7068_v53 = vcombine.high %v771_v26, %v775_v27 }
 0x24b   : > { %4120 = vmatpush2.bf16.msra.mxu1 %v7003_v29  ;;  %v903_v29 = vld [vmem:[#allocation3 + $0xdf8] sm:$0xff] }
 0x24c   : > { %4121 = vmatprep.subr.bf16.mxu1 %v6996_v34  ;;  %v6947_v34 = vcombine.low %v651_v18, %v655_v19  ;;  %v7196_v35 = vcombine.high %v899_v28, %v903_v29  ;;  %v763_v37 = vld [vmem:[#allocation3 + $0x998] sm:$0xff] }
 0x24d   : > { %4081 = vmatpush2.bf16.msra.mxu0 %v6867_v39  ;;  %v767_v38 = vld [vmem:[#allocation3 + $0x9b8] sm:$0xff] }
 0x24e   : > { %4082 = vmatprep.subr.bf16.mxu0 %v6860_v41  ;;  %v891_v39 = vld [vmem:[#allocation3 + $0xd98] sm:$0xff]  ;;  %v7067_v41 = vcombine.low %v771_v26, %v775_v27  ;;  %v7060_v63 = vcombine.high %v763_v37, %v767_v38  ;;  %v7059_v51 = vcombine.low %v763_v37, %v767_v38 }
 0x24f   : > { %4122 = vmatpush2.bf16.msra.mxu1 %v6995_v40  ;;  %v895_v40 = vld [vmem:[#allocation3 + $0xdb8] sm:$0xff] }
 0x250   : > { %4123 = vmatprep.subr.bf16.mxu1 %v6988_v11  ;;  %v7195_v11 = vcombine.low %v899_v28, %v903_v29  ;;  %v7188_v16 = vcombine.high %v891_v39, %v895_v40  ;;  %v887_v49 = vld [vmem:[#allocation3 + $0xd78] sm:$0xff] }
 0x251   : > { %4083 = vmatpush2.bf16.msra.mxu0 %v6859_v45  ;;  %v755_v45 = vld [vmem:[#allocation3 + $0x958] sm:$0xff] }
 0x252   : > { %4084 = vmatprep.subr.bf16.mxu0 %v6852_v47  ;;  %v747_v0 = vld [vmem:[#allocation3 + $0x918] sm:$0xff] }
 0x253   : > { %4124 = vmatpush2.bf16.msra.mxu1 %v6987_v5  ;;  %v759_v5 = vld [vmem:[#allocation3 + $0x978] sm:$0xff] }
 0x254   : > { %4125 = vmatprep.subr.bf16.mxu1 %v6980_v48  ;;  %v883_v48 = vld [vmem:[#allocation3 + $0xd58] sm:$0xff]  ;;  %v7051_v6 = vcombine.low %v755_v45, %v759_v5 }
 0x255   : > { %4085 = vmatpush2.bf16.msra.mxu0 %v6851_v52  ;;  %v743_v15 = vld [vmem:[#allocation3 + $0x8f8] sm:$0xff] }
 0x256   : > { %4086 = vmatprep.subr.bf16.mxu0 %v6844_v56  ;;  %v7052_v56 = vcombine.high %v755_v45, %v759_v5  ;;  %v871_v17 = vld [vmem:[#allocation3 + $0xcf8] sm:$0xff] }
 0x257   : > { %4126 = vmatpush2.bf16.msra.mxu1 %v6979_v54  ;;  %v7187_v54 = vcombine.low %v891_v39, %v895_v40  ;;  %v731_v27 = vld [vmem:[#allocation3 + $0x898] sm:$0xff] }
 0x258   : > { %4127 = vmatprep.subr.bf16.mxu1 %v6972_v57  ;;  %v4256_v57 = vunpack.c.0.s8 %v4255_v60  ;;  %v735_v28 = vld [vmem:[#allocation3 + $0x8b8] sm:$0xff] }
 0x259   : > { %4087 = vmatpush2.bf16.msra.mxu0 %v6843_v22  ;;  %v751_v22 = vld [vmem:[#allocation3 + $0x938] sm:$0xff]  ;;  %v7028_v37 = vcombine.high %v731_v27, %v735_v28 }
 0x25a   : > { %4088 = vmatprep.subr.bf16.mxu0 %v6836_v3  ;;  %v7044_v8 = vcombine.high %v747_v0, %v751_v22  ;;  %v8738_v9 = vsub.s32 %v4256_v57, %v8628_v44  ;;  %v7043_v19 = vcombine.low %v747_v0, %v751_v22  ;;  %v859_v29 = vld [vmem:[#allocation3 + $0xc98] sm:$0xff] }
 0x25b   : > { %4128 = vmatpush2.bf16.msra.mxu1 %v6971_v2  ;;  %v879_v2 = vld [vmem:[#allocation3 + $0xd38] sm:$0xff] }
 0x25c   : > { %4129 = vmatprep.subr.bf16.mxu1 %v6964_v25  ;;  %v723_v39 = vld [vmem:[#allocation3 + $0x858] sm:$0xff] }
 0x25d   : > { %4089 = vmatpush2.bf16.msra.mxu0 %v6835_v10  ;;  %v851_v40 = vld [vmem:[#allocation3 + $0xc58] sm:$0xff] }
 0x25e   : > { %4090 = vmatprep.subr.bf16.mxu0 %v6828_v13  ;;  %v719_v45 = vld [vmem:[#allocation3 + $0x838] sm:$0xff] }
 0x25f   : > { %4130 = vmatpush2.bf16.msra.mxu1 %v6963_v12  ;;  %v843_v5 = vld [vmem:[#allocation3 + $0xc18] sm:$0xff] }
 0x260   : > { %4131 = vmatprep.subr.bf16.mxu1 %v6956_v14  ;;  %v739_v14 = vld [vmem:[#allocation3 + $0x8d8] sm:$0xff] }
 0x261   : > { %4091 = vmatpush2.bf16.msra.mxu0 %v6827_v20  ;;  %v831_v0 = vld [vmem:[#allocation3 + $0xbb8] sm:$0xff] }
 0x262   : > { %4092 = vmatprep.subr.bf16.mxu0 %v6820_v23  ;;  %v4260_v23 = vrot.slane %v8717_v1, %v8738_v9  ;;  %v727_v1 = vld [vmem:[#allocation3 + $0x878] sm:$0xff] }
 0x263   : > { %4132 = vmatpush2.bf16.msra.mxu1 %v6955_v21  ;;  %v7036_v21 = vcombine.high %v739_v14, %v743_v15  ;;  %v7020_v43 = vcombine.high %v723_v39, %v727_v1  ;;  %v955_v22 = vld [vmem:[#allocation3 + $0xf98] sm:$0xff] }
 0x264   : > { %4133 = vmatprep.subr.bf16.mxu1 %v6948_v24 }
 0x265   : > { %4093 = vmatpush2.bf16.msra.mxu0 %v6819_v31  ;;  %v863_v31 = vld [vmem:[#allocation3 + $0xcb8] sm:$0xff] }
 0x266   : > { %4144 = vmatprep.subr.bf16.mxu0 %v7068_v53  ;;  %v7035_v53 = vcombine.low %v739_v14, %v743_v15  ;;  %v7156_v38 = vcombine.high %v859_v29, %v863_v31  ;;  %v811_v14 = vld [vmem:[#allocation3 + $0xb18] sm:$0xff] }
 0x267   : > { %4134 = vmatpush2.bf16.msra.mxu1 %v6947_v34  ;;  %v815_v15 = vld [vmem:[#allocation3 + $0xb38] sm:$0xff] }
 0x268   : > { %4185 = vmatprep.subr.bf16.mxu1 %v7196_v35  ;;  %v3850_v47 = vpop.f32.mrf.mxu0  ;;  %4095 = vmatmul.mubr.bf16.vlgmr.msra.gmra.mxu0 %v8665_v33  ;;  %v7180_v33 = vcombine.high %v883_v48, %v887_v49 }
 0x269   : > { %v3851_v50 = vadd.f32 %v3850_v47, %v8725_v30  ;;  %4145 = vmatpush1.bf16.msra.mxu0 %v7067_v41  ;;  %4176 = vmatprep.mubr.bf16.mxu0 %v8673_v42  ;;  %v855_v41 = vld [vmem:[#allocation3 + $0xc78] sm:$0xff] }
 0x26a   : > { %v3891_v4 = vpop.f32.mrf.mxu1  ;;  %4136 = vmatmul.mubr.bf16.vlgmr.msra.gmra.mxu1 %v8671_v36  ;;  %v3852_v52 = vpop.f32.mrf.mxu0  ;;  %4146 = vmatprep.subr.bf16.mxu0 %v7060_v63  ;;  %v875_v36 = vld [vmem:[#allocation3 + $0xd18] sm:$0xff]  ;;  %v7155_v63 = vcombine.low %v859_v29, %v863_v31  ;;  %v7148_v60 = vcombine.high %v851_v40, %v855_v41 }
 0x26b   : > { %4186 = vmatpush1.bf16.msra.mxu1 %v7195_v11  ;;  %v3892_v59 = vadd.f32 %v3891_v4, %v3851_v50  ;;  %v3853_v61 = vadd.f32 %v3852_v52, %v8729_v32  ;;  %4217 = vmatprep.mubr.bf16.mxu1 %v8676_v46  ;;  %v7179_v32 = vcombine.low %v883_v48, %v887_v49  ;;  %v867_v46 = vld [vmem:[#allocation3 + $0xcd8] sm:$0xff] }
 0x26c   : > { %v3893_v62 = vpop.f32.mrf.mxu1  ;;  %4187 = vmatprep.subr.bf16.mxu1 %v7188_v16  ;;  %v3854_v30 = vpop.f32.mrf.mxu0  ;;  %v7172_v13 = vcombine.high %v875_v36, %v879_v2  ;;  %v7171_v20 = vcombine.low %v875_v36, %v879_v2  ;;  %v7164_v26 = vcombine.high %v867_v46, %v871_v17  ;;  %v7163_v35 = vcombine.low %v867_v46, %v871_v17  ;;  %v715_v16 = vld [vmem:[#allocation3 + $0x818] sm:$0xff] }
 0x26d   : > { %v3894_v3 = vadd.f32 %v3893_v62, %v3853_v61  ;;  %4147 = vmatpush1.bf16.msra.mxu0 %v7059_v51  ;;  %v4228_v10 = vmax.f32 %v3892_v59, 0.0  ;;  %v7027_v11 = vcombine.low %v731_v27, %v735_v28  ;;  %v847_v47 = vld [vmem:[#allocation3 + $0xc38] sm:$0xff]  ;;  %v7019_v48 = vcombine.low %v723_v39, %v727_v1 }
 0x26e   : > { %v3895_v25 = vpop.f32.mrf.mxu1  ;;  %v3855_v7 = vpop.f32.mrf.mxu0  ;;  %4148 = vmatprep.subr.bf16.mxu0 %v7052_v56  ;;  %v7147_v49 = vcombine.low %v851_v40, %v855_v41  ;;  %v7012_v50 = vcombine.high %v715_v16, %v719_v45  ;;  %v7140_v4 = vcombine.high %v843_v5, %v847_v47  ;;  %v835_v51 = vld [vmem:[#allocation3 + $0xbd8] sm:$0xff]  ;;  %v7011_v57 = vcombine.low %v715_v16, %v719_v45 }
 0x26f   : > { %4188 = vmatpush1.bf16.msra.mxu1 %v7187_v54  ;;  %v4229_v12 = vmax.f32 %v3894_v3, 0.0  ;;  %v839_v52 = vld [vmem:[#allocation3 + $0xbf8] sm:$0xff]  ;;  %v7139_v59 = vcombine.low %v843_v5, %v847_v47  ;;  %v7107_v28 = vcombine.low %v811_v14, %v815_v15 }
 0x270   : > { %v3896_v42 = vpop.f32.mrf.mxu1  ;;  %4189 = vmatprep.subr.bf16.mxu1 %v7180_v33  ;;  %v963_v54 = vld [vmem:[#allocation3 + $0xfd8] sm:$0xff]  ;;  %v7132_v61 = vcombine.high %v835_v51, %v839_v52  ;;  %v7131_v36 = vcombine.low %v835_v51, %v839_v52 }
 0x271   : > { %v7262_v18 = vpack.c.bf16 %v4229_v12, %v4228_v10  ;;  %4149 = vmatpush1.bf16.msra.mxu0 %v7051_v6  ;;  %v967_v56 = vld [vmem:[#allocation3 + $0xff8] sm:$0xff] }
 0x272   : > { %4150 = vmatprep.subr.bf16.mxu0 %v7044_v8  ;;  %v7260_v62 = vcombine.high %v963_v54, %v967_v56  ;;  %v827_v33 = vld [vmem:[#allocation3 + $0xb98] sm:$0xff]  ;;  %v7259_v2 = vcombine.low %v963_v54, %v967_v56 }
 0x273   : > { %4190 = vmatpush1.bf16.msra.mxu1 %v7179_v32  ;;  %v4267_v24 = vrot.slane %v7262_v18, %v8738_v9  ;;  %v959_v30 = vld [vmem:[#allocation3 + $0xfb8] sm:$0xff]  ;;  %v7124_v3 = vcombine.high %v827_v33, %v831_v0  ;;  %v7123_v10 = vcombine.low %v827_v33, %v831_v0  ;;  %v992_v33 = vsub.s32 5, %v8628_v44  ;;  %v7704_v0 = vld [vmem:[#allocation6] sm:$0xff] }
 0x274   : > { %4191 = vmatprep.subr.bf16.mxu1 %v7172_v13  ;;  %v7252_v25 = vcombine.high %v955_v22, %v959_v30  ;;  %v819_v6 = vld [vmem:[#allocation3 + $0xb58] sm:$0xff]  ;;  %v7251_v12 = vcombine.low %v955_v22, %v959_v30 }
 0x275   : > { %v8743_v34 = vcombine.low %v4260_v23, %v4267_v24  ;;  %4151 = vmatpush1.bf16.msra.mxu0 %v7043_v19  ;;  %v823_v7 = vld [vmem:[#allocation3 + $0xb78] sm:$0xff]  ;;  %v993_v30 = vrot.slane %v7704_v0, %v992_v33 }
 0x276   : > { %4152 = vmatprep.subr.bf16.mxu0 %v7036_v21  ;;  %v947_v32 = vld [vmem:[#allocation3 + $0xf58] sm:$0xff]  ;;  %v7116_v42 = vcombine.high %v819_v6, %v823_v7  ;;  %v7115_v18 = vcombine.low %v819_v6, %v823_v7 }
 0x277   : > { %4192 = vmatpush1.bf16.msra.mxu1 %v7171_v20  ;;  %v951_v8 = vld [vmem:[#allocation3 + $0xf78] sm:$0xff]  ;;  %v7108_v20 = vcombine.high %v811_v14, %v815_v15 }
 0x278   : > { %4193 = vmatprep.subr.bf16.mxu1 %v7164_v26  ;;  %v7244_v13 = vcombine.high %v947_v32, %v951_v8  ;;  %v939_v46 = vld [vmem:[#allocation3 + $0xf18] sm:$0xff]  ;;  %v7243_v19 = vcombine.low %v947_v32, %v951_v8 }
 0x279   : > { %4153 = vmatpush1.bf16.msra.mxu0 %v7035_v53  ;;  %v943_v17 = vld [vmem:[#allocation3 + $0xf38] sm:$0xff] }
 0x27a   : > { %4154 = vmatprep.subr.bf16.mxu0 %v7028_v37  ;;  %v7236_v21 = vcombine.high %v939_v46, %v943_v17  ;;  %v803_v23 = vld [vmem:[#allocation3 + $0xad8] sm:$0xff]  ;;  %v7235_v29 = vcombine.low %v939_v46, %v943_v17 }
 0x27b   : > { %4194 = vmatpush1.bf16.msra.mxu1 %v7163_v35  ;;  %v807_v24 = vld [vmem:[#allocation3 + $0xaf8] sm:$0xff] }
 0x27c   : > { %4195 = vmatprep.subr.bf16.mxu1 %v7156_v38  ;;  %v931_v26 = vld [vmem:[#allocation3 + $0xed8] sm:$0xff]  ;;  %v7100_v31 = vcombine.high %v803_v23, %v807_v24  ;;  %v7099_v1 = vcombine.low %v803_v23, %v807_v24 }
 0x27d   : > { %4155 = vmatpush1.bf16.msra.mxu0 %v7027_v11  ;;  %v935_v27 = vld [vmem:[#allocation3 + $0xef8] sm:$0xff] }
 0x27e   : > { %4156 = vmatprep.subr.bf16.mxu0 %v7020_v43  ;;  %v7228_v53 = vcombine.high %v931_v26, %v935_v27  ;;  %v795_v35 = vld [vmem:[#allocation3 + $0xa98] sm:$0xff]  ;;  %v7227_v40 = vcombine.low %v931_v26, %v935_v27 }
 0x27f   : > { %4196 = vmatpush1.bf16.msra.mxu1 %v7155_v63  ;;  %v799_v37 = vld [vmem:[#allocation3 + $0xab8] sm:$0xff] }
 0x280   : > { %4197 = vmatprep.subr.bf16.mxu1 %v7148_v60  ;;  %v923_v38 = vld [vmem:[#allocation3 + $0xe98] sm:$0xff]  ;;  %v7092_v41 = vcombine.high %v795_v35, %v799_v37  ;;  %v7091_v45 = vcombine.low %v795_v35, %v799_v37 }
 0x281   : > { %4157 = vmatpush1.bf16.msra.mxu0 %v7019_v48  ;;  %v927_v39 = vld [vmem:[#allocation3 + $0xeb8] sm:$0xff] }
 0x282   : > { %4158 = vmatprep.subr.bf16.mxu0 %v7012_v50  ;;  %v7220_v11 = vcombine.high %v923_v38, %v927_v39  ;;  %v787_v63 = vld [vmem:[#allocation3 + $0xa58] sm:$0xff]  ;;  %v7219_v5 = vcombine.low %v923_v38, %v927_v39 }
 0x283   : > { %4198 = vmatpush1.bf16.msra.mxu1 %v7147_v49  ;;  %v791_v43 = vld [vmem:[#allocation3 + $0xa78] sm:$0xff] }
 0x284   : > { %4199 = vmatprep.subr.bf16.mxu1 %v7140_v4  ;;  %v915_v60 = vld [vmem:[#allocation3 + $0xe58] sm:$0xff]  ;;  %v7084_v47 = vcombine.high %v787_v63, %v791_v43  ;;  %v7083_v52 = vcombine.low %v787_v63, %v791_v43 }
 0x285   : > { %4159 = vmatpush1.bf16.msra.mxu0 %v7011_v57  ;;  %v919_v16 = vld [vmem:[#allocation3 + $0xe78] sm:$0xff] }
 0x286   : > { %4160 = vmatprep.subr.bf16.mxu0 %v7132_v61  ;;  %v7212_v48 = vcombine.high %v915_v60, %v919_v16  ;;  %v779_v49 = vld [vmem:[#allocation3 + $0xa18] sm:$0xff]  ;;  %v7211_v54 = vcombine.low %v915_v60, %v919_v16  ;;  %v988_v61 = vsub.s32 4, %v8628_v44 }
 0x287   : > { %4200 = vmatpush1.bf16.msra.mxu1 %v7139_v59  ;;  %v783_v50 = vld [vmem:[#allocation3 + $0xa38] sm:$0xff] }
 0x288   : > { %4201 = vmatprep.subr.bf16.mxu1 %v7260_v62  ;;  %v907_v4 = vld [vmem:[#allocation3 + $0xe18] sm:$0xff]  ;;  %v7076_v56 = vcombine.high %v779_v49, %v783_v50  ;;  %v7075_v59 = vcombine.low %v779_v49, %v783_v50  ;;  %v989_v22 = vrot.slane %v7704_v0, %v988_v61 }
 0x289   : > { %4161 = vmatpush2.bf16.msra.mxu0 %v7131_v36  ;;  %v911_v51 = vld [vmem:[#allocation3 + $0xe38] sm:$0xff] }
 0x28a   : > { %4162 = vmatprep.subr.bf16.mxu0 %v7124_v3  ;;  %v7204_v57 = vcombine.high %v907_v4, %v911_v51  ;;  %v7203_v62 = vcombine.low %v907_v4, %v911_v51 }
 0x28b   : > { %4202 = vmatpush2.bf16.msra.mxu1 %v7259_v2 }
 0x28c   : > { %4203 = vmatprep.subr.bf16.mxu1 %v7252_v25 }
 0x28d   : > { %4163 = vmatpush2.bf16.msra.mxu0 %v7123_v10 }
 0x28e   : > { %4164 = vmatprep.subr.bf16.mxu0 %v7116_v42 }
 0x28f   : > { %4204 = vmatpush2.bf16.msra.mxu1 %v7251_v12 }
 0x290   : > { %4205 = vmatprep.subr.bf16.mxu1 %v7244_v13 }
 0x291   : > { %4165 = vmatpush2.bf16.msra.mxu0 %v7115_v18 }
 0x292   : > { %4166 = vmatprep.subr.bf16.mxu0 %v7108_v20 }
 0x293   : > { %4206 = vmatpush2.bf16.msra.mxu1 %v7243_v19 }
 0x294   : > { %4207 = vmatprep.subr.bf16.mxu1 %v7236_v21 }
 0x295   : > { %4167 = vmatpush2.bf16.msra.mxu0 %v7107_v28 }
 0x296   : > { %4168 = vmatprep.subr.bf16.mxu0 %v7100_v31 }
 0x297   : > { %4208 = vmatpush2.bf16.msra.mxu1 %v7235_v29  ;;  %v7265_v29 = vld [vmem:[#allocation11] ss:$0 sm:$0xff] }
 0x298   : > { %4209 = vmatprep.subr.bf16.mxu1 %v7228_v53  ;;  %4308 = vst [vmem:[#allocation12] sm:$0x3] %v7265_v29 }
 0x299   : > { %4169 = vmatpush2.bf16.msra.mxu0 %v7099_v1 }
 0x29a   : > { %4170 = vmatprep.subr.bf16.mxu0 %v7092_v41  ;;  %v996_v41 = vsub.s32 6, %v8628_v44 }
 0x29b   : > { %4210 = vmatpush2.bf16.msra.mxu1 %v7227_v40 }
 0x29c   : > { %4211 = vmatprep.subr.bf16.mxu1 %v7220_v11  ;;  %v1000_v11 = vsub.s32 7, %v8628_v44  ;;  %v997_v63 = vrot.slane %v7704_v0, %v996_v41 }
 0x29d   : > { %4171 = vmatpush2.bf16.msra.mxu0 %v7091_v45 }
 0x29e   : > { %4172 = vmatprep.subr.bf16.mxu0 %v7084_v47  ;;  %v1001_v43 = vrot.slane %v7704_v0, %v1000_v11 }
 0x29f   : > { %4212 = vmatpush2.bf16.msra.mxu1 %v7219_v5 }
 0x2a0   : > { %4213 = vmatprep.subr.bf16.mxu1 %v7212_v48 }
 0x2a1   : > { %4173 = vmatpush2.bf16.msra.mxu0 %v7083_v52 }
 0x2a2   : > { %4174 = vmatprep.subr.bf16.mxu0 %v7076_v56 }
 0x2a3   : > { %4214 = vmatpush2.bf16.msra.mxu1 %v7211_v54 }
 0x2a4   : > { %4215 = vmatprep.subr.bf16.mxu1 %v7204_v57 }
 0x2a5   : > { %4175 = vmatpush2.bf16.msra.mxu0 %v7075_v59 }
 0x2a7   : > { %4216 = vmatpush2.bf16.msra.mxu1 %v7203_v62 }
 0x2a8   : > { %v3932_v36 = vpop.f32.mrf.mxu0  ;;  %4177 = vmatmul.mubr.bf16.vlgmr.msra.gmra.mxu0 %v8683_v55 }
 0x2a9   : > { %v3933_v2 = vadd.f32 %v3932_v36, %v989_v22  ;;  %v4290_v36 = vrot.slane %v8743_v34, %v8738_v9 }
 0x2aa   : > { %v3973_v3 = vpop.f32.mrf.mxu1  ;;  %4218 = vmatmul.mubr.bf16.vlgmr.msra.gmra.mxu1 %v8687_v58  ;;  %v3934_v25 = vpop.f32.mrf.mxu0 }
 0x2ab   : > { %v3974_v6 = vadd.f32 %v3973_v3, %v3933_v2  ;;  %v3935_v7 = vadd.f32 %v3934_v25, %v993_v30 }
 0x2ac   : > { %v3975_v32 = vpop.f32.mrf.mxu1  ;;  %v3936_v8 = vpop.f32.mrf.mxu0 }
 0x2ad   : > { %v3976_v10 = vadd.f32 %v3975_v32, %v3935_v7 }
 0x2ae   : > { %v3977_v12 = vpop.f32.mrf.mxu1  ;;  %v3937_v42 = vpop.f32.mrf.mxu0 }
 0x2b0   : > { %v3978_v13 = vpop.f32.mrf.mxu1 }
 0x2e8   : > { %v4014_v14 = vpop.f32.mrf.mxu0 }
 0x2e9   : > { %v4015_v15 = vadd.f32 %v4014_v14, %v3974_v6 }
 0x2ea   : > { %v4055_v46 = vpop.f32.mrf.mxu1  ;;  %v4016_v17 = vpop.f32.mrf.mxu0 }
 0x2eb   : > { %v4056_v18 = vadd.f32 %v4055_v46, %v4015_v15  ;;  %v4017_v19 = vadd.f32 %v4016_v17, %v3976_v10 }
 0x2ec   : > { %v4057_v55 = vpop.f32.mrf.mxu1  ;;  %v4018_v20 = vpop.f32.mrf.mxu0 }
 0x2ed   : > { %v4058_v21 = vadd.f32 %v4057_v55, %v4017_v19  ;;  %v4230_v24 = vmax.f32 %v4056_v18, 0.0 }
 0x2ee   : > { %v4059_v23 = vpop.f32.mrf.mxu1  ;;  %v4019_v58 = vpop.f32.mrf.mxu0 }
 0x2ef   : > { %v4231_v26 = vmax.f32 %v4058_v21, 0.0 }
 0x2f0   : > { %v4060_v27 = vpop.f32.mrf.mxu1 }
 0x2f1   : > { %v7263_v28 = vpack.c.bf16 %v4231_v26, %v4230_v24 }
 0x2f3   : > { %v4274_v0 = vrot.slane %v7263_v28, %v8738_v9 }
 0x328   : > { %v4096_v31 = vpop.f32.mrf.mxu0 }
 0x329   : > { %v4097_v60 = vadd.f32 %v4096_v31, %v997_v63 }
 0x32a   : > { %v4137_v53 = vpop.f32.mrf.mxu1  ;;  %v4098_v35 = vpop.f32.mrf.mxu0 }
 0x32b   : > { %v4099_v16 = vadd.f32 %v4098_v35, %v1001_v43  ;;  %v4138_v45 = vadd.f32 %v4137_v53, %v4097_v60 }
 0x32c   : > { %v4139_v37 = vpop.f32.mrf.mxu1  ;;  %v4100_v38 = vpop.f32.mrf.mxu0 }
 0x32d   : > { %v4140_v47 = vadd.f32 %v4139_v37, %v4099_v16 }
 0x32e   : > { %v4141_v39 = vpop.f32.mrf.mxu1  ;;  %v4101_v1 = vpop.f32.mrf.mxu0 }
 0x330   : > { %v4142_v40 = vpop.f32.mrf.mxu1 }
 0x368   : > { %v4178_v5 = vpop.f32.mrf.mxu0 }
 0x369   : > { %v4179_v48 = vadd.f32 %v4178_v5, %v4138_v45 }
 0x36a   : > { %v4219_v49 = vpop.f32.mrf.mxu1  ;;  %v4180_v50 = vpop.f32.mrf.mxu0 }
 0x36b   : > { %v4220_v4 = vadd.f32 %v4219_v49, %v4179_v48  ;;  %v4181_v51 = vadd.f32 %v4180_v50, %v4140_v47 }
 0x36c   : > { %v4221_v52 = vpop.f32.mrf.mxu1  ;;  %v4182_v54 = vpop.f32.mrf.mxu0 }
 0x36d   : > { %v4222_v56 = vadd.f32 %v4221_v52, %v4181_v51  ;;  %v4232_v61 = vmax.f32 %v4220_v4, 0.0 }
 0x36e   : > { %v4223_v57 = vpop.f32.mrf.mxu1  ;;  %v4183_v59 = vpop.f32.mrf.mxu0 }
 0x36f   : > { %v4233_v62 = vmax.f32 %v4222_v56, 0.0 }
 0x370   : > { %v4224_v44 = vpop.f32.mrf.mxu1 }
 0x371   : > { %v7264_v33 = vpack.c.bf16 %v4233_v62, %v4232_v61 }
 0x373   : > { %v4281_v22 = vrot.slane %v7264_v33, %v8738_v9 }
 0x375   : > { %v4283_v30 = vcombine.low %v4274_v0, %v4281_v22 }
 0x377   : > { %v4297_v2 = vrot.slane %v4283_v30, %v8738_v9 }
 0x379   : > { %v4298_v3 = vcombine.low %v4290_v36, %v4297_v2 }
 0x37b   : > { %4300 = vst [vmem:[#allocation2] sm:$0xff] %v4298_v3 }
 0x37c PF: > { %v7705_v25 = vld [vmem:[%s8612_s27 + $0xe4] ss:$16 sps:$4 sm:$0xff]   ;;  %v7709_v34 = vld [vmem:[%s8612_s27 + $0xe0] ss:$16 sps:$4 sm:$0xff]   ;;  %v4568_v11 = vlaneseq  ;;  %v8375_v63 = vmov 1966171168  }
 0x37d   : > { %v7707_v6 = vld [vmem:[%s8612_s27 + $0x2e4] ss:$16 sps:$4 sm:$0xff]   ;;  %5926 = vmatprep.subr.bf16.mxu0 %v7705_v25  ;;  %v7710_v9 = vld [vmem:[%s8612_s27 + $0x2e0] ss:$16 sps:$4 sm:$0xff]   ;;  %v4591_v43 = vunpack.c.l.s4 %v8375_v63  ;;  %s8376_s13 = smov [#allocation12]   ;;  %p7654_p2 = scmp.eq.s32.totalorder %s8436_s28, 3 }
 0x37e   : > { %5967 = vmatprep.subr.bf16.mxu1 %v7707_v6  ;;  %v7711_v7 = vld [vmem:[%s8612_s27 + $0xc4] ss:$16 sps:$4 sm:$0xff]   ;;  %5927 = vmatpush1.bf16.msra.mxu0 %v7709_v34  ;;  %v7715_v8 = vld [vmem:[%s8612_s27 + $0xc0] ss:$16 sps:$4 sm:$0xff]   ;;  %v8795_v5 = vshrl.u32 %v4568_v11, 7  ;;  %s6608_s10 = sshll.u32 %s8376_s13, 4  ;;  %s6609_s10 = int_to_ptr.vmem [resolvable:$true] %s6608_s10 }
 0x37f   : > { %5968 = vmatpush1.bf16.msra.mxu1 %v7710_v9  ;;  %v7713_v32 = vld [vmem:[%s8612_s27 + $0x2c4] ss:$16 sps:$4 sm:$0xff]   ;;  %5928 = vmatprep.subr.bf16.mxu0 %v7711_v7  ;;  %v7716_v10 = vld [vmem:[%s8612_s27 + $0x2c0] ss:$16 sps:$4 sm:$0xff]   ;;  %v4592_v47 = vunpack.c.0.s8 %v4591_v43  ;;  %s8284_s29 = scalar_lea.vmem %s6609_s10, 32  ;;  %p8291_p11 = scmp.lt.s32.totalorder %s6609_s10, %s6609_s10 }
 0x380   : > { %5969 = vmatprep.subr.bf16.mxu1 %v7713_v32  ;;  %v7717_v12 = vld [vmem:[%s8612_s27 + $0xa4] ss:$16 sps:$4 sm:$0xff]   ;;  %v7721_v13 = vld [vmem:[%s8612_s27 + $0xa0] ss:$16 sps:$4 sm:$0xff]   ;;  %p8285_p3 = scmp.ne.s32.totalorder %s6609_s10, %s8284_s29  ;;  %p8292_p5 = scmp.lt.s32.totalorder %s8284_s29, %s8284_s29 }
 0x381   : > { %v7719_v42 = vld [vmem:[%s8612_s27 + $0x2a4] ss:$16 sps:$4 sm:$0xff]   ;;  %v7722_v14 = vld [vmem:[%s8612_s27 + $0x2a0] ss:$16 sps:$4 sm:$0xff]   ;;  %v4595_v52 = vsub.s32 %v4592_v47, %v8795_v5 }
 0x382   : > { %5929 = vmatpush1.bf16.msra.mxu0 %v7715_v8  ;;  %v7723_v15 = vld [vmem:[%s8612_s27 + $0x84] ss:$16 sps:$4 sm:$0xff]   ;;  %v7727_v17 = vld [vmem:[%s8612_s27 + $0x80] ss:$16 sps:$4 sm:$0xff]   ;;  %p8286_p6 = pnand %p8285_p3, %p7654_p2  ;;  %p8293_p4 = por %p8292_p5, %p8291_p11 }
 0x383   : > { %5970 = vmatpush1.bf16.msra.mxu1 %v7716_v10  ;;  %5930 = vmatprep.subr.bf16.mxu0 %v7717_v12  ;;  %v7725_v46 = vld [vmem:[%s8612_s27 + $0x284] ss:$16 sps:$4 sm:$0xff]   ;;  %v7728_v18 = vld [vmem:[%s8612_s27 + $0x280] ss:$16 sps:$4 sm:$0xff]  }
 0x384   : > { %5971 = vmatprep.subr.bf16.mxu1 %v7719_v42  ;;  %v7729_v19 = vld [vmem:[%s8612_s27 + $0x64] ss:$16 sps:$4 sm:$0xff]   ;;  %v7733_v20 = vld [vmem:[%s8612_s27 + $0x60] ss:$16 sps:$4 sm:$0xff]   ;;  %p8287_p7 = pneg %p8286_p6 }
 0x385   : > { %v7731_v55 = vld [vmem:[%s8612_s27 + $0x264] ss:$16 sps:$4 sm:$0xff]   ;;  %v7734_v21 = vld [vmem:[%s8612_s27 + $0x260] ss:$16 sps:$4 sm:$0xff]  }
 0x386   : > { %5931 = vmatpush1.bf16.msra.mxu0 %v7721_v13  ;;  %v7735_v23 = vld [vmem:[%s8612_s27 + $0x44] ss:$16 sps:$4 sm:$0xff]   ;;  %v7739_v24 = vld [vmem:[%s8612_s27 + $0x40] ss:$16 sps:$4 sm:$0xff]   ;;  %p8294_p9 = pnand %p8293_p4, %p8287_p7 }
 0x387   : > { %5972 = vmatpush1.bf16.msra.mxu1 %v7722_v14  ;;  %5932 = vmatprep.subr.bf16.mxu0 %v7723_v15  ;;  %v7737_v58 = vld [vmem:[%s8612_s27 + $0x244] ss:$16 sps:$4 sm:$0xff]   ;;  %v7740_v26 = vld [vmem:[%s8612_s27 + $0x240] ss:$16 sps:$4 sm:$0xff]  }
 0x388   : > { %5973 = vmatprep.subr.bf16.mxu1 %v7725_v46  ;;  %v7741_v27 = vld [vmem:[%s8612_s27 + $0x24] ss:$16 sps:$4 sm:$0xff]   ;;  %v7745_v29 = vld [vmem:[%s8612_s27 + $0x20] ss:$16 sps:$4 sm:$0xff]  }
 0x389   : > { %v7743_v28 = vld [vmem:[%s8612_s27 + $0x224] ss:$16 sps:$4 sm:$0xff]   ;;  %v7746_v31 = vld [vmem:[%s8612_s27 + $0x220] ss:$16 sps:$4 sm:$0xff]  }
 0x38a   : > { %5933 = vmatpush1.bf16.msra.mxu0 %v7727_v17  ;;  %v7747_v53 = vld [vmem:[%s8612_s27 + $0x4] ss:$16 sps:$4 sm:$0xff]   ;;  %v7751_v37 = vld [vmem:[%s8612_s27] ss:$16 sps:$4 sm:$0xff]  }
 0x38b   : > { %5974 = vmatpush1.bf16.msra.mxu1 %v7728_v18  ;;  %5934 = vmatprep.subr.bf16.mxu0 %v7729_v19  ;;  %v7749_v35 = vld [vmem:[%s8612_s27 + $0x204] ss:$16 sps:$4 sm:$0xff]   ;;  %v7752_v38 = vld [vmem:[%s8612_s27 + $0x200] ss:$16 sps:$4 sm:$0xff]  }
 0x38c   : > { %5975 = vmatprep.subr.bf16.mxu1 %v7731_v55  ;;  %v7753_v39 = vld [vmem:[%s8612_s27 + $0x1e4] ss:$16 sps:$4 sm:$0xff]   ;;  %v7757_v40 = vld [vmem:[%s8612_s27 + $0x1e0] ss:$16 sps:$4 sm:$0xff]  }
 0x38d   : > { %v7755_v1 = vld [vmem:[%s8612_s27 + $0x3e4] ss:$16 sps:$4 sm:$0xff]   ;;  %v7758_v41 = vld [vmem:[%s8612_s27 + $0x3e0] ss:$16 sps:$4 sm:$0xff]  }
 0x38e   : > { %5935 = vmatpush1.bf16.msra.mxu0 %v7733_v20  ;;  %v7759_v60 = vld [vmem:[%s8612_s27 + $0x1c4] ss:$16 sps:$4 sm:$0xff]   ;;  %v7763_v45 = vld [vmem:[%s8612_s27 + $0x1c0] ss:$16 sps:$4 sm:$0xff]  }
 0x38f   : > { %5976 = vmatpush1.bf16.msra.mxu1 %v7734_v21  ;;  %5936 = vmatprep.subr.bf16.mxu0 %v7735_v23  ;;  %v7761_v16 = vld [vmem:[%s8612_s27 + $0x3c4] ss:$16 sps:$4 sm:$0xff]   ;;  %v7764_v48 = vld [vmem:[%s8612_s27 + $0x3c0] ss:$16 sps:$4 sm:$0xff]  }
 0x390   : > { %5977 = vmatprep.subr.bf16.mxu1 %v7737_v58  ;;  %v7765_v49 = vld [vmem:[%s8612_s27 + $0x1a4] ss:$16 sps:$4 sm:$0xff]   ;;  %v7769_v4 = vld [vmem:[%s8612_s27 + $0x1a0] ss:$16 sps:$4 sm:$0xff]  }
 0x391   : > { %v7767_v50 = vld [vmem:[%s8612_s27 + $0x3a4] ss:$16 sps:$4 sm:$0xff]   ;;  %v7770_v51 = vld [vmem:[%s8612_s27 + $0x3a0] ss:$16 sps:$4 sm:$0xff]  }
 0x392   : > { %5937 = vmatpush1.bf16.msra.mxu0 %v7739_v24  ;;  %v7771_v54 = vld [vmem:[%s8612_s27 + $0x184] ss:$16 sps:$4 sm:$0xff]   ;;  %v7775_v59 = vld [vmem:[%s8612_s27 + $0x180] ss:$16 sps:$4 sm:$0xff]  }
 0x393   : > { %5978 = vmatpush1.bf16.msra.mxu1 %v7740_v26  ;;  %5938 = vmatprep.subr.bf16.mxu0 %v7741_v27  ;;  %v7773_v56 = vld [vmem:[%s8612_s27 + $0x384] ss:$16 sps:$4 sm:$0xff]   ;;  %v7776_v44 = vld [vmem:[%s8612_s27 + $0x380] ss:$16 sps:$4 sm:$0xff]  }
 0x394   : > { %5979 = vmatprep.subr.bf16.mxu1 %v7743_v28  ;;  %v4309_v57 = vld [vmem:[#allocation2] sm:$0xff] }
 0x395   : > { %v4596_v61 = vrot.slane %v4309_v57, %v4595_v52  ;;  %v4589_v62 = vcombine.high %v4309_v57, %v4309_v57  ;;  %v7777_v33 = vld [vmem:[%s8612_s27 + $0x164] ss:$16 sps:$4 sm:$0xff]   ;;  %v7781_v36 = vld [vmem:[%s8612_s27 + $0x160] ss:$16 sps:$4 sm:$0xff]  }
 0x396   : > { %5939 = vmatpush1.bf16.msra.mxu0 %v7745_v29  ;;  %v7779_v0 = vld [vmem:[%s8612_s27 + $0x364] ss:$16 sps:$4 sm:$0xff]   ;;  %v7782_v25 = vld [vmem:[%s8612_s27 + $0x360] ss:$16 sps:$4 sm:$0xff]  }
 0x397   : > { %5980 = vmatpush1.bf16.msra.mxu1 %v7746_v31  ;;  %5940 = vmatprep.subr.bf16.mxu0 %v7747_v53  ;;  %v4604_v22 = vcombine.high %v4596_v61, %v4596_v61  ;;  %v4603_v30 = vrot.slane %v4589_v62, %v4595_v52  ;;  %v7783_v6 = vld [vmem:[%s8612_s27 + $0x144] ss:$16 sps:$4 sm:$0xff]   ;;  %v7787_v7 = vld [vmem:[%s8612_s27 + $0x140] ss:$16 sps:$4 sm:$0xff]   ;;  %v8832_v17 = vrot.slane %v4596_v61, %v4595_v52 }
 0x398   : > { %5981 = vmatprep.subr.bf16.mxu1 %v7749_v35  ;;  %v7785_v34 = vld [vmem:[%s8612_s27 + $0x344] ss:$16 sps:$4 sm:$0xff]   ;;  %v7788_v32 = vld [vmem:[%s8612_s27 + $0x340] ss:$16 sps:$4 sm:$0xff]  }
 0x399   : > { %v8810_v2 = vrot.slane %v4604_v22, %v4595_v52  ;;  %v8812_v3 = vrot.slane %v4603_v30, %v4595_v52  ;;  %v7789_v8 = vld [vmem:[%s8612_s27 + $0x124] ss:$16 sps:$4 sm:$0xff]   ;;  %v7793_v12 = vld [vmem:[%s8612_s27 + $0x120] ss:$16 sps:$4 sm:$0xff]   ;;  %v4605_v15 = vcombine.high %v4603_v30, %v4603_v30  ;;  %v8841_v21 = vcombine.high %v8832_v17, %v8832_v17 }
 0x39a   : > { %5941 = vmatpush1.bf16.msra.mxu0 %v7751_v37  ;;  %v7791_v10 = vld [vmem:[%s8612_s27 + $0x324] ss:$16 sps:$4 sm:$0xff]   ;;  %v7794_v42 = vld [vmem:[%s8612_s27 + $0x320] ss:$16 sps:$4 sm:$0xff]  }
 0x39b   : > { %5982 = vmatpush1.bf16.msra.mxu1 %v7752_v38  ;;  %5942 = vmatprep.subr.bf16.mxu0 %v7753_v39  ;;  %v8819_v9 = vcombine.high %v8810_v2, %v8810_v2  ;;  %v7795_v13 = vld [vmem:[%s8612_s27 + $0x104] ss:$16 sps:$4 sm:$0xff]   ;;  %v7799_v46 = vld [vmem:[%s8612_s27 + $0x100] ss:$16 sps:$4 sm:$0xff]   ;;  %v8837_v20 = vrot.slane %v4605_v15, %v4595_v52 }
 0x39c   : > { %5983 = vmatprep.subr.bf16.mxu1 %v7755_v1  ;;  %5958 = vmatprep.mubr.bf16.mxu0 %v8810_v2  ;;  %v7797_v14 = vld [vmem:[%s8612_s27 + $0x304] ss:$16 sps:$4 sm:$0xff]   ;;  %v7800_v18 = vld [vmem:[%s8612_s27 + $0x300] ss:$16 sps:$4 sm:$0xff]  }
 0x39d   : > { %5999 = vmatprep.mubr.bf16.mxu1 %v8819_v9  ;;  %v7803_v19 = vld [vmem:[%s8612_s27 + $0x4e4] ss:$16 sps:$4 sm:$0xff]   ;;  %v7801_v23 = vld [vmem:[%s8612_s27 + $0x4e0] ss:$16 sps:$4 sm:$0xff]   ;;  %v8849_v27 = vcombine.high %v8837_v20, %v8837_v20 }
 0x39e   : > { %5943 = vmatpush2.bf16.msra.mxu0 %v7757_v40  ;;  %v7806_v55 = vld [vmem:[%s8612_s27 + $0x6e4] ss:$16 sps:$4 sm:$0xff]   ;;  %v7804_v58 = vld [vmem:[%s8612_s27 + $0x6e0] ss:$16 sps:$4 sm:$0xff]  }
 0x39f   : > { %5984 = vmatpush2.bf16.msra.mxu1 %v7758_v41  ;;  %5944 = vmatprep.subr.bf16.mxu0 %v7759_v60  ;;  %v7809_v24 = vld [vmem:[%s8612_s27 + $0x4c4] ss:$16 sps:$4 sm:$0xff]   ;;  %v7807_v28 = vld [vmem:[%s8612_s27 + $0x4c0] ss:$16 sps:$4 sm:$0xff]  }
 0x3a0   : > { %5985 = vmatprep.subr.bf16.mxu1 %v7761_v16  ;;  %v7812_v26 = vld [vmem:[%s8612_s27 + $0x6c4] ss:$16 sps:$4 sm:$0xff]   ;;  %v7810_v29 = vld [vmem:[%s8612_s27 + $0x6c0] ss:$16 sps:$4 sm:$0xff]  }
 0x3a1   : > { %v7815_v31 = vld [vmem:[%s8612_s27 + $0x4a4] ss:$16 sps:$4 sm:$0xff]   ;;  %v7813_v35 = vld [vmem:[%s8612_s27 + $0x4a0] ss:$16 sps:$4 sm:$0xff]  }
 0x3a2   : > { %5945 = vmatpush2.bf16.msra.mxu0 %v7763_v45  ;;  %v7818_v53 = vld [vmem:[%s8612_s27 + $0x6a4] ss:$16 sps:$4 sm:$0xff]   ;;  %v7816_v37 = vld [vmem:[%s8612_s27 + $0x6a0] ss:$16 sps:$4 sm:$0xff]  }
 0x3a3   : > { %5986 = vmatpush2.bf16.msra.mxu1 %v7764_v48  ;;  %5946 = vmatprep.subr.bf16.mxu0 %v7765_v49  ;;  %v7821_v38 = vld [vmem:[%s8612_s27 + $0x484] ss:$16 sps:$4 sm:$0xff]   ;;  %v7819_v1 = vld [vmem:[%s8612_s27 + $0x480] ss:$16 sps:$4 sm:$0xff]  }
 0x3a4   : > { %5987 = vmatprep.subr.bf16.mxu1 %v7767_v50  ;;  %v7824_v39 = vld [vmem:[%s8612_s27 + $0x684] ss:$16 sps:$4 sm:$0xff]   ;;  %v7822_v40 = vld [vmem:[%s8612_s27 + $0x680] ss:$16 sps:$4 sm:$0xff]  }
 0x3a5   : > { %v7827_v41 = vld [vmem:[%s8612_s27 + $0x464] ss:$16 sps:$4 sm:$0xff]   ;;  %v7825_v63 = vld [vmem:[%s8612_s27 + $0x460] ss:$16 sps:$4 sm:$0xff]  }
 0x3a6   : > { %5947 = vmatpush2.bf16.msra.mxu0 %v7769_v4  ;;  %v7830_v11 = vld [vmem:[%s8612_s27 + $0x664] ss:$16 sps:$4 sm:$0xff]   ;;  %v7828_v43 = vld [vmem:[%s8612_s27 + $0x660] ss:$16 sps:$4 sm:$0xff]  }
 0x3a7   : > { %5988 = vmatpush2.bf16.msra.mxu1 %v7770_v51  ;;  %5948 = vmatprep.subr.bf16.mxu0 %v7771_v54  ;;  %v7833_v60 = vld [vmem:[%s8612_s27 + $0x444] ss:$16 sps:$4 sm:$0xff]   ;;  %v7831_v45 = vld [vmem:[%s8612_s27 + $0x440] ss:$16 sps:$4 sm:$0xff]  }
 0x3a8   : > { %5989 = vmatprep.subr.bf16.mxu1 %v7773_v56  ;;  %v7836_v16 = vld [vmem:[%s8612_s27 + $0x644] ss:$16 sps:$4 sm:$0xff]   ;;  %v7834_v47 = vld [vmem:[%s8612_s27 + $0x640] ss:$16 sps:$4 sm:$0xff]  }
 0x3a9   : > { %v7839_v48 = vld [vmem:[%s8612_s27 + $0x424] ss:$16 sps:$4 sm:$0xff]   ;;  %v7837_v50 = vld [vmem:[%s8612_s27 + $0x420] ss:$16 sps:$4 sm:$0xff]  }
 0x3aa   : > { %5949 = vmatpush2.bf16.msra.mxu0 %v7775_v59  ;;  %v7842_v49 = vld [vmem:[%s8612_s27 + $0x624] ss:$16 sps:$4 sm:$0xff]   ;;  %v7840_v4 = vld [vmem:[%s8612_s27 + $0x620] ss:$16 sps:$4 sm:$0xff]  }
 0x3ab   : > { %5990 = vmatpush2.bf16.msra.mxu1 %v7776_v44  ;;  %5950 = vmatprep.subr.bf16.mxu0 %v7777_v33  ;;  %v7845_v51 = vld [vmem:[%s8612_s27 + $0x404] ss:$16 sps:$4 sm:$0xff]   ;;  %v7843_v54 = vld [vmem:[%s8612_s27 + $0x400] ss:$16 sps:$4 sm:$0xff]  }
 0x3ac   : > { %5991 = vmatprep.subr.bf16.mxu1 %v7779_v0  ;;  %v7848_v52 = vld [vmem:[%s8612_s27 + $0x604] ss:$16 sps:$4 sm:$0xff]   ;;  %v7846_v56 = vld [vmem:[%s8612_s27 + $0x600] ss:$16 sps:$4 sm:$0xff]  }
 0x3ad   : > { %v7851_v57 = vld [vmem:[%s8612_s27 + $0x5e4] ss:$16 sps:$4 sm:$0xff]   ;;  %v7849_v61 = vld [vmem:[%s8612_s27 + $0x5e0] ss:$16 sps:$4 sm:$0xff]  }
 0x3ae   : > { %5951 = vmatpush2.bf16.msra.mxu0 %v7781_v36  ;;  %v7854_v59 = vld [vmem:[%s8612_s27 + $0x7e4] ss:$16 sps:$4 sm:$0xff]   ;;  %v7852_v62 = vld [vmem:[%s8612_s27 + $0x7e0] ss:$16 sps:$4 sm:$0xff]  }
 0x3af   : > { %5992 = vmatpush2.bf16.msra.mxu1 %v7782_v25  ;;  %5952 = vmatprep.subr.bf16.mxu0 %v7783_v6  ;;  %v7857_v44 = vld [vmem:[%s8612_s27 + $0x5c4] ss:$16 sps:$4 sm:$0xff]   ;;  %v7855_v0 = vld [vmem:[%s8612_s27 + $0x5c0] ss:$16 sps:$4 sm:$0xff]  }
 0x3b0   : > { %5993 = vmatprep.subr.bf16.mxu1 %v7785_v34  ;;  %v7860_v33 = vld [vmem:[%s8612_s27 + $0x7c4] ss:$16 sps:$4 sm:$0xff]   ;;  %v7858_v22 = vld [vmem:[%s8612_s27 + $0x7c0] ss:$16 sps:$4 sm:$0xff]  }
 0x3b1   : > { %v7863_v30 = vld [vmem:[%s8612_s27 + $0x5a4] ss:$16 sps:$4 sm:$0xff]   ;;  %v7861_v25 = vld [vmem:[%s8612_s27 + $0x5a0] ss:$16 sps:$4 sm:$0xff]  }
 0x3b2   : > { %5953 = vmatpush2.bf16.msra.mxu0 %v7787_v7  ;;  %v7866_v36 = vld [vmem:[%s8612_s27 + $0x7a4] ss:$16 sps:$4 sm:$0xff]   ;;  %v7864_v6 = vld [vmem:[%s8612_s27 + $0x7a0] ss:$16 sps:$4 sm:$0xff]  }
 0x3b3   : > { %5994 = vmatpush2.bf16.msra.mxu1 %v7788_v32  ;;  %5954 = vmatprep.subr.bf16.mxu0 %v7789_v8  ;;  %v7869_v34 = vld [vmem:[%s8612_s27 + $0x584] ss:$16 sps:$4 sm:$0xff]   ;;  %v7867_v32 = vld [vmem:[%s8612_s27 + $0x580] ss:$16 sps:$4 sm:$0xff]  }
 0x3b4   : > { %5995 = vmatprep.subr.bf16.mxu1 %v7791_v10  ;;  %v7872_v7 = vld [vmem:[%s8612_s27 + $0x784] ss:$16 sps:$4 sm:$0xff]   ;;  %v7870_v8 = vld [vmem:[%s8612_s27 + $0x780] ss:$16 sps:$4 sm:$0xff]  }
 0x3b5   : > { %v7875_v10 = vld [vmem:[%s8612_s27 + $0x564] ss:$16 sps:$4 sm:$0xff]  }
 0x3b6   : > { %5955 = vmatpush2.bf16.msra.mxu0 %v7793_v12  ;;  %v7878_v12 = vld [vmem:[%s8612_s27 + $0x764] ss:$16 sps:$4 sm:$0xff]  }
 0x3b7   : > { %5996 = vmatpush2.bf16.msra.mxu1 %v7794_v42  ;;  %5956 = vmatprep.subr.bf16.mxu0 %v7795_v13  ;;  %v7873_v42 = vld [vmem:[%s8612_s27 + $0x560] ss:$16 sps:$4 sm:$0xff]   ;;  %v7884_v15 = vld [vmem:[%s8612_s27 + $0x744] ss:$16 sps:$4 sm:$0xff]  }
 0x3b8   : > { %5997 = vmatprep.subr.bf16.mxu1 %v7797_v14  ;;  %v7876_v13 = vld [vmem:[%s8612_s27 + $0x760] ss:$16 sps:$4 sm:$0xff]   ;;  %v7881_v14 = vld [vmem:[%s8612_s27 + $0x544] ss:$16 sps:$4 sm:$0xff]  }
 0x3ba   : > { %5957 = vmatpush2.bf16.msra.mxu0 %v7799_v46  ;;  %v7879_v46 = vld [vmem:[%s8612_s27 + $0x540] ss:$16 sps:$4 sm:$0xff]  }
 0x3bb   : > { %5998 = vmatpush2.bf16.msra.mxu1 %v7800_v18  ;;  %6008 = vmatprep.subr.bf16.mxu0 %v7803_v19  ;;  %v7882_v18 = vld [vmem:[%s8612_s27 + $0x740] ss:$16 sps:$4 sm:$0xff]   ;;  %v7887_v19 = vld [vmem:[%s8612_s27 + $0x524] ss:$16 sps:$4 sm:$0xff]  }
 0x3bc   : > { %6049 = vmatprep.subr.bf16.mxu1 %v7806_v55  ;;  %v7890_v55 = vld [vmem:[%s8612_s27 + $0x724] ss:$16 sps:$4 sm:$0xff]  }
 0x3bd   : > { %5959 = vmatmul.mubr.bf16.vlgmr.msra.gmra.mxu0 %v8832_v17 }
 0x3be   : > { %6000 = vmatmul.mubr.bf16.vlgmr.msra.gmra.mxu1 %v8841_v21  ;;  %6009 = vmatpush1.bf16.msra.mxu0 %v7801_v23  ;;  %v7885_v23 = vld [vmem:[%s8612_s27 + $0x520] ss:$16 sps:$4 sm:$0xff]  }
 0x3bf   : > { %6050 = vmatpush1.bf16.msra.mxu1 %v7804_v58  ;;  %6010 = vmatprep.subr.bf16.mxu0 %v7809_v24  ;;  %v7888_v58 = vld [vmem:[%s8612_s27 + $0x720] ss:$16 sps:$4 sm:$0xff]   ;;  %v7893_v24 = vld [vmem:[%s8612_s27 + $0x504] ss:$16 sps:$4 sm:$0xff]  }
 0x3c0   : > { %6051 = vmatprep.subr.bf16.mxu1 %v7812_v26  ;;  %6040 = vmatprep.mubr.bf16.mxu0 %v8837_v20  ;;  %v7896_v26 = vld [vmem:[%s8612_s27 + $0x704] ss:$16 sps:$4 sm:$0xff]  }
 0x3c1   : > { %6081 = vmatprep.mubr.bf16.mxu1 %v8849_v27 }
 0x3c2   : > { %6011 = vmatpush1.bf16.msra.mxu0 %v7807_v28  ;;  %v7891_v28 = vld [vmem:[%s8612_s27 + $0x500] ss:$16 sps:$4 sm:$0xff]  }
 0x3c3   : > { %6052 = vmatpush1.bf16.msra.mxu1 %v7810_v29  ;;  %6012 = vmatprep.subr.bf16.mxu0 %v7815_v31  ;;  %v7894_v29 = vld [vmem:[%s8612_s27 + $0x700] ss:$16 sps:$4 sm:$0xff]   ;;  %v7900_v31 = vld [vmem:[%s8612_s27 + $0xec] ss:$16 sps:$4 sm:$0xff]  }
 0x3c4   : > { %6053 = vmatprep.subr.bf16.mxu1 %v7818_v53  ;;  %v7903_v53 = vld [vmem:[%s8612_s27 + $0x2ec] ss:$16 sps:$4 sm:$0xff]  }
 0x3c6   : > { %6013 = vmatpush1.bf16.msra.mxu0 %v7813_v35  ;;  %v8917_v35 = vcombine.high %v8812_v3, %v8812_v3 }
 0x3c7   : > { %6054 = vmatpush1.bf16.msra.mxu1 %v7816_v37  ;;  %6014 = vmatprep.subr.bf16.mxu0 %v7821_v38  ;;  %v7898_v37 = vld [vmem:[%s8612_s27 + $0xe8] ss:$16 sps:$4 sm:$0xff]  }
 0x3c8   : > { %6055 = vmatprep.subr.bf16.mxu1 %v7824_v39  ;;  %v7901_v38 = vld [vmem:[%s8612_s27 + $0x2e8] ss:$16 sps:$4 sm:$0xff]   ;;  %v7906_v39 = vld [vmem:[%s8612_s27 + $0xcc] ss:$16 sps:$4 sm:$0xff]  }
 0x3ca   : > { %6015 = vmatpush1.bf16.msra.mxu0 %v7819_v1  ;;  %v7909_v1 = vld [vmem:[%s8612_s27 + $0x2cc] ss:$16 sps:$4 sm:$0xff]  }
 0x3cb   : > { %6056 = vmatpush1.bf16.msra.mxu1 %v7822_v40  ;;  %6016 = vmatprep.subr.bf16.mxu0 %v7827_v41  ;;  %v7904_v40 = vld [vmem:[%s8612_s27 + $0xc8] ss:$16 sps:$4 sm:$0xff]  }
 0x3cc   : > { %6057 = vmatprep.subr.bf16.mxu1 %v7830_v11  ;;  %v7907_v41 = vld [vmem:[%s8612_s27 + $0x2c8] ss:$16 sps:$4 sm:$0xff]   ;;  %v7912_v11 = vld [vmem:[%s8612_s27 + $0xac] ss:$16 sps:$4 sm:$0xff]  }
 0x3ce   : > { %6017 = vmatpush1.bf16.msra.mxu0 %v7825_v63  ;;  %v7915_v63 = vld [vmem:[%s8612_s27 + $0x2ac] ss:$16 sps:$4 sm:$0xff]  }
 0x3cf   : > { %6058 = vmatpush1.bf16.msra.mxu1 %v7828_v43  ;;  %6018 = vmatprep.subr.bf16.mxu0 %v7833_v60  ;;  %v7910_v43 = vld [vmem:[%s8612_s27 + $0xa8] ss:$16 sps:$4 sm:$0xff]  }
 0x3d0   : > { %6059 = vmatprep.subr.bf16.mxu1 %v7836_v16  ;;  %v7913_v60 = vld [vmem:[%s8612_s27 + $0x2a8] ss:$16 sps:$4 sm:$0xff]   ;;  %v7918_v16 = vld [vmem:[%s8612_s27 + $0x8c] ss:$16 sps:$4 sm:$0xff]  }
 0x3d2   : > { %6019 = vmatpush1.bf16.msra.mxu0 %v7831_v45  ;;  %v7921_v45 = vld [vmem:[%s8612_s27 + $0x28c] ss:$16 sps:$4 sm:$0xff]  }
 0x3d3   : > { %6060 = vmatpush1.bf16.msra.mxu1 %v7834_v47  ;;  %6020 = vmatprep.subr.bf16.mxu0 %v7839_v48  ;;  %v7916_v47 = vld [vmem:[%s8612_s27 + $0x88] ss:$16 sps:$4 sm:$0xff]   ;;  %v7927_v48 = vld [vmem:[%s8612_s27 + $0x26c] ss:$16 sps:$4 sm:$0xff]  }
 0x3d4   : > { %6061 = vmatprep.subr.bf16.mxu1 %v7842_v49  ;;  %v7922_v49 = vld [vmem:[%s8612_s27 + $0x68] ss:$16 sps:$4 sm:$0xff]  }
 0x3d6   : > { %6021 = vmatpush1.bf16.msra.mxu0 %v7837_v50  ;;  %v7925_v50 = vld [vmem:[%s8612_s27 + $0x268] ss:$16 sps:$4 sm:$0xff]  }
 0x3d7   : > { %6062 = vmatpush1.bf16.msra.mxu1 %v7840_v4  ;;  %6022 = vmatprep.subr.bf16.mxu0 %v7845_v51  ;;  %v7930_v4 = vld [vmem:[%s8612_s27 + $0x4c] ss:$16 sps:$4 sm:$0xff]  }
 0x3d8   : > { %6063 = vmatprep.subr.bf16.mxu1 %v7848_v52  ;;  %v7933_v51 = vld [vmem:[%s8612_s27 + $0x24c] ss:$16 sps:$4 sm:$0xff]   ;;  %v7928_v52 = vld [vmem:[%s8612_s27 + $0x48] ss:$16 sps:$4 sm:$0xff]  }
 0x3da   : > { %6023 = vmatpush1.bf16.msra.mxu0 %v7843_v54  ;;  %v7931_v54 = vld [vmem:[%s8612_s27 + $0x248] ss:$16 sps:$4 sm:$0xff]  }
 0x3db   : > { %6064 = vmatpush1.bf16.msra.mxu1 %v7846_v56  ;;  %6024 = vmatprep.subr.bf16.mxu0 %v7851_v57  ;;  %v7936_v56 = vld [vmem:[%s8612_s27 + $0x2c] ss:$16 sps:$4 sm:$0xff]  }
 0x3dc   : > { %6065 = vmatprep.subr.bf16.mxu1 %v7854_v59  ;;  %v7939_v57 = vld [vmem:[%s8612_s27 + $0x22c] ss:$16 sps:$4 sm:$0xff]   ;;  %v7934_v59 = vld [vmem:[%s8612_s27 + $0x28] ss:$16 sps:$4 sm:$0xff]  }
 0x3de   : > { %6025 = vmatpush2.bf16.msra.mxu0 %v7849_v61  ;;  %v7937_v61 = vld [vmem:[%s8612_s27 + $0x228] ss:$16 sps:$4 sm:$0xff]  }
 0x3df   : > { %6066 = vmatpush2.bf16.msra.mxu1 %v7852_v62  ;;  %6026 = vmatprep.subr.bf16.mxu0 %v7857_v44  ;;  %v7942_v62 = vld [vmem:[%s8612_s27 + $0xc] ss:$16 sps:$4 sm:$0xff]  }
 0x3e0   : > { %6067 = vmatprep.subr.bf16.mxu1 %v7860_v33  ;;  %v7945_v44 = vld [vmem:[%s8612_s27 + $0x20c] ss:$16 sps:$4 sm:$0xff]   ;;  %v7940_v33 = vld [vmem:[%s8612_s27 + $0x8] ss:$16 sps:$4 sm:$0xff]  }
 0x3e2   : > { %6027 = vmatpush2.bf16.msra.mxu0 %v7855_v0  ;;  %v7943_v0 = vld [vmem:[%s8612_s27 + $0x208] ss:$16 sps:$4 sm:$0xff]  }
 0x3e3   : > { %6068 = vmatpush2.bf16.msra.mxu1 %v7858_v22  ;;  %6028 = vmatprep.subr.bf16.mxu0 %v7863_v30  ;;  %v7948_v22 = vld [vmem:[%s8612_s27 + $0x1ec] ss:$16 sps:$4 sm:$0xff]  }
 0x3e4   : > { %6069 = vmatprep.subr.bf16.mxu1 %v7866_v36  ;;  %v7951_v30 = vld [vmem:[%s8612_s27 + $0x3ec] ss:$16 sps:$4 sm:$0xff]   ;;  %v7946_v36 = vld [vmem:[%s8612_s27 + $0x1e8] ss:$16 sps:$4 sm:$0xff]  }
 0x3e6   : > { %6029 = vmatpush2.bf16.msra.mxu0 %v7861_v25  ;;  %v7949_v25 = vld [vmem:[%s8612_s27 + $0x3e8] ss:$16 sps:$4 sm:$0xff]  }
 0x3e7   : > { %6070 = vmatpush2.bf16.msra.mxu1 %v7864_v6  ;;  %6030 = vmatprep.subr.bf16.mxu0 %v7869_v34  ;;  %v7954_v6 = vld [vmem:[%s8612_s27 + $0x1cc] ss:$16 sps:$4 sm:$0xff]  }
 0x3e8   : > { %6071 = vmatprep.subr.bf16.mxu1 %v7872_v7  ;;  %v7957_v34 = vld [vmem:[%s8612_s27 + $0x3cc] ss:$16 sps:$4 sm:$0xff]   ;;  %v7952_v7 = vld [vmem:[%s8612_s27 + $0x1c8] ss:$16 sps:$4 sm:$0xff]  }
 0x3ea   : > { %6031 = vmatpush2.bf16.msra.mxu0 %v7867_v32  ;;  %v7955_v32 = vld [vmem:[%s8612_s27 + $0x3c8] ss:$16 sps:$4 sm:$0xff]  }
 0x3eb   : > { %6072 = vmatpush2.bf16.msra.mxu1 %v7870_v8  ;;  %6032 = vmatprep.subr.bf16.mxu0 %v7875_v10  ;;  %v7960_v8 = vld [vmem:[%s8612_s27 + $0x1ac] ss:$16 sps:$4 sm:$0xff]  }
 0x3ec   : > { %6073 = vmatprep.subr.bf16.mxu1 %v7878_v12  ;;  %v7963_v10 = vld [vmem:[%s8612_s27 + $0x3ac] ss:$16 sps:$4 sm:$0xff]   ;;  %v7958_v12 = vld [vmem:[%s8612_s27 + $0x1a8] ss:$16 sps:$4 sm:$0xff]  }
 0x3ee   : > { %6033 = vmatpush2.bf16.msra.mxu0 %v7873_v42  ;;  %v7961_v42 = vld [vmem:[%s8612_s27 + $0x3a8] ss:$16 sps:$4 sm:$0xff]  }
 0x3ef   : > { %6074 = vmatpush2.bf16.msra.mxu1 %v7876_v13  ;;  %6034 = vmatprep.subr.bf16.mxu0 %v7881_v14  ;;  %v7966_v13 = vld [vmem:[%s8612_s27 + $0x18c] ss:$16 sps:$4 sm:$0xff]  }
 0x3f0   : > { %6075 = vmatprep.subr.bf16.mxu1 %v7884_v15  ;;  %v7969_v14 = vld [vmem:[%s8612_s27 + $0x38c] ss:$16 sps:$4 sm:$0xff]   ;;  %v7964_v15 = vld [vmem:[%s8612_s27 + $0x188] ss:$16 sps:$4 sm:$0xff]  }
 0x3f2   : > { %6035 = vmatpush2.bf16.msra.mxu0 %v7879_v46  ;;  %v7967_v46 = vld [vmem:[%s8612_s27 + $0x388] ss:$16 sps:$4 sm:$0xff]  }
 0x3f3   : > { %6076 = vmatpush2.bf16.msra.mxu1 %v7882_v18  ;;  %6036 = vmatprep.subr.bf16.mxu0 %v7887_v19  ;;  %v7972_v18 = vld [vmem:[%s8612_s27 + $0x16c] ss:$16 sps:$4 sm:$0xff]  }
 0x3f4   : > { %6077 = vmatprep.subr.bf16.mxu1 %v7890_v55  ;;  %v7975_v19 = vld [vmem:[%s8612_s27 + $0x36c] ss:$16 sps:$4 sm:$0xff]   ;;  %v7970_v55 = vld [vmem:[%s8612_s27 + $0x168] ss:$16 sps:$4 sm:$0xff]  }
 0x3f6   : > { %6037 = vmatpush2.bf16.msra.mxu0 %v7885_v23  ;;  %v7973_v23 = vld [vmem:[%s8612_s27 + $0x368] ss:$16 sps:$4 sm:$0xff]  }
 0x3f7   : > { %6078 = vmatpush2.bf16.msra.mxu1 %v7888_v58  ;;  %6038 = vmatprep.subr.bf16.mxu0 %v7893_v24  ;;  %v7978_v58 = vld [vmem:[%s8612_s27 + $0x14c] ss:$16 sps:$4 sm:$0xff]  }
 0x3f8   : > { %6079 = vmatprep.subr.bf16.mxu1 %v7896_v26  ;;  %v7981_v24 = vld [vmem:[%s8612_s27 + $0x34c] ss:$16 sps:$4 sm:$0xff]   ;;  %v7976_v26 = vld [vmem:[%s8612_s27 + $0x148] ss:$16 sps:$4 sm:$0xff]  }
 0x3fa   : > { %6039 = vmatpush2.bf16.msra.mxu0 %v7891_v28  ;;  %v7979_v28 = vld [vmem:[%s8612_s27 + $0x348] ss:$16 sps:$4 sm:$0xff]  }
 0x3fb   : > { %6080 = vmatpush2.bf16.msra.mxu1 %v7894_v29  ;;  %6090 = vmatprep.subr.bf16.mxu0 %v7900_v31  ;;  %v7984_v29 = vld [vmem:[%s8612_s27 + $0x12c] ss:$16 sps:$4 sm:$0xff]  }
 0x3fc   : > { %6131 = vmatprep.subr.bf16.mxu1 %v7903_v53  ;;  %v7987_v31 = vld [vmem:[%s8612_s27 + $0x32c] ss:$16 sps:$4 sm:$0xff]   ;;  %v7982_v53 = vld [vmem:[%s8612_s27 + $0x128] ss:$16 sps:$4 sm:$0xff]  }
 0x3fd   : > { %6041 = vmatmul.mubr.bf16.vlgmr.msra.gmra.mxu0 %v8812_v3 }
 0x3fe   : > { %6082 = vmatmul.mubr.bf16.vlgmr.msra.gmra.mxu1 %v8917_v35  ;;  %6091 = vmatpush1.bf16.msra.mxu0 %v7898_v37  ;;  %v7985_v37 = vld [vmem:[%s8612_s27 + $0x328] ss:$16 sps:$4 sm:$0xff]  }
 0x3ff   : > { %6132 = vmatpush1.bf16.msra.mxu1 %v7901_v38  ;;  %6092 = vmatprep.subr.bf16.mxu0 %v7906_v39  ;;  %v7990_v38 = vld [vmem:[%s8612_s27 + $0x10c] ss:$16 sps:$4 sm:$0xff]  }
 0x400   : > { %6133 = vmatprep.subr.bf16.mxu1 %v7909_v1  ;;  %6122 = vmatprep.mubr.bf16.mxu0 %v8810_v2  ;;  %v7919_v2 = vld [vmem:[%s8612_s27 + $0x288] ss:$16 sps:$4 sm:$0xff]   ;;  %v7993_v39 = vld [vmem:[%s8612_s27 + $0x30c] ss:$16 sps:$4 sm:$0xff]  }
 0x401   : > { %6163 = vmatprep.mubr.bf16.mxu1 %v8819_v9  ;;  %v7924_v9 = vld [vmem:[%s8612_s27 + $0x6c] ss:$16 sps:$4 sm:$0xff]   ;;  %v7988_v1 = vld [vmem:[%s8612_s27 + $0x108] ss:$16 sps:$4 sm:$0xff]  }
 0x402   : > { %6093 = vmatpush1.bf16.msra.mxu0 %v7904_v40  ;;  %v7991_v40 = vld [vmem:[%s8612_s27 + $0x308] ss:$16 sps:$4 sm:$0xff]  }
 0x403   : > { %6134 = vmatpush1.bf16.msra.mxu1 %v7907_v41  ;;  %6094 = vmatprep.subr.bf16.mxu0 %v7912_v11  ;;  %v7996_v41 = vld [vmem:[%s8612_s27 + $0x4ec] ss:$16 sps:$4 sm:$0xff]  }
 0x404   : > { %6135 = vmatprep.subr.bf16.mxu1 %v7915_v63  ;;  %v7999_v11 = vld [vmem:[%s8612_s27 + $0x6ec] ss:$16 sps:$4 sm:$0xff]   ;;  %v7994_v63 = vld [vmem:[%s8612_s27 + $0x4e8] ss:$16 sps:$4 sm:$0xff]  }
 0x406   : > { %6095 = vmatpush1.bf16.msra.mxu0 %v7910_v43  ;;  %v7997_v43 = vld [vmem:[%s8612_s27 + $0x6e8] ss:$16 sps:$4 sm:$0xff]  }
 0x407   : > { %6136 = vmatpush1.bf16.msra.mxu1 %v7913_v60  ;;  %6096 = vmatprep.subr.bf16.mxu0 %v7918_v16  ;;  %v8002_v60 = vld [vmem:[%s8612_s27 + $0x4cc] ss:$16 sps:$4 sm:$0xff]  }
 0x408   : > { %6137 = vmatprep.subr.bf16.mxu1 %v7921_v45  ;;  %v8005_v16 = vld [vmem:[%s8612_s27 + $0x6cc] ss:$16 sps:$4 sm:$0xff]   ;;  %v8000_v45 = vld [vmem:[%s8612_s27 + $0x4c8] ss:$16 sps:$4 sm:$0xff]  }
 0x40a   : > { %6097 = vmatpush1.bf16.msra.mxu0 %v7916_v47  ;;  %v8003_v47 = vld [vmem:[%s8612_s27 + $0x6c8] ss:$16 sps:$4 sm:$0xff]  }
 0x40b   : > { %6138 = vmatpush1.bf16.msra.mxu1 %v7919_v2  ;;  %6098 = vmatprep.subr.bf16.mxu0 %v7924_v9  ;;  %v8008_v2 = vld [vmem:[%s8612_s27 + $0x4ac] ss:$16 sps:$4 sm:$0xff]  }
 0x40c   : > { %6139 = vmatprep.subr.bf16.mxu1 %v7927_v48  ;;  %v8011_v9 = vld [vmem:[%s8612_s27 + $0x6ac] ss:$16 sps:$4 sm:$0xff]  }
 0x40d   : > { %v8014_v48 = vld [vmem:[%s8612_s27 + $0x48c] ss:$16 sps:$4 sm:$0xff]  }
 0x40e   : > { %6099 = vmatpush1.bf16.msra.mxu0 %v7922_v49  ;;  %v8017_v49 = vld [vmem:[%s8612_s27 + $0x68c] ss:$16 sps:$4 sm:$0xff]  }
 0x40f   : > { %6140 = vmatpush1.bf16.msra.mxu1 %v7925_v50  ;;  %6100 = vmatprep.subr.bf16.mxu0 %v7930_v4  ;;  %v8012_v50 = vld [vmem:[%s8612_s27 + $0x488] ss:$16 sps:$4 sm:$0xff]   ;;  %v8023_v4 = vld [vmem:[%s8612_s27 + $0x66c] ss:$16 sps:$4 sm:$0xff]  }
 0x410   : > { %6141 = vmatprep.subr.bf16.mxu1 %v7933_v51  ;;  %v8018_v51 = vld [vmem:[%s8612_s27 + $0x468] ss:$16 sps:$4 sm:$0xff]  }
 0x412   : > { %6101 = vmatpush1.bf16.msra.mxu0 %v7928_v52  ;;  %v8021_v52 = vld [vmem:[%s8612_s27 + $0x668] ss:$16 sps:$4 sm:$0xff]  }
 0x413   : > { %6142 = vmatpush1.bf16.msra.mxu1 %v7931_v54  ;;  %6102 = vmatprep.subr.bf16.mxu0 %v7936_v56  ;;  %v8026_v54 = vld [vmem:[%s8612_s27 + $0x44c] ss:$16 sps:$4 sm:$0xff]  }
 0x414   : > { %6143 = vmatprep.subr.bf16.mxu1 %v7939_v57  ;;  %v8029_v56 = vld [vmem:[%s8612_s27 + $0x64c] ss:$16 sps:$4 sm:$0xff]   ;;  %v8024_v57 = vld [vmem:[%s8612_s27 + $0x448] ss:$16 sps:$4 sm:$0xff]  }
 0x416   : > { %6103 = vmatpush1.bf16.msra.mxu0 %v7934_v59  ;;  %v8027_v59 = vld [vmem:[%s8612_s27 + $0x648] ss:$16 sps:$4 sm:$0xff]  }
 0x417   : > { %6144 = vmatpush1.bf16.msra.mxu1 %v7937_v61  ;;  %6104 = vmatprep.subr.bf16.mxu0 %v7942_v62  ;;  %v8032_v61 = vld [vmem:[%s8612_s27 + $0x42c] ss:$16 sps:$4 sm:$0xff]  }
 0x418   : > { %6145 = vmatprep.subr.bf16.mxu1 %v7945_v44  ;;  %v8035_v62 = vld [vmem:[%s8612_s27 + $0x62c] ss:$16 sps:$4 sm:$0xff]   ;;  %v8030_v44 = vld [vmem:[%s8612_s27 + $0x428] ss:$16 sps:$4 sm:$0xff]  }
 0x41a   : > { %6105 = vmatpush1.bf16.msra.mxu0 %v7940_v33  ;;  %v8033_v33 = vld [vmem:[%s8612_s27 + $0x628] ss:$16 sps:$4 sm:$0xff]  }
 0x41b   : > { %6146 = vmatpush1.bf16.msra.mxu1 %v7943_v0  ;;  %6106 = vmatprep.subr.bf16.mxu0 %v7948_v22  ;;  %v8038_v0 = vld [vmem:[%s8612_s27 + $0x40c] ss:$16 sps:$4 sm:$0xff]  }
 0x41c   : > { %6147 = vmatprep.subr.bf16.mxu1 %v7951_v30  ;;  %v8041_v22 = vld [vmem:[%s8612_s27 + $0x60c] ss:$16 sps:$4 sm:$0xff]   ;;  %v8036_v30 = vld [vmem:[%s8612_s27 + $0x408] ss:$16 sps:$4 sm:$0xff]  }
 0x41e   : > { %6107 = vmatpush2.bf16.msra.mxu0 %v7946_v36  ;;  %v8039_v36 = vld [vmem:[%s8612_s27 + $0x608] ss:$16 sps:$4 sm:$0xff]  }
 0x41f   : > { %6148 = vmatpush2.bf16.msra.mxu1 %v7949_v25  ;;  %6108 = vmatprep.subr.bf16.mxu0 %v7954_v6  ;;  %v8044_v25 = vld [vmem:[%s8612_s27 + $0x5ec] ss:$16 sps:$4 sm:$0xff]  }
 0x420   : > { %6149 = vmatprep.subr.bf16.mxu1 %v7957_v34  ;;  %v8047_v6 = vld [vmem:[%s8612_s27 + $0x7ec] ss:$16 sps:$4 sm:$0xff]   ;;  %v8042_v34 = vld [vmem:[%s8612_s27 + $0x5e8] ss:$16 sps:$4 sm:$0xff]  }
 0x422   : > { %6109 = vmatpush2.bf16.msra.mxu0 %v7952_v7  ;;  %v8045_v7 = vld [vmem:[%s8612_s27 + $0x7e8] ss:$16 sps:$4 sm:$0xff]  }
 0x423   : > { %6150 = vmatpush2.bf16.msra.mxu1 %v7955_v32  ;;  %6110 = vmatprep.subr.bf16.mxu0 %v7960_v8  ;;  %v8050_v32 = vld [vmem:[%s8612_s27 + $0x5cc] ss:$16 sps:$4 sm:$0xff]  }
 0x424   : > { %6151 = vmatprep.subr.bf16.mxu1 %v7963_v10  ;;  %v8053_v8 = vld [vmem:[%s8612_s27 + $0x7cc] ss:$16 sps:$4 sm:$0xff]   ;;  %v8048_v10 = vld [vmem:[%s8612_s27 + $0x5c8] ss:$16 sps:$4 sm:$0xff]  }
 0x426   : > { %6111 = vmatpush2.bf16.msra.mxu0 %v7958_v12  ;;  %v8051_v12 = vld [vmem:[%s8612_s27 + $0x7c8] ss:$16 sps:$4 sm:$0xff]  }
 0x427   : > { %6152 = vmatpush2.bf16.msra.mxu1 %v7961_v42  ;;  %6112 = vmatprep.subr.bf16.mxu0 %v7966_v13  ;;  %v8056_v42 = vld [vmem:[%s8612_s27 + $0x5ac] ss:$16 sps:$4 sm:$0xff]  }
 0x428   : > { %6153 = vmatprep.subr.bf16.mxu1 %v7969_v14  ;;  %v8059_v13 = vld [vmem:[%s8612_s27 + $0x7ac] ss:$16 sps:$4 sm:$0xff]   ;;  %v8054_v14 = vld [vmem:[%s8612_s27 + $0x5a8] ss:$16 sps:$4 sm:$0xff]  }
 0x42a   : > { %6113 = vmatpush2.bf16.msra.mxu0 %v7964_v15  ;;  %v8057_v15 = vld [vmem:[%s8612_s27 + $0x7a8] ss:$16 sps:$4 sm:$0xff]  }
 0x42b   : > { %6154 = vmatpush2.bf16.msra.mxu1 %v7967_v46  ;;  %6114 = vmatprep.subr.bf16.mxu0 %v7972_v18  ;;  %v8062_v46 = vld [vmem:[%s8612_s27 + $0x58c] ss:$16 sps:$4 sm:$0xff]  }
 0x42c   : > { %6155 = vmatprep.subr.bf16.mxu1 %v7975_v19  ;;  %v8065_v18 = vld [vmem:[%s8612_s27 + $0x78c] ss:$16 sps:$4 sm:$0xff]   ;;  %v8060_v19 = vld [vmem:[%s8612_s27 + $0x588] ss:$16 sps:$4 sm:$0xff]  }
 0x42e   : > { %6115 = vmatpush2.bf16.msra.mxu0 %v7970_v55  ;;  %v8063_v55 = vld [vmem:[%s8612_s27 + $0x788] ss:$16 sps:$4 sm:$0xff]  }
 0x42f   : > { %6156 = vmatpush2.bf16.msra.mxu1 %v7973_v23  ;;  %6116 = vmatprep.subr.bf16.mxu0 %v7978_v58  ;;  %v8068_v23 = vld [vmem:[%s8612_s27 + $0x56c] ss:$16 sps:$4 sm:$0xff]  }
 0x430   : > { %6157 = vmatprep.subr.bf16.mxu1 %v7981_v24  ;;  %v8071_v58 = vld [vmem:[%s8612_s27 + $0x76c] ss:$16 sps:$4 sm:$0xff]   ;;  %v8066_v24 = vld [vmem:[%s8612_s27 + $0x568] ss:$16 sps:$4 sm:$0xff]  }
 0x432   : > { %6117 = vmatpush2.bf16.msra.mxu0 %v7976_v26  ;;  %v8069_v26 = vld [vmem:[%s8612_s27 + $0x768] ss:$16 sps:$4 sm:$0xff]  }
 0x433   : > { %6158 = vmatpush2.bf16.msra.mxu1 %v7979_v28  ;;  %6118 = vmatprep.subr.bf16.mxu0 %v7984_v29  ;;  %v8074_v28 = vld [vmem:[%s8612_s27 + $0x54c] ss:$16 sps:$4 sm:$0xff]  }
 0x434   : > { %6159 = vmatprep.subr.bf16.mxu1 %v7987_v31  ;;  %v8077_v29 = vld [vmem:[%s8612_s27 + $0x74c] ss:$16 sps:$4 sm:$0xff]   ;;  %v8072_v31 = vld [vmem:[%s8612_s27 + $0x548] ss:$16 sps:$4 sm:$0xff]  }
 0x436   : > { %6119 = vmatpush2.bf16.msra.mxu0 %v7982_v53  ;;  %v8075_v53 = vld [vmem:[%s8612_s27 + $0x748] ss:$16 sps:$4 sm:$0xff]  }
 0x437   : > { %6160 = vmatpush2.bf16.msra.mxu1 %v7985_v37  ;;  %6120 = vmatprep.subr.bf16.mxu0 %v7990_v38  ;;  %v8080_v37 = vld [vmem:[%s8612_s27 + $0x52c] ss:$16 sps:$4 sm:$0xff]  }
 0x438   : > { %6161 = vmatprep.subr.bf16.mxu1 %v7993_v39  ;;  %v8083_v38 = vld [vmem:[%s8612_s27 + $0x72c] ss:$16 sps:$4 sm:$0xff]   ;;  %v8078_v39 = vld [vmem:[%s8612_s27 + $0x528] ss:$16 sps:$4 sm:$0xff]  }
 0x43a   : > { %6121 = vmatpush2.bf16.msra.mxu0 %v7988_v1  ;;  %v8081_v1 = vld [vmem:[%s8612_s27 + $0x728] ss:$16 sps:$4 sm:$0xff]  }
 0x43b   : > { %6162 = vmatpush2.bf16.msra.mxu1 %v7991_v40  ;;  %6172 = vmatprep.subr.bf16.mxu0 %v7996_v41  ;;  %v8086_v40 = vld [vmem:[%s8612_s27 + $0x50c] ss:$16 sps:$4 sm:$0xff]  }
 0x43c   : > { %6213 = vmatprep.subr.bf16.mxu1 %v7999_v11  ;;  %v8089_v41 = vld [vmem:[%s8612_s27 + $0x70c] ss:$16 sps:$4 sm:$0xff]   ;;  %v8084_v11 = vld [vmem:[%s8612_s27 + $0x508] ss:$16 sps:$4 sm:$0xff]  }
 0x43d   : > { %6123 = vmatmul.mubr.bf16.vlgmr.msra.gmra.mxu0 %v8832_v17  ;;  %v8006_v17 = vld [vmem:[%s8612_s27 + $0x4a8] ss:$16 sps:$4 sm:$0xff]  }
 0x43e   : > { %6164 = vmatmul.mubr.bf16.vlgmr.msra.gmra.mxu1 %v8841_v21  ;;  %6173 = vmatpush1.bf16.msra.mxu0 %v7994_v63  ;;  %v8009_v21 = vld [vmem:[%s8612_s27 + $0x6a8] ss:$16 sps:$4 sm:$0xff]  }
 0x43f   : > { %6214 = vmatpush1.bf16.msra.mxu1 %v7997_v43  ;;  %6174 = vmatprep.subr.bf16.mxu0 %v8002_v60  ;;  %v8087_v63 = vld [vmem:[%s8612_s27 + $0x708] ss:$16 sps:$4 sm:$0xff]   ;;  %v8090_v43 = vld [vmem:[%s8620_s22 + $0x78] sm:$0xff]  }
 0x440   : > { %6215 = vmatprep.subr.bf16.mxu1 %v8005_v16  ;;  %6204 = vmatprep.mubr.bf16.mxu0 %v8837_v20  ;;  %v8015_v20 = vld [vmem:[%s8612_s27 + $0x688] ss:$16 sps:$4 sm:$0xff]   ;;  %v8091_v60 = vld [vmem:[%s8620_s22 + $0x38] sm:$0xff]  }
 0x441   : > { %6245 = vmatprep.mubr.bf16.mxu1 %v8849_v27  ;;  %v8020_v27 = vld [vmem:[%s8612_s27 + $0x46c] ss:$16 sps:$4 sm:$0xff]  }
 0x442   : > { %6175 = vmatpush1.bf16.msra.mxu0 %v8000_v45  ;;  %v8092_v16 = vld [vmem:[%s8620_s22 + $0x70] sm:$0xff]  }
 0x443   : > { %6216 = vmatpush1.bf16.msra.mxu1 %v8003_v47  ;;  %6176 = vmatprep.subr.bf16.mxu0 %v8008_v2  ;;  %v8093_v2 = vld [vmem:[%s8620_s22 + $0x30] sm:$0xff]  }
 0x444   : > { %6217 = vmatprep.subr.bf16.mxu1 %v8011_v9 }
 0x446   : > { %6177 = vmatpush1.bf16.msra.mxu0 %v8006_v17 }
 0x447   : > { %6218 = vmatpush1.bf16.msra.mxu1 %v8009_v21  ;;  %6178 = vmatprep.subr.bf16.mxu0 %v8014_v48  ;;  %v8094_v21 = vld [vmem:[%s8620_s22 + $0x68] sm:$0xff]  }
 0x448   : > { %6219 = vmatprep.subr.bf16.mxu1 %v8017_v49 }
 0x44a   : > { %6179 = vmatpush1.bf16.msra.mxu0 %v8012_v50  ;;  %v8095_v50 = vld [vmem:[%s8620_s22 + $0x28] sm:$0xff]  }
 0x44b   : > { %6220 = vmatpush1.bf16.msra.mxu1 %v8015_v20  ;;  %6180 = vmatprep.subr.bf16.mxu0 %v8020_v27  ;;  %v8106_v27 = vld [vmem:[%s8620_s22 + $0xf8] sm:$0xff]  }
 0x44c   : > { %6221 = vmatprep.subr.bf16.mxu1 %v8023_v4  ;;  %v8107_v4 = vld [vmem:[%s8620_s22 + $0xb8] sm:$0xff]  }
 0x44e   : > { %6181 = vmatpush1.bf16.msra.mxu0 %v8018_v51  ;;  %v8108_v51 = vld [vmem:[%s8620_s22 + $0xf0] sm:$0xff]  }
 0x44f   : > { %6222 = vmatpush1.bf16.msra.mxu1 %v8021_v52  ;;  %6182 = vmatprep.subr.bf16.mxu0 %v8026_v54  ;;  %v8097_v52 = vld [vmem:[%s8620_s22 + $0x20] sm:$0xff]   ;;  %v8109_v54 = vld [vmem:[%s8620_s22 + $0xb0] sm:$0xff]  }
 0x450   : > { %6223 = vmatprep.subr.bf16.mxu1 %v8029_v56  ;;  %v8098_v56 = vld [vmem:[%s8620_s22 + $0x58] sm:$0xff]  }
 0x452   : > { %6183 = vmatpush1.bf16.msra.mxu0 %v8024_v57  ;;  %v8110_v57 = vld [vmem:[%s8620_s22 + $0xe8] sm:$0xff]  }
 0x453   : > { %6224 = vmatpush1.bf16.msra.mxu1 %v8027_v59  ;;  %6184 = vmatprep.subr.bf16.mxu0 %v8032_v61  ;;  %v8099_v59 = vld [vmem:[%s8620_s22 + $0x18] sm:$0xff]   ;;  %v8111_v61 = vld [vmem:[%s8620_s22 + $0xa8] sm:$0xff]  }
 0x454   : > { %6225 = vmatprep.subr.bf16.mxu1 %v8035_v62  ;;  %v8100_v62 = vld [vmem:[%s8620_s22 + $0x50] sm:$0xff]  }
 0x456   : > { %6185 = vmatpush1.bf16.msra.mxu0 %v8030_v44  ;;  %v8112_v44 = vld [vmem:[%s8620_s22 + $0xe0] sm:$0xff]  }
 0x457   : > { %6226 = vmatpush1.bf16.msra.mxu1 %v8033_v33  ;;  %6186 = vmatprep.subr.bf16.mxu0 %v8038_v0  ;;  %v8101_v33 = vld [vmem:[%s8620_s22 + $0x10] sm:$0xff]   ;;  %v8113_v0 = vld [vmem:[%s8620_s22 + $0xa0] sm:$0xff]  }
 0x458   : > { %6227 = vmatprep.subr.bf16.mxu1 %v8041_v22  ;;  %v8102_v22 = vld [vmem:[%s8620_s22 + $0x48] sm:$0xff]  }
 0x45a   : > { %6187 = vmatpush1.bf16.msra.mxu0 %v8036_v30  ;;  %v8114_v30 = vld [vmem:[%s8620_s22 + $0xd8] sm:$0xff]  }
 0x45b   : > { %6228 = vmatpush1.bf16.msra.mxu1 %v8039_v36  ;;  %6188 = vmatprep.subr.bf16.mxu0 %v8044_v25  ;;  %v8103_v36 = vld [vmem:[%s8620_s22 + $0x8] sm:$0xff]   ;;  %v8115_v25 = vld [vmem:[%s8620_s22 + $0x98] sm:$0xff]  }
 0x45c   : > { %6229 = vmatprep.subr.bf16.mxu1 %v8047_v6  ;;  %v8104_v6 = vld [vmem:[%s8620_s22 + $0x40] sm:$0xff]  }
 0x45e   : > { %6189 = vmatpush2.bf16.msra.mxu0 %v8042_v34  ;;  %v8105_v34 = vld [vmem:[%s8620_s22] sm:$0xff]  }
 0x45f   : > { %6230 = vmatpush2.bf16.msra.mxu1 %v8045_v7  ;;  %6190 = vmatprep.subr.bf16.mxu0 %v8050_v32  ;;  %v4570_v7 = vsub.s32 0, %v8795_v5  ;;  %v4566_v32 = vld [vmem:[%s8618_s30] sm:$0xf] }
 0x460   : > { %6231 = vmatprep.subr.bf16.mxu1 %v8053_v8  ;;  %v4574_v8 = vsub.s32 1, %v8795_v5 }
 0x462   : > { %6191 = vmatpush2.bf16.msra.mxu0 %v8048_v10  ;;  %v4571_v10 = vrot.slane %v4566_v32, %v4570_v7 }
 0x463   : > { %6232 = vmatpush2.bf16.msra.mxu1 %v8051_v12  ;;  %6192 = vmatprep.subr.bf16.mxu0 %v8056_v42  ;;  %v4575_v12 = vrot.slane %v4566_v32, %v4574_v8 }
 0x464   : > { %6233 = vmatprep.subr.bf16.mxu1 %v8059_v13 }
 0x466   : > { %6193 = vmatpush2.bf16.msra.mxu0 %v8054_v14  ;;  %v8116_v14 = vld [vmem:[%s8620_s22 + $0xd0] sm:$0xff]  }
 0x467   : > { %6234 = vmatpush2.bf16.msra.mxu1 %v8057_v15  ;;  %6194 = vmatprep.subr.bf16.mxu0 %v8062_v46  ;;  %v8117_v46 = vld [vmem:[%s8620_s22 + $0x90] sm:$0xff]  }
 0x468   : > { %6235 = vmatprep.subr.bf16.mxu1 %v8065_v18 }
 0x46a   : > { %6195 = vmatpush2.bf16.msra.mxu0 %v8060_v19 }
 0x46b   : > { %6236 = vmatpush2.bf16.msra.mxu1 %v8063_v55  ;;  %6196 = vmatprep.subr.bf16.mxu0 %v8068_v23 }
 0x46c   : > { %6237 = vmatprep.subr.bf16.mxu1 %v8071_v58 }
 0x46e   : > { %6197 = vmatpush2.bf16.msra.mxu0 %v8066_v24 }
 0x46f   : > { %6238 = vmatpush2.bf16.msra.mxu1 %v8069_v26  ;;  %6198 = vmatprep.subr.bf16.mxu0 %v8074_v28  ;;  %v8118_v26 = vld [vmem:[%s8620_s22 + $0xc8] sm:$0xff]  }
 0x470   : > { %6239 = vmatprep.subr.bf16.mxu1 %v8077_v29 }
 0x472   : > { %6199 = vmatpush2.bf16.msra.mxu0 %v8072_v31  ;;  %v8119_v31 = vld [vmem:[%s8620_s22 + $0x88] sm:$0xff]  }
 0x473   : > { %6240 = vmatpush2.bf16.msra.mxu1 %v8075_v53  ;;  %6200 = vmatprep.subr.bf16.mxu0 %v8080_v37 }
 0x474   : > { %6241 = vmatprep.subr.bf16.mxu1 %v8083_v38 }
 0x476   : > { %6201 = vmatpush2.bf16.msra.mxu0 %v8078_v39 }
 0x477   : > { %6242 = vmatpush2.bf16.msra.mxu1 %v8081_v1  ;;  %6202 = vmatprep.subr.bf16.mxu0 %v8086_v40 }
 0x478   : > { %6243 = vmatprep.subr.bf16.mxu1 %v8089_v41  ;;  %v8120_v41 = vld [vmem:[%s8620_s22 + $0xc0] sm:$0xff]  }
 0x47a   : > { %6203 = vmatpush2.bf16.msra.mxu0 %v8084_v11 }
 0x47b   : > { %6244 = vmatpush2.bf16.msra.mxu1 %v8087_v63  ;;  %7561 = vmatprep.subr.bf16.mxu0 %v8090_v43  ;;  %v8121_v63 = vld [vmem:[%s8620_s22 + $0x80] sm:$0xff]  }
 0x47c   : > { %7583 = vmatprep.subr.bf16.mxu1 %v8106_v27 }
 0x47d   : > { %v9056_v45 = vpop.f32.mrf.mxu0  ;;  %6205 = vmatmul.mubr.bf16.vlgmr.msra.gmra.mxu0 %v8812_v3  ;;  %v8096_v3 = vld [vmem:[%s8620_s22 + $0x60] sm:$0xff]  }
 0x47e   : > { %v9058_v47 = vpop.f32.mrf.mxu1  ;;  %6246 = vmatmul.mubr.bf16.vlgmr.msra.gmra.mxu1 %v8917_v35  ;;  %7562 = vmatpush3.bf16.msra.mxu0 %v8091_v60  ;;  %v5961_v42 = vadd.f32 %v9056_v45, %v4571_v10 }
 0x47f   : > { %v5962_v9 = vpop.f32.mrf.mxu0  ;;  %7563 = vmatprep.subr.bf16.mxu0 %v8092_v16  ;;  %7584 = vmatpush3.bf16.msra.mxu1 %v8107_v4 }
 0x480   : > { %v9063_v17 = vpop.f32.mrf.mxu1  ;;  %7585 = vmatprep.subr.bf16.mxu1 %v8108_v51  ;;  %v5963_v13 = vadd.f32 %v5962_v9, %v4575_v12  ;;  %v6002_v15 = vadd.f32 %v9058_v47, %v5961_v42 }
 0x481   : > { %v5964_v48 = vpop.f32.mrf.mxu0 }
 0x482   : > { %v6005_v49 = vpop.f32.mrf.mxu1  ;;  %7564 = vmatpush3.bf16.msra.mxu0 %v8093_v2  ;;  %v6004_v55 = vadd.f32 %v9063_v17, %v5963_v13 }
 0x483   : > { %v5965_v20 = vpop.f32.mrf.mxu0  ;;  %7565 = vmatprep.subr.bf16.mxu0 %v8094_v21  ;;  %7586 = vmatpush3.bf16.msra.mxu1 %v8109_v54  ;;  %v4578_v49 = vsub.s32 2, %v8795_v5 }
 0x484   : > { %v6006_v35 = vpop.f32.mrf.mxu1  ;;  %7587 = vmatprep.subr.bf16.mxu1 %v8110_v57 }
 0x486   : > { %7566 = vmatpush3.bf16.msra.mxu0 %v8095_v50  ;;  %v4582_v50 = vsub.s32 3, %v8795_v5 }
 0x487   : > { %7567 = vmatprep.subr.bf16.mxu0 %v8096_v3  ;;  %7588 = vmatpush3.bf16.msra.mxu1 %v8111_v61  ;;  %v4579_v3 = vrot.slane %v4566_v32, %v4578_v49 }
 0x488   : > { %7589 = vmatprep.subr.bf16.mxu1 %v8112_v44  ;;  %v4583_v20 = vrot.slane %v4566_v32, %v4582_v50 }
 0x48a   : > { %7568 = vmatpush3.bf16.msra.mxu0 %v8097_v52 }
 0x48b   : > { %7569 = vmatprep.subr.bf16.mxu0 %v8098_v56  ;;  %7590 = vmatpush3.bf16.msra.mxu1 %v8113_v0 }
 0x48c   : > { %7591 = vmatprep.subr.bf16.mxu1 %v8114_v30 }
 0x48e   : > { %7570 = vmatpush3.bf16.msra.mxu0 %v8099_v59 }
 0x48f   : > { %7571 = vmatprep.subr.bf16.mxu0 %v8100_v62  ;;  %7592 = vmatpush3.bf16.msra.mxu1 %v8115_v25 }
 0x490   : > { %7593 = vmatprep.subr.bf16.mxu1 %v8116_v14 }
 0x492   : > { %7572 = vmatpush3.bf16.msra.mxu0 %v8101_v33 }
 0x493   : > { %7573 = vmatprep.subr.bf16.mxu0 %v8102_v22  ;;  %7594 = vmatpush3.bf16.msra.mxu1 %v8117_v46 }
 0x494   : > { %7595 = vmatprep.subr.bf16.mxu1 %v8118_v26 }
 0x496   : > { %7574 = vmatpush3.bf16.msra.mxu0 %v8103_v36 }
 0x497   : > { %7575 = vmatprep.subr.bf16.mxu0 %v8104_v6  ;;  %7596 = vmatpush3.bf16.msra.mxu1 %v8119_v31 }
 0x498   : > { %7597 = vmatprep.subr.bf16.mxu1 %v8120_v41 }
 0x49a   : > { %7576 = vmatpush3.bf16.msra.mxu0 %v8105_v34 }
 0x49b   : > { %7598 = vmatpush3.bf16.msra.mxu1 %v8121_v63 }
 0x4bd   : > { %v6042_v18 = vpop.f32.mrf.mxu0 }
 0x4be   : > { %v6083_v19 = vpop.f32.mrf.mxu1  ;;  %v6043_v23 = vadd.f32 %v6042_v18, %v6002_v15  ;;  %v6258_v15 = vld [vmem:[#allocation12] sm:$0x3] }
 0x4bf   : > { %v6044_v58 = vpop.f32.mrf.mxu0 }
 0x4c0   : > { %v6085_v24 = vpop.f32.mrf.mxu1  ;;  %v6084_v28 = vadd.f32 %v6083_v19, %v6043_v23  ;;  %v6045_v29 = vadd.f32 %v6044_v58, %v6004_v55 }
 0x4c1   : > { %v6046_v53 = vpop.f32.mrf.mxu0 }
 0x4c2   : > { %v6087_v37 = vpop.f32.mrf.mxu1  ;;  %v6086_v38 = vadd.f32 %v6085_v24, %v6045_v29  ;;  %v6254_v39 = vmax.f32 %v6084_v28, 0.0 }
 0x4c3   : > { %v6047_v1 = vpop.f32.mrf.mxu0 }
 0x4c4   : > { %v6088_v40 = vpop.f32.mrf.mxu1  ;;  %v6255_v11 = vmax.f32 %v6086_v38, 0.0  ;;  %v6259_v60 = vpack.c.bf16 %v6254_v39, %v6254_v39 }
 0x4c6   : > { %v6260_v43 = vpack.c.bf16 %v6255_v11, %v6255_v11 }
 0x4c8   : > { %6551 = vmatprep.mubr.bf16.mxu0 %v6260_v43 }
 0x4c9   : > { %6552 = vmatmul.mubr.bf16.vlgmr.msra.gmra.mxu0 %v6259_v60 }
 0x4fd   : > { %v6124_v16 = vpop.f32.mrf.mxu0 }
 0x4fe   : > { %v6165_v45 = vpop.f32.mrf.mxu1  ;;  %v6125_v35 = vadd.f32 %v6124_v16, %v4579_v3 }
 0x4ff   : > { %v6126_v47 = vpop.f32.mrf.mxu0 }
 0x500   : > { %v6167_v2 = vpop.f32.mrf.mxu1  ;;  %v6127_v27 = vadd.f32 %v6126_v47, %v4583_v20  ;;  %v6166_v4 = vadd.f32 %v6165_v45, %v6125_v35 }
 0x501   : > { %v6128_v9 = vpop.f32.mrf.mxu0 }
 0x502   : > { %v6169_v17 = vpop.f32.mrf.mxu1  ;;  %v6168_v54 = vadd.f32 %v6167_v2, %v6127_v27 }
 0x503   : > { %v6129_v21 = vpop.f32.mrf.mxu0 }
 0x504   : > { %v6170_v48 = vpop.f32.mrf.mxu1 }
 0x53d   : > { %v6206_v51 = vpop.f32.mrf.mxu0 }
 0x53e   : > { %v6247_v52 = vpop.f32.mrf.mxu1  ;;  %v6207_v56 = vadd.f32 %v6206_v51, %v6166_v4 }
 0x53f   : > { %v6208_v57 = vpop.f32.mrf.mxu0 }
 0x540   : > { %v6249_v59 = vpop.f32.mrf.mxu1  ;;  %v6248_v61 = vadd.f32 %v6247_v52, %v6207_v56  ;;  %v6209_v62 = vadd.f32 %v6208_v57, %v6168_v54 }
 0x541   : > { %v6210_v44 = vpop.f32.mrf.mxu0 }
 0x542   : > { %v6251_v33 = vpop.f32.mrf.mxu1  ;;  %v6250_v0 = vadd.f32 %v6249_v59, %v6209_v62  ;;  %v6256_v22 = vmax.f32 %v6248_v61, 0.0 }
 0x543   : > { %v6211_v30 = vpop.f32.mrf.mxu0 }
 0x544   : > { %v6252_v36 = vpop.f32.mrf.mxu1  ;;  %v6257_v5 = vmax.f32 %v6250_v0, 0.0  ;;  %v6261_v6 = vpack.c.bf16 %v6256_v22, %v6256_v22 }
 0x546   : > { %v6262_v25 = vpack.c.bf16 %v6257_v5, %v6257_v5 }
 0x548   : > { %6591 = vmatprep.mubr.bf16.mxu1 %v6262_v25 }
 0x549   : > { %6592 = vmatmul.mubr.bf16.vlgmr.msra.gmra.mxu1 %v6261_v6 }
 0x589   : > { %v7577_v34 = vpop.f32.mrf.mxu0 }
 0x58b   : > { %v7578_v7 = vpop.f32.mrf.mxu0 }
 0x58c   : > { %v7579_v32 = vadd.f32 %v7578_v7, %v7577_v34 }
 0x58d   : > { %v7580_v8 = vpop.f32.mrf.mxu0 }
 0x58f   : > { %v7581_v10 = vpop.f32.mrf.mxu0 }
 0x609   : > { %v7599_v12 = vpop.f32.mrf.mxu1 }
 0x60b   : > { %v7600_v42 = vpop.f32.mrf.mxu1 }
 0x60c   : > { %v7601_v13 = vadd.f32 %v7600_v42, %v7599_v12 }
 0x60d   : > { %v7602_v14 = vpop.f32.mrf.mxu1 }
 0x60e   : > { %v6594_v46 = vadd.f32 %v7601_v13, %v7579_v32 }
 0x60f   : > { %v7603_v18 = vpop.f32.mrf.mxu1 }
 0x610   : > { %v6599_v19 = vadd.f32 %v6594_v46, %v6258_v15 }
 0x612   : > { %6600 = vst [vmem:[#allocation12] sm:$0x3] %v6599_v19 }
 0x613   : > { %8297 = shalt.err (!%p8294_p9)
}
 0x614   : > { %7624 = dma.vmem_to_hbm [thread:$0]  (%p7654_p2), %s6609_s10, 32, %s9133_s7, [#allocation5]  }
 0x615   : > { %8341 = dma.done.wait (%p7654_p2), [#allocation5], 32  }
 0x616   : > { %8343 = vsyncadd (%p7654_p2), [#allocation5], 4294967264 }
 0x617 PF: > { %s9168_s27 = sld [smem:[#allocation19_spill]]  ;;  %s9171_s24 = smov %s8350_s25 }
 0x618   : > { %s9169_s21 = sld [smem:[#allocation18_spill]] }
 0x619   : > { %s9170_s26 = sld [smem:[#allocation20_spill]] }
 0x61d   : > { %p17_p13 = scmp.ge.s32.totalorder %s9168_s27, 6  }
 0x61e   : > { %s9172_s25 = smov %s9169_s21 }
 0x61f   :  { %19 = sbr.rel (!%p17_p13) target bundleno = 6 (0x6), region = 122 }
 0x624   :  { %6621 = vsyncpa [#allocation4], 1 }
 0x625   :  { %6623 = vsyncpa [#allocation4 + $0x1], 1 }
 0x626   :  { %6624 = vsyncpa [#allocation7], 1 }
 0x627   :  { %6625 = vsyncpa [#allocation5], 1 }
 0x628   :  { %6627 = vsyncpa [#allocation5 + $0x1], 1 }

</bundles_post_ra>
